<compile_context>
chip_gen: v5e
topology: v5e:2x2
jax: 0.10.0
libtpu: 0.0.40
codegen_flags: <defaults>
</compile_context>

<pallas_src>
import functools

import numpy as np
import jax
import jax.numpy as jnp
from jax import lax
from jax.experimental import pallas as pl
from jax.experimental.pallas import tpu as pltpu


def _hist_kernel(s_ref, flag_ref, pos_ref, tot_ref, *,
                 tpad, sub, chunk, delta, inv_delta, unroll):
    # grid = (ncores [parallel], chunks-per-core [arbitrary reduction axis])
    @pl.when(pl.program_id(1) == 0)
    def _init():
        pos_ref[...] = jnp.zeros_like(pos_ref)
        tot_ref[...] = jnp.zeros_like(tot_ref)

    # bin left edge per sublane row: t[r] = -1 + r*delta (== torch.arange(-1, 1, delta));
    # hoisted out of the sub-slab loop (JAX does not CSE broadcast_in_dim).
    r_idx = lax.broadcasted_iota(jnp.int32, (tpad, sub), 0).astype(jnp.float32)
    t = -1.0 + r_idx * delta
    t_lo = t - delta

    def body(i, carry):
        pos_acc, tot_acc = carry
        off = pl.multiple_of(i * sub, sub)
        s = jnp.broadcast_to(s_ref[:, pl.ds(off, sub)], (tpad, sub))
        flag = jnp.broadcast_to(flag_ref[:, pl.ds(off, sub)], (tpad, sub))
        # lower edge of the bin containing s; keep the true division inside the
        # floor so the exact == bin-edge test matches the torch code.
        bin_floor = jnp.floor((s + 1.0) / delta) * delta - 1.0
        indsa = bin_floor == t_lo          # s in [t - delta, t)  -> rising edge
        indsb = bin_floor == t             # s in [t, t + delta)  -> falling edge
        rising = (s - t_lo) * inv_delta
        falling = (t - s + delta) * inv_delta
        contrib = jnp.where(indsa, rising, jnp.where(indsb, falling, 0.0))
        pos_acc = pos_acc + jnp.sum(contrib * flag, axis=1, keepdims=True)
        tot_acc = tot_acc + jnp.sum(contrib, axis=1, keepdims=True)
        return pos_acc, tot_acc

    zero = jnp.zeros((tpad, 1), jnp.float32)
    pos_acc, tot_acc = lax.fori_loop(0, chunk // sub, body, (zero, zero),
                                     unroll=unroll)
    pos_ref[...] += pos_acc
    tot_ref[...] += tot_acc


def histogram_loss_for_similarity(similarities_matrix, signs_matrix, R):
    """similarities_matrix: (N, N) float32; signs_matrix: (N, N) bool (same-class)."""
    delta = 2.0 / (float(R) - 1.0)
    t_np = np.arange(-1.0, 1.0, delta, dtype=np.float32)
    tsize = int(t_np.shape[0])
    tpad = max(8, ((tsize + 7) // 8) * 8)

    n = similarities_matrix.shape[0]
    # TODO(synk): for large N, replace this host-side strict-upper-triangle gather with
    # 2D (N, N) tiling + in-kernel row<col masking and labels-based flags (no gather,
    # lane+sublane-dense DMA).
    iu0, iu1 = np.triu_indices(n, k=1)
    s = similarities_matrix[iu0, iu1].astype(jnp.float32)      # (M,) pair similarities
    flags = signs_matrix[iu0, iu1].astype(jnp.float32)         # (M,) 1.0 = same class
    m = int(s.shape[0])

    # ---- tiling ---------------------------------------------------------------
    chunk = 8192                  # lanes per grid step (amortizes ~600 cyc/step overhead)
    ncores = 2                    # leading "parallel" axis -> both TCs on v7x
    if tpad <= 8:
        sub = 512                 # sub-slab width keeps ~10 (tpad, sub) temps < 64 vregs
    elif tpad <= 16:
        sub = 256
    else:
        sub = 128
    n_sub = chunk // sub
    unroll = True if n_sub <= 16 else 8

    per_core = max(1, -(-m // (ncores * chunk)))
    m_pad = ncores * per_core * chunk
    pad = m_pad - m
    # padded lanes: sentinel similarity whose bin floor can never equal a bin edge,
    # so padded lanes contribute exactly zero without any validity mask.
    s_p = jnp.pad(s, (0, pad), constant_values=1e6).reshape(1, m_pad)
    f_p = jnp.pad(flags, (0, pad)).reshape(1, m_pad)

    pos_size = jnp.sum(flags)
    neg_size = jnp.float32(m) - pos_size

    kernel = functools.partial(_hist_kernel, tpad=tpad, sub=sub, chunk=chunk,
                               delta=float(delta), inv_delta=float(1.0 / delta),
                               unroll=unroll)

    pos_raw, tot_raw = pl.pallas_call(
        kernel,
        out_shape=(jax.ShapeDtypeStruct((ncores, tpad, 1), jnp.float32),
                   jax.ShapeDtypeStruct((ncores, tpad, 1), jnp.float32)),
        grid_spec=pltpu.PrefetchScalarGridSpec(
            num_scalar_prefetch=0,
            grid=(ncores, per_core),
            in_specs=[
                pl.BlockSpec((1, chunk), lambda c, k: (0, c * per_core + k)),   # s
                pl.BlockSpec((1, chunk), lambda c, k: (0, c * per_core + k)),   # flags
            ],
            out_specs=[
                pl.BlockSpec((None, tpad, 1), lambda c, k: (c, 0, 0)),  # per-core pos sums
                pl.BlockSpec((None, tpad, 1), lambda c, k: (c, 0, 0)),  # per-core total sums
            ],
        ),
        compiler_params=pltpu.CompilerParams(
            dimension_semantics=("parallel", "arbitrary")),
    )(s_p, f_p)

    # Tiny O(tsize) finalize in plain JAX: combine cores, normalize, cdf, dot.
    pos = jnp.sum(pos_raw[:, :tsize, 0], axis=0)
    tot = jnp.sum(tot_raw[:, :tsize, 0], axis=0)
    hist_pos = pos / pos_size
    hist_neg = (tot - pos) / neg_size
    return jnp.sum(hist_neg * jnp.cumsum(hist_pos))


def reference_loss(sims, signs, R):
    """Pure NumPy transliteration of the PyTorch forward (for verification)."""
    delta = 2.0 / (float(R) - 1.0)
    t = np.arange(-1.0, 1.0, delta, dtype=np.float32).reshape(-1, 1)
    tsize = t.shape[0]
    n = sims.shape[0]
    iu = np.triu_indices(n, k=1)
    ce = signs[iu]
    s = sims[iu].astype(np.float32)
    pos_inds = np.tile(ce, (tsize, 1))
    neg_inds = ~pos_inds
    pos_size = ce.sum()
    neg_size = (~ce).sum()
    s_repeat = np.tile(s.reshape(1, -1), (tsize, 1)).astype(np.float32)
    delta_repeat = (np.floor((s_repeat + 1.0) / delta) * delta - 1.0).astype(np.float32)

    def histogram(inds, size):
        sr = s_repeat.copy()
        indsa = (delta_repeat == (t - delta)) & inds
        indsb = (delta_repeat == t) & inds
        sr[~(indsa | indsb)] = 0.0
        sr[indsa] = ((s_repeat - t + delta) / delta)[indsa]
        sr[indsb] = ((-s_repeat + t + delta) / delta)[indsb]
        return sr.sum(1) / size

    hp = histogram(pos_inds, pos_size)
    hn = histogram(neg_inds, neg_size)
    cdf = np.cumsum(hp)
    return float(np.sum(hn * cdf))


if __name__ == "__main__":
    R = 5          # -> delta = 0.5, tsize = 4
    N = 16         # number of embeddings -> 16x16 similarity / sign matrices
    D = 32

    key = jax.random.PRNGKey(0)
    emb = jax.random.normal(key, (N, D), dtype=jnp.float32)
    emb = emb / jnp.linalg.norm(emb, axis=1, keepdims=True)
    sims = emb @ emb.T                                  # cosine similarities in [-1, 1]
    labels = jnp.arange(N) % 4                          # deterministic class labels
    signs = labels[:, None] == labels[None, :]          # bool "same class" matrix

    loss = histogram_loss_for_similarity(sims, signs, R)
    loss = jax.block_until_ready(loss)

    ref = reference_loss(np.asarray(sims), np.asarray(signs), R)
    np.testing.assert_allclose(float(loss), ref, rtol=1e-5, atol=1e-6)
    print("KERNEL_OK")
</pallas_src>

<mosaic_0001>
module attributes {stable_mosaic.version = 11 : i64} {
  func.func @_hist_kernel(%arg0: i32, %arg1: i32, %arg2: memref<1x8192xf32, #tpu.memory_space<vmem>>, %arg3: memref<1x8192xf32, #tpu.memory_space<vmem>>, %arg4: memref<1x8x1xf32, #tpu.memory_space<vmem>>, %arg5: memref<1x8x1xf32, #tpu.memory_space<vmem>>) attributes {dimension_semantics = [#tpu.dimension_semantics<parallel>, #tpu.dimension_semantics<arbitrary>], iteration_bounds = array<i64: 2, 1>, scalar_prefetch = 0 : i64, scratch_operands = 0 : i64, tpu.core_type = #tpu.core_type<tc>, window_params = [{transform_indices = @transform_0, window_bounds = array<i64: 1, 8192>}, {transform_indices = @transform_1, window_bounds = array<i64: 1, 8192>}, {transform_indices = @transform_2, window_bounds = array<i64: 1, 8, 1>}, {transform_indices = @transform_3, window_bounds = array<i64: 1, 8, 1>}]} {
    %c0_i32 = arith.constant 0 : i32
    %0 = arith.cmpi eq, %arg1, %c0_i32 : i32
    %1 = arith.extui %0 : i1 to i32
    %c0_i32_0 = arith.constant 0 : i32
    %2 = arith.cmpi ne, %1, %c0_i32_0 : i32
    scf.if %2 {
      %cst_223 = arith.constant 0.000000e+00 : f32
      %648 = vector.broadcast %cst_223 : f32 to vector<8x1xf32>
      %c0_224 = arith.constant 0 : index
      %c0_225 = arith.constant 0 : index
      %c0_226 = arith.constant 0 : index
      %649 = vector.load %arg4[%c0_224, %c0_225, %c0_226] : memref<1x8x1xf32, #tpu.memory_space<vmem>>, vector<1x8x1xf32>
      %650 = vector.shape_cast %649 : vector<1x8x1xf32> to vector<8x1xf32>
      %651 = vector.shape_cast %648 : vector<8x1xf32> to vector<1x8x1xf32>
      tpu.vector_store %arg4[%c0_224, %c0_225, %c0_226], %651 {strides = array<i32>} : memref<1x8x1xf32, #tpu.memory_space<vmem>>, vector<1x8x1xf32>,
      %cst_227 = arith.constant 0.000000e+00 : f32
      %652 = vector.broadcast %cst_227 : f32 to vector<8x1xf32>
      %c0_228 = arith.constant 0 : index
      %c0_229 = arith.constant 0 : index
      %c0_230 = arith.constant 0 : index
      %653 = vector.load %arg5[%c0_228, %c0_229, %c0_230] : memref<1x8x1xf32, #tpu.memory_space<vmem>>, vector<1x8x1xf32>
      %654 = vector.shape_cast %653 : vector<1x8x1xf32> to vector<8x1xf32>
      %655 = vector.shape_cast %652 : vector<8x1xf32> to vector<1x8x1xf32>
      tpu.vector_store %arg5[%c0_228, %c0_229, %c0_230], %655 {strides = array<i32>} : memref<1x8x1xf32, #tpu.memory_space<vmem>>, vector<1x8x1xf32>,
    } else {
    }
    %3 = tpu.iota {dimensions = array<i32: 0>} : vector<8x512xi32>
    %4 = arith.sitofp %3 : vector<8x512xi32> to vector<8x512xf32>
    %cst = arith.constant 5.000000e-01 : f32
    %5 = vector.broadcast %cst : f32 to vector<8x512xf32>
    %6 = arith.mulf %4, %5 : vector<8x512xf32>
    %cst_1 = arith.constant -1.000000e+00 : f32
    %7 = vector.broadcast %cst_1 : f32 to vector<8x512xf32>
    %8 = arith.addf %7, %6 : vector<8x512xf32>
    %cst_2 = arith.constant 5.000000e-01 : f32
    %9 = vector.broadcast %cst_2 : f32 to vector<8x512xf32>
    %10 = arith.subf %8, %9 : vector<8x512xf32>
    %cst_3 = arith.constant 0.000000e+00 : f32
    %11 = vector.broadcast %cst_3 : f32 to vector<8x1xf32>
    %c0_i32_4 = arith.constant 0 : i32
    %c512_i32 = arith.constant 512 : i32
    %12 = arith.muli %c0_i32_4, %c512_i32 : i32
    %13 = tpu.assume_multiple %12, 512 : i32
    %c0 = arith.constant 0 : index
    %14 = arith.index_cast %13 : i32 to index
    %15 = vector.load %arg2[%c0, %14] : memref<1x8192xf32, #tpu.memory_space<vmem>>, vector<1x512xf32>
    %16 = vector.shape_cast %15 : vector<1x512xf32> to vector<1x512xf32>
    %17 = vector.broadcast %16 : vector<1x512xf32> to vector<8x512xf32>
    %c0_5 = arith.constant 0 : index
    %18 = arith.index_cast %13 : i32 to index
    %19 = vector.load %arg3[%c0_5, %18] : memref<1x8192xf32, #tpu.memory_space<vmem>>, vector<1x512xf32>
    %20 = vector.shape_cast %19 : vector<1x512xf32> to vector<1x512xf32>
    %21 = vector.broadcast %20 : vector<1x512xf32> to vector<8x512xf32>
    %cst_6 = arith.constant 1.000000e+00 : f32
    %22 = vector.broadcast %cst_6 : f32 to vector<8x512xf32>
    %23 = arith.addf %17, %22 : vector<8x512xf32>
    %cst_7 = arith.constant 5.000000e-01 : f32
    %24 = vector.broadcast %cst_7 : f32 to vector<8x512xf32>
    %25 = arith.divf %23, %24 : vector<8x512xf32>
    %26 = math.floor %25 : vector<8x512xf32>
    %cst_8 = arith.constant 5.000000e-01 : f32
    %27 = vector.broadcast %cst_8 : f32 to vector<8x512xf32>
    %28 = arith.mulf %26, %27 : vector<8x512xf32>
    %cst_9 = arith.constant 1.000000e+00 : f32
    %29 = vector.broadcast %cst_9 : f32 to vector<8x512xf32>
    %30 = arith.subf %28, %29 : vector<8x512xf32>
    %31 = arith.cmpf oeq, %30, %10 : vector<8x512xf32>
    %32 = arith.cmpf oeq, %30, %8 : vector<8x512xf32>
    %33 = arith.subf %17, %10 : vector<8x512xf32>
    %cst_10 = arith.constant 2.000000e+00 : f32
    %34 = vector.broadcast %cst_10 : f32 to vector<8x512xf32>
    %35 = arith.mulf %33, %34 : vector<8x512xf32>
    %36 = arith.subf %8, %17 : vector<8x512xf32>
    %cst_11 = arith.constant 5.000000e-01 : f32
    %37 = vector.broadcast %cst_11 : f32 to vector<8x512xf32>
    %38 = arith.addf %36, %37 : vector<8x512xf32>
    %cst_12 = arith.constant 2.000000e+00 : f32
    %39 = vector.broadcast %cst_12 : f32 to vector<8x512xf32>
    %40 = arith.mulf %38, %39 : vector<8x512xf32>
    %cst_13 = arith.constant 0.000000e+00 : f32
    %41 = vector.broadcast %cst_13 : f32 to vector<8x512xf32>
    %42 = arith.select %32, %40, %41 : vector<8x512xi1>, vector<8x512xf32>
    %43 = arith.select %31, %35, %42 : vector<8x512xi1>, vector<8x512xf32>
    %44 = arith.mulf %43, %21 : vector<8x512xf32>
    %cst_14 = arith.constant dense<0.000000e+00> : vector<8xf32>
    %45 = vector.multi_reduction <add>, %44, %cst_14 [1] : vector<8x512xf32> to vector<8xf32>
    %46 = vector.shape_cast %45 : vector<8xf32> to vector<8x1xf32>
    %47 = arith.addf %11, %46 : vector<8x1xf32>
    %cst_15 = arith.constant dense<0.000000e+00> : vector<8xf32>
    %48 = vector.multi_reduction <add>, %43, %cst_15 [1] : vector<8x512xf32> to vector<8xf32>
    %49 = vector.shape_cast %48 : vector<8xf32> to vector<8x1xf32>
    %50 = arith.addf %11, %49 : vector<8x1xf32>
    %c1_i32 = arith.constant 1 : i32
    %c512_i32_16 = arith.constant 512 : i32
    %51 = arith.muli %c1_i32, %c512_i32_16 : i32
    %52 = tpu.assume_multiple %51, 512 : i32
    %c0_17 = arith.constant 0 : index
    %53 = arith.index_cast %52 : i32 to index
    %54 = vector.load %arg2[%c0_17, %53] : memref<1x8192xf32, #tpu.memory_space<vmem>>, vector<1x512xf32>
    %55 = vector.shape_cast %54 : vector<1x512xf32> to vector<1x512xf32>
    %56 = vector.broadcast %55 : vector<1x512xf32> to vector<8x512xf32>
    %c0_18 = arith.constant 0 : index
    %57 = arith.index_cast %52 : i32 to index
    %58 = vector.load %arg3[%c0_18, %57] : memref<1x8192xf32, #tpu.memory_space<vmem>>, vector<1x512xf32>
    %59 = vector.shape_cast %58 : vector<1x512xf32> to vector<1x512xf32>
    %60 = vector.broadcast %59 : vector<1x512xf32> to vector<8x512xf32>
    %cst_19 = arith.constant 1.000000e+00 : f32
    %61 = vector.broadcast %cst_19 : f32 to vector<8x512xf32>
    %62 = arith.addf %56, %61 : vector<8x512xf32>
    %cst_20 = arith.constant 5.000000e-01 : f32
    %63 = vector.broadcast %cst_20 : f32 to vector<8x512xf32>
    %64 = arith.divf %62, %63 : vector<8x512xf32>
    %65 = math.floor %64 : vector<8x512xf32>
    %cst_21 = arith.constant 5.000000e-01 : f32
    %66 = vector.broadcast %cst_21 : f32 to vector<8x512xf32>
    %67 = arith.mulf %65, %66 : vector<8x512xf32>
    %cst_22 = arith.constant 1.000000e+00 : f32
    %68 = vector.broadcast %cst_22 : f32 to vector<8x512xf32>
    %69 = arith.subf %67, %68 : vector<8x512xf32>
    %70 = arith.cmpf oeq, %69, %10 : vector<8x512xf32>
    %71 = arith.cmpf oeq, %69, %8 : vector<8x512xf32>
    %72 = arith.subf %56, %10 : vector<8x512xf32>
    %cst_23 = arith.constant 2.000000e+00 : f32
    %73 = vector.broadcast %cst_23 : f32 to vector<8x512xf32>
    %74 = arith.mulf %72, %73 : vector<8x512xf32>
    %75 = arith.subf %8, %56 : vector<8x512xf32>
    %cst_24 = arith.constant 5.000000e-01 : f32
    %76 = vector.broadcast %cst_24 : f32 to vector<8x512xf32>
    %77 = arith.addf %75, %76 : vector<8x512xf32>
    %cst_25 = arith.constant 2.000000e+00 : f32
    %78 = vector.broadcast %cst_25 : f32 to vector<8x512xf32>
    %79 = arith.mulf %77, %78 : vector<8x512xf32>
    %cst_26 = arith.constant 0.000000e+00 : f32
    %80 = vector.broadcast %cst_26 : f32 to vector<8x512xf32>
    %81 = arith.select %71, %79, %80 : vector<8x512xi1>, vector<8x512xf32>
    %82 = arith.select %70, %74, %81 : vector<8x512xi1>, vector<8x512xf32>
    %83 = arith.mulf %82, %60 : vector<8x512xf32>
    %cst_27 = arith.constant dense<0.000000e+00> : vector<8xf32>
    %84 = vector.multi_reduction <add>, %83, %cst_27 [1] : vector<8x512xf32> to vector<8xf32>
    %85 = vector.shape_cast %84 : vector<8xf32> to vector<8x1xf32>
    %86 = arith.addf %47, %85 : vector<8x1xf32>
    %cst_28 = arith.constant dense<0.000000e+00> : vector<8xf32>
    %87 = vector.multi_reduction <add>, %82, %cst_28 [1] : vector<8x512xf32> to vector<8xf32>
    %88 = vector.shape_cast %87 : vector<8xf32> to vector<8x1xf32>
    %89 = arith.addf %50, %88 : vector<8x1xf32>
    %c2_i32 = arith.constant 2 : i32
    %c512_i32_29 = arith.constant 512 : i32
    %90 = arith.muli %c2_i32, %c512_i32_29 : i32
    %91 = tpu.assume_multiple %90, 512 : i32
    %c0_30 = arith.constant 0 : index
    %92 = arith.index_cast %91 : i32 to index
    %93 = vector.load %arg2[%c0_30, %92] : memref<1x8192xf32, #tpu.memory_space<vmem>>, vector<1x512xf32>
    %94 = vector.shape_cast %93 : vector<1x512xf32> to vector<1x512xf32>
    %95 = vector.broadcast %94 : vector<1x512xf32> to vector<8x512xf32>
    %c0_31 = arith.constant 0 : index
    %96 = arith.index_cast %91 : i32 to index
    %97 = vector.load %arg3[%c0_31, %96] : memref<1x8192xf32, #tpu.memory_space<vmem>>, vector<1x512xf32>
    %98 = vector.shape_cast %97 : vector<1x512xf32> to vector<1x512xf32>
    %99 = vector.broadcast %98 : vector<1x512xf32> to vector<8x512xf32>
    %cst_32 = arith.constant 1.000000e+00 : f32
    %100 = vector.broadcast %cst_32 : f32 to vector<8x512xf32>
    %101 = arith.addf %95, %100 : vector<8x512xf32>
    %cst_33 = arith.constant 5.000000e-01 : f32
    %102 = vector.broadcast %cst_33 : f32 to vector<8x512xf32>
    %103 = arith.divf %101, %102 : vector<8x512xf32>
    %104 = math.floor %103 : vector<8x512xf32>
    %cst_34 = arith.constant 5.000000e-01 : f32
    %105 = vector.broadcast %cst_34 : f32 to vector<8x512xf32>
    %106 = arith.mulf %104, %105 : vector<8x512xf32>
    %cst_35 = arith.constant 1.000000e+00 : f32
    %107 = vector.broadcast %cst_35 : f32 to vector<8x512xf32>
    %108 = arith.subf %106, %107 : vector<8x512xf32>
    %109 = arith.cmpf oeq, %108, %10 : vector<8x512xf32>
    %110 = arith.cmpf oeq, %108, %8 : vector<8x512xf32>
    %111 = arith.subf %95, %10 : vector<8x512xf32>
    %cst_36 = arith.constant 2.000000e+00 : f32
    %112 = vector.broadcast %cst_36 : f32 to vector<8x512xf32>
    %113 = arith.mulf %111, %112 : vector<8x512xf32>
    %114 = arith.subf %8, %95 : vector<8x512xf32>
    %cst_37 = arith.constant 5.000000e-01 : f32
    %115 = vector.broadcast %cst_37 : f32 to vector<8x512xf32>
    %116 = arith.addf %114, %115 : vector<8x512xf32>
    %cst_38 = arith.constant 2.000000e+00 : f32
    %117 = vector.broadcast %cst_38 : f32 to vector<8x512xf32>
    %118 = arith.mulf %116, %117 : vector<8x512xf32>
    %cst_39 = arith.constant 0.000000e+00 : f32
    %119 = vector.broadcast %cst_39 : f32 to vector<8x512xf32>
    %120 = arith.select %110, %118, %119 : vector<8x512xi1>, vector<8x512xf32>
    %121 = arith.select %109, %113, %120 : vector<8x512xi1>, vector<8x512xf32>
    %122 = arith.mulf %121, %99 : vector<8x512xf32>
    %cst_40 = arith.constant dense<0.000000e+00> : vector<8xf32>
    %123 = vector.multi_reduction <add>, %122, %cst_40 [1] : vector<8x512xf32> to vector<8xf32>
    %124 = vector.shape_cast %123 : vector<8xf32> to vector<8x1xf32>
    %125 = arith.addf %86, %124 : vector<8x1xf32>
    %cst_41 = arith.constant dense<0.000000e+00> : vector<8xf32>
    %126 = vector.multi_reduction <add>, %121, %cst_41 [1] : vector<8x512xf32> to vector<8xf32>
    %127 = vector.shape_cast %126 : vector<8xf32> to vector<8x1xf32>
    %128 = arith.addf %89, %127 : vector<8x1xf32>
    %c3_i32 = arith.constant 3 : i32
    %c512_i32_42 = arith.constant 512 : i32
    %129 = arith.muli %c3_i32, %c512_i32_42 : i32
    %130 = tpu.assume_multiple %129, 512 : i32
    %c0_43 = arith.constant 0 : index
    %131 = arith.index_cast %130 : i32 to index
    %132 = vector.load %arg2[%c0_43, %131] : memref<1x8192xf32, #tpu.memory_space<vmem>>, vector<1x512xf32>
    %133 = vector.shape_cast %132 : vector<1x512xf32> to vector<1x512xf32>
    %134 = vector.broadcast %133 : vector<1x512xf32> to vector<8x512xf32>
    %c0_44 = arith.constant 0 : index
    %135 = arith.index_cast %130 : i32 to index
    %136 = vector.load %arg3[%c0_44, %135] : memref<1x8192xf32, #tpu.memory_space<vmem>>, vector<1x512xf32>
    %137 = vector.shape_cast %136 : vector<1x512xf32> to vector<1x512xf32>
    %138 = vector.broadcast %137 : vector<1x512xf32> to vector<8x512xf32>
    %cst_45 = arith.constant 1.000000e+00 : f32
    %139 = vector.broadcast %cst_45 : f32 to vector<8x512xf32>
    %140 = arith.addf %134, %139 : vector<8x512xf32>
    %cst_46 = arith.constant 5.000000e-01 : f32
    %141 = vector.broadcast %cst_46 : f32 to vector<8x512xf32>
    %142 = arith.divf %140, %141 : vector<8x512xf32>
    %143 = math.floor %142 : vector<8x512xf32>
    %cst_47 = arith.constant 5.000000e-01 : f32
    %144 = vector.broadcast %cst_47 : f32 to vector<8x512xf32>
    %145 = arith.mulf %143, %144 : vector<8x512xf32>
    %cst_48 = arith.constant 1.000000e+00 : f32
    %146 = vector.broadcast %cst_48 : f32 to vector<8x512xf32>
    %147 = arith.subf %145, %146 : vector<8x512xf32>
    %148 = arith.cmpf oeq, %147, %10 : vector<8x512xf32>
    %149 = arith.cmpf oeq, %147, %8 : vector<8x512xf32>
    %150 = arith.subf %134, %10 : vector<8x512xf32>
    %cst_49 = arith.constant 2.000000e+00 : f32
    %151 = vector.broadcast %cst_49 : f32 to vector<8x512xf32>
    %152 = arith.mulf %150, %151 : vector<8x512xf32>
    %153 = arith.subf %8, %134 : vector<8x512xf32>
    %cst_50 = arith.constant 5.000000e-01 : f32
    %154 = vector.broadcast %cst_50 : f32 to vector<8x512xf32>
    %155 = arith.addf %153, %154 : vector<8x512xf32>
    %cst_51 = arith.constant 2.000000e+00 : f32
    %156 = vector.broadcast %cst_51 : f32 to vector<8x512xf32>
    %157 = arith.mulf %155, %156 : vector<8x512xf32>
    %cst_52 = arith.constant 0.000000e+00 : f32
    %158 = vector.broadcast %cst_52 : f32 to vector<8x512xf32>
    %159 = arith.select %149, %157, %158 : vector<8x512xi1>, vector<8x512xf32>
    %160 = arith.select %148, %152, %159 : vector<8x512xi1>, vector<8x512xf32>
    %161 = arith.mulf %160, %138 : vector<8x512xf32>
    %cst_53 = arith.constant dense<0.000000e+00> : vector<8xf32>
    %162 = vector.multi_reduction <add>, %161, %cst_53 [1] : vector<8x512xf32> to vector<8xf32>
    %163 = vector.shape_cast %162 : vector<8xf32> to vector<8x1xf32>
    %164 = arith.addf %125, %163 : vector<8x1xf32>
    %cst_54 = arith.constant dense<0.000000e+00> : vector<8xf32>
    %165 = vector.multi_reduction <add>, %160, %cst_54 [1] : vector<8x512xf32> to vector<8xf32>
    %166 = vector.shape_cast %165 : vector<8xf32> to vector<8x1xf32>
    %167 = arith.addf %128, %166 : vector<8x1xf32>
    %c4_i32 = arith.constant 4 : i32
    %c512_i32_55 = arith.constant 512 : i32
    %168 = arith.muli %c4_i32, %c512_i32_55 : i32
    %169 = tpu.assume_multiple %168, 512 : i32
    %c0_56 = arith.constant 0 : index
    %170 = arith.index_cast %169 : i32 to index
    %171 = vector.load %arg2[%c0_56, %170] : memref<1x8192xf32, #tpu.memory_space<vmem>>, vector<1x512xf32>
    %172 = vector.shape_cast %171 : vector<1x512xf32> to vector<1x512xf32>
    %173 = vector.broadcast %172 : vector<1x512xf32> to vector<8x512xf32>
    %c0_57 = arith.constant 0 : index
    %174 = arith.index_cast %169 : i32 to index
    %175 = vector.load %arg3[%c0_57, %174] : memref<1x8192xf32, #tpu.memory_space<vmem>>, vector<1x512xf32>
    %176 = vector.shape_cast %175 : vector<1x512xf32> to vector<1x512xf32>
    %177 = vector.broadcast %176 : vector<1x512xf32> to vector<8x512xf32>
    %cst_58 = arith.constant 1.000000e+00 : f32
    %178 = vector.broadcast %cst_58 : f32 to vector<8x512xf32>
    %179 = arith.addf %173, %178 : vector<8x512xf32>
    %cst_59 = arith.constant 5.000000e-01 : f32
    %180 = vector.broadcast %cst_59 : f32 to vector<8x512xf32>
    %181 = arith.divf %179, %180 : vector<8x512xf32>
    %182 = math.floor %181 : vector<8x512xf32>
    %cst_60 = arith.constant 5.000000e-01 : f32
    %183 = vector.broadcast %cst_60 : f32 to vector<8x512xf32>
    %184 = arith.mulf %182, %183 : vector<8x512xf32>
    %cst_61 = arith.constant 1.000000e+00 : f32
    %185 = vector.broadcast %cst_61 : f32 to vector<8x512xf32>
    %186 = arith.subf %184, %185 : vector<8x512xf32>
    %187 = arith.cmpf oeq, %186, %10 : vector<8x512xf32>
    %188 = arith.cmpf oeq, %186, %8 : vector<8x512xf32>
    %189 = arith.subf %173, %10 : vector<8x512xf32>
    %cst_62 = arith.constant 2.000000e+00 : f32
    %190 = vector.broadcast %cst_62 : f32 to vector<8x512xf32>
    %191 = arith.mulf %189, %190 : vector<8x512xf32>
    %192 = arith.subf %8, %173 : vector<8x512xf32>
    %cst_63 = arith.constant 5.000000e-01 : f32
    %193 = vector.broadcast %cst_63 : f32 to vector<8x512xf32>
    %194 = arith.addf %192, %193 : vector<8x512xf32>
    %cst_64 = arith.constant 2.000000e+00 : f32
    %195 = vector.broadcast %cst_64 : f32 to vector<8x512xf32>
    %196 = arith.mulf %194, %195 : vector<8x512xf32>
    %cst_65 = arith.constant 0.000000e+00 : f32
    %197 = vector.broadcast %cst_65 : f32 to vector<8x512xf32>
    %198 = arith.select %188, %196, %197 : vector<8x512xi1>, vector<8x512xf32>
    %199 = arith.select %187, %191, %198 : vector<8x512xi1>, vector<8x512xf32>
    %200 = arith.mulf %199, %177 : vector<8x512xf32>
    %cst_66 = arith.constant dense<0.000000e+00> : vector<8xf32>
    %201 = vector.multi_reduction <add>, %200, %cst_66 [1] : vector<8x512xf32> to vector<8xf32>
    %202 = vector.shape_cast %201 : vector<8xf32> to vector<8x1xf32>
    %203 = arith.addf %164, %202 : vector<8x1xf32>
    %cst_67 = arith.constant dense<0.000000e+00> : vector<8xf32>
    %204 = vector.multi_reduction <add>, %199, %cst_67 [1] : vector<8x512xf32> to vector<8xf32>
    %205 = vector.shape_cast %204 : vector<8xf32> to vector<8x1xf32>
    %206 = arith.addf %167, %205 : vector<8x1xf32>
    %c5_i32 = arith.constant 5 : i32
    %c512_i32_68 = arith.constant 512 : i32
    %207 = arith.muli %c5_i32, %c512_i32_68 : i32
    %208 = tpu.assume_multiple %207, 512 : i32
    %c0_69 = arith.constant 0 : index
    %209 = arith.index_cast %208 : i32 to index
    %210 = vector.load %arg2[%c0_69, %209] : memref<1x8192xf32, #tpu.memory_space<vmem>>, vector<1x512xf32>
    %211 = vector.shape_cast %210 : vector<1x512xf32> to vector<1x512xf32>
    %212 = vector.broadcast %211 : vector<1x512xf32> to vector<8x512xf32>
    %c0_70 = arith.constant 0 : index
    %213 = arith.index_cast %208 : i32 to index
    %214 = vector.load %arg3[%c0_70, %213] : memref<1x8192xf32, #tpu.memory_space<vmem>>, vector<1x512xf32>
    %215 = vector.shape_cast %214 : vector<1x512xf32> to vector<1x512xf32>
    %216 = vector.broadcast %215 : vector<1x512xf32> to vector<8x512xf32>
    %cst_71 = arith.constant 1.000000e+00 : f32
    %217 = vector.broadcast %cst_71 : f32 to vector<8x512xf32>
    %218 = arith.addf %212, %217 : vector<8x512xf32>
    %cst_72 = arith.constant 5.000000e-01 : f32
    %219 = vector.broadcast %cst_72 : f32 to vector<8x512xf32>
    %220 = arith.divf %218, %219 : vector<8x512xf32>
    %221 = math.floor %220 : vector<8x512xf32>
    %cst_73 = arith.constant 5.000000e-01 : f32
    %222 = vector.broadcast %cst_73 : f32 to vector<8x512xf32>
    %223 = arith.mulf %221, %222 : vector<8x512xf32>
    %cst_74 = arith.constant 1.000000e+00 : f32
    %224 = vector.broadcast %cst_74 : f32 to vector<8x512xf32>
    %225 = arith.subf %223, %224 : vector<8x512xf32>
    %226 = arith.cmpf oeq, %225, %10 : vector<8x512xf32>
    %227 = arith.cmpf oeq, %225, %8 : vector<8x512xf32>
    %228 = arith.subf %212, %10 : vector<8x512xf32>
    %cst_75 = arith.constant 2.000000e+00 : f32
    %229 = vector.broadcast %cst_75 : f32 to vector<8x512xf32>
    %230 = arith.mulf %228, %229 : vector<8x512xf32>
    %231 = arith.subf %8, %212 : vector<8x512xf32>
    %cst_76 = arith.constant 5.000000e-01 : f32
    %232 = vector.broadcast %cst_76 : f32 to vector<8x512xf32>
    %233 = arith.addf %231, %232 : vector<8x512xf32>
    %cst_77 = arith.constant 2.000000e+00 : f32
    %234 = vector.broadcast %cst_77 : f32 to vector<8x512xf32>
    %235 = arith.mulf %233, %234 : vector<8x512xf32>
    %cst_78 = arith.constant 0.000000e+00 : f32
    %236 = vector.broadcast %cst_78 : f32 to vector<8x512xf32>
    %237 = arith.select %227, %235, %236 : vector<8x512xi1>, vector<8x512xf32>
    %238 = arith.select %226, %230, %237 : vector<8x512xi1>, vector<8x512xf32>
    %239 = arith.mulf %238, %216 : vector<8x512xf32>
    %cst_79 = arith.constant dense<0.000000e+00> : vector<8xf32>
    %240 = vector.multi_reduction <add>, %239, %cst_79 [1] : vector<8x512xf32> to vector<8xf32>
    %241 = vector.shape_cast %240 : vector<8xf32> to vector<8x1xf32>
    %242 = arith.addf %203, %241 : vector<8x1xf32>
    %cst_80 = arith.constant dense<0.000000e+00> : vector<8xf32>
    %243 = vector.multi_reduction <add>, %238, %cst_80 [1] : vector<8x512xf32> to vector<8xf32>
    %244 = vector.shape_cast %243 : vector<8xf32> to vector<8x1xf32>
    %245 = arith.addf %206, %244 : vector<8x1xf32>
    %c6_i32 = arith.constant 6 : i32
    %c512_i32_81 = arith.constant 512 : i32
    %246 = arith.muli %c6_i32, %c512_i32_81 : i32
    %247 = tpu.assume_multiple %246, 512 : i32
    %c0_82 = arith.constant 0 : index
    %248 = arith.index_cast %247 : i32 to index
    %249 = vector.load %arg2[%c0_82, %248] : memref<1x8192xf32, #tpu.memory_space<vmem>>, vector<1x512xf32>
    %250 = vector.shape_cast %249 : vector<1x512xf32> to vector<1x512xf32>
    %251 = vector.broadcast %250 : vector<1x512xf32> to vector<8x512xf32>
    %c0_83 = arith.constant 0 : index
    %252 = arith.index_cast %247 : i32 to index
    %253 = vector.load %arg3[%c0_83, %252] : memref<1x8192xf32, #tpu.memory_space<vmem>>, vector<1x512xf32>
    %254 = vector.shape_cast %253 : vector<1x512xf32> to vector<1x512xf32>
    %255 = vector.broadcast %254 : vector<1x512xf32> to vector<8x512xf32>
    %cst_84 = arith.constant 1.000000e+00 : f32
    %256 = vector.broadcast %cst_84 : f32 to vector<8x512xf32>
    %257 = arith.addf %251, %256 : vector<8x512xf32>
    %cst_85 = arith.constant 5.000000e-01 : f32
    %258 = vector.broadcast %cst_85 : f32 to vector<8x512xf32>
    %259 = arith.divf %257, %258 : vector<8x512xf32>
    %260 = math.floor %259 : vector<8x512xf32>
    %cst_86 = arith.constant 5.000000e-01 : f32
    %261 = vector.broadcast %cst_86 : f32 to vector<8x512xf32>
    %262 = arith.mulf %260, %261 : vector<8x512xf32>
    %cst_87 = arith.constant 1.000000e+00 : f32
    %263 = vector.broadcast %cst_87 : f32 to vector<8x512xf32>
    %264 = arith.subf %262, %263 : vector<8x512xf32>
    %265 = arith.cmpf oeq, %264, %10 : vector<8x512xf32>
    %266 = arith.cmpf oeq, %264, %8 : vector<8x512xf32>
    %267 = arith.subf %251, %10 : vector<8x512xf32>
    %cst_88 = arith.constant 2.000000e+00 : f32
    %268 = vector.broadcast %cst_88 : f32 to vector<8x512xf32>
    %269 = arith.mulf %267, %268 : vector<8x512xf32>
    %270 = arith.subf %8, %251 : vector<8x512xf32>
    %cst_89 = arith.constant 5.000000e-01 : f32
    %271 = vector.broadcast %cst_89 : f32 to vector<8x512xf32>
    %272 = arith.addf %270, %271 : vector<8x512xf32>
    %cst_90 = arith.constant 2.000000e+00 : f32
    %273 = vector.broadcast %cst_90 : f32 to vector<8x512xf32>
    %274 = arith.mulf %272, %273 : vector<8x512xf32>
    %cst_91 = arith.constant 0.000000e+00 : f32
    %275 = vector.broadcast %cst_91 : f32 to vector<8x512xf32>
    %276 = arith.select %266, %274, %275 : vector<8x512xi1>, vector<8x512xf32>
    %277 = arith.select %265, %269, %276 : vector<8x512xi1>, vector<8x512xf32>
    %278 = arith.mulf %277, %255 : vector<8x512xf32>
    %cst_92 = arith.constant dense<0.000000e+00> : vector<8xf32>
    %279 = vector.multi_reduction <add>, %278, %cst_92 [1] : vector<8x512xf32> to vector<8xf32>
    %280 = vector.shape_cast %279 : vector<8xf32> to vector<8x1xf32>
    %281 = arith.addf %242, %280 : vector<8x1xf32>
    %cst_93 = arith.constant dense<0.000000e+00> : vector<8xf32>
    %282 = vector.multi_reduction <add>, %277, %cst_93 [1] : vector<8x512xf32> to vector<8xf32>
    %283 = vector.shape_cast %282 : vector<8xf32> to vector<8x1xf32>
    %284 = arith.addf %245, %283 : vector<8x1xf32>
    %c7_i32 = arith.constant 7 : i32
    %c512_i32_94 = arith.constant 512 : i32
    %285 = arith.muli %c7_i32, %c512_i32_94 : i32
    %286 = tpu.assume_multiple %285, 512 : i32
    %c0_95 = arith.constant 0 : index
    %287 = arith.index_cast %286 : i32 to index
    %288 = vector.load %arg2[%c0_95, %287] : memref<1x8192xf32, #tpu.memory_space<vmem>>, vector<1x512xf32>
    %289 = vector.shape_cast %288 : vector<1x512xf32> to vector<1x512xf32>
    %290 = vector.broadcast %289 : vector<1x512xf32> to vector<8x512xf32>
    %c0_96 = arith.constant 0 : index
    %291 = arith.index_cast %286 : i32 to index
    %292 = vector.load %arg3[%c0_96, %291] : memref<1x8192xf32, #tpu.memory_space<vmem>>, vector<1x512xf32>
    %293 = vector.shape_cast %292 : vector<1x512xf32> to vector<1x512xf32>
    %294 = vector.broadcast %293 : vector<1x512xf32> to vector<8x512xf32>
    %cst_97 = arith.constant 1.000000e+00 : f32
    %295 = vector.broadcast %cst_97 : f32 to vector<8x512xf32>
    %296 = arith.addf %290, %295 : vector<8x512xf32>
    %cst_98 = arith.constant 5.000000e-01 : f32
    %297 = vector.broadcast %cst_98 : f32 to vector<8x512xf32>
    %298 = arith.divf %296, %297 : vector<8x512xf32>
    %299 = math.floor %298 : vector<8x512xf32>
    %cst_99 = arith.constant 5.000000e-01 : f32
    %300 = vector.broadcast %cst_99 : f32 to vector<8x512xf32>
    %301 = arith.mulf %299, %300 : vector<8x512xf32>
    %cst_100 = arith.constant 1.000000e+00 : f32
    %302 = vector.broadcast %cst_100 : f32 to vector<8x512xf32>
    %303 = arith.subf %301, %302 : vector<8x512xf32>
    %304 = arith.cmpf oeq, %303, %10 : vector<8x512xf32>
    %305 = arith.cmpf oeq, %303, %8 : vector<8x512xf32>
    %306 = arith.subf %290, %10 : vector<8x512xf32>
    %cst_101 = arith.constant 2.000000e+00 : f32
    %307 = vector.broadcast %cst_101 : f32 to vector<8x512xf32>
    %308 = arith.mulf %306, %307 : vector<8x512xf32>
    %309 = arith.subf %8, %290 : vector<8x512xf32>
    %cst_102 = arith.constant 5.000000e-01 : f32
    %310 = vector.broadcast %cst_102 : f32 to vector<8x512xf32>
    %311 = arith.addf %309, %310 : vector<8x512xf32>
    %cst_103 = arith.constant 2.000000e+00 : f32
    %312 = vector.broadcast %cst_103 : f32 to vector<8x512xf32>
    %313 = arith.mulf %311, %312 : vector<8x512xf32>
    %cst_104 = arith.constant 0.000000e+00 : f32
    %314 = vector.broadcast %cst_104 : f32 to vector<8x512xf32>
    %315 = arith.select %305, %313, %314 : vector<8x512xi1>, vector<8x512xf32>
    %316 = arith.select %304, %308, %315 : vector<8x512xi1>, vector<8x512xf32>
    %317 = arith.mulf %316, %294 : vector<8x512xf32>
    %cst_105 = arith.constant dense<0.000000e+00> : vector<8xf32>
    %318 = vector.multi_reduction <add>, %317, %cst_105 [1] : vector<8x512xf32> to vector<8xf32>
    %319 = vector.shape_cast %318 : vector<8xf32> to vector<8x1xf32>
    %320 = arith.addf %281, %319 : vector<8x1xf32>
    %cst_106 = arith.constant dense<0.000000e+00> : vector<8xf32>
    %321 = vector.multi_reduction <add>, %316, %cst_106 [1] : vector<8x512xf32> to vector<8xf32>
    %322 = vector.shape_cast %321 : vector<8xf32> to vector<8x1xf32>
    %323 = arith.addf %284, %322 : vector<8x1xf32>
    %c8_i32 = arith.constant 8 : i32
    %c512_i32_107 = arith.constant 512 : i32
    %324 = arith.muli %c8_i32, %c512_i32_107 : i32
    %325 = tpu.assume_multiple %324, 512 : i32
    %c0_108 = arith.constant 0 : index
    %326 = arith.index_cast %325 : i32 to index
    %327 = vector.load %arg2[%c0_108, %326] : memref<1x8192xf32, #tpu.memory_space<vmem>>, vector<1x512xf32>
    %328 = vector.shape_cast %327 : vector<1x512xf32> to vector<1x512xf32>
    %329 = vector.broadcast %328 : vector<1x512xf32> to vector<8x512xf32>
    %c0_109 = arith.constant 0 : index
    %330 = arith.index_cast %325 : i32 to index
    %331 = vector.load %arg3[%c0_109, %330] : memref<1x8192xf32, #tpu.memory_space<vmem>>, vector<1x512xf32>
    %332 = vector.shape_cast %331 : vector<1x512xf32> to vector<1x512xf32>
    %333 = vector.broadcast %332 : vector<1x512xf32> to vector<8x512xf32>
    %cst_110 = arith.constant 1.000000e+00 : f32
    %334 = vector.broadcast %cst_110 : f32 to vector<8x512xf32>
    %335 = arith.addf %329, %334 : vector<8x512xf32>
    %cst_111 = arith.constant 5.000000e-01 : f32
    %336 = vector.broadcast %cst_111 : f32 to vector<8x512xf32>
    %337 = arith.divf %335, %336 : vector<8x512xf32>
    %338 = math.floor %337 : vector<8x512xf32>
    %cst_112 = arith.constant 5.000000e-01 : f32
    %339 = vector.broadcast %cst_112 : f32 to vector<8x512xf32>
    %340 = arith.mulf %338, %339 : vector<8x512xf32>
    %cst_113 = arith.constant 1.000000e+00 : f32
    %341 = vector.broadcast %cst_113 : f32 to vector<8x512xf32>
    %342 = arith.subf %340, %341 : vector<8x512xf32>
    %343 = arith.cmpf oeq, %342, %10 : vector<8x512xf32>
    %344 = arith.cmpf oeq, %342, %8 : vector<8x512xf32>
    %345 = arith.subf %329, %10 : vector<8x512xf32>
    %cst_114 = arith.constant 2.000000e+00 : f32
    %346 = vector.broadcast %cst_114 : f32 to vector<8x512xf32>
    %347 = arith.mulf %345, %346 : vector<8x512xf32>
    %348 = arith.subf %8, %329 : vector<8x512xf32>
    %cst_115 = arith.constant 5.000000e-01 : f32
    %349 = vector.broadcast %cst_115 : f32 to vector<8x512xf32>
    %350 = arith.addf %348, %349 : vector<8x512xf32>
    %cst_116 = arith.constant 2.000000e+00 : f32
    %351 = vector.broadcast %cst_116 : f32 to vector<8x512xf32>
    %352 = arith.mulf %350, %351 : vector<8x512xf32>
    %cst_117 = arith.constant 0.000000e+00 : f32
    %353 = vector.broadcast %cst_117 : f32 to vector<8x512xf32>
    %354 = arith.select %344, %352, %353 : vector<8x512xi1>, vector<8x512xf32>
    %355 = arith.select %343, %347, %354 : vector<8x512xi1>, vector<8x512xf32>
    %356 = arith.mulf %355, %333 : vector<8x512xf32>
    %cst_118 = arith.constant dense<0.000000e+00> : vector<8xf32>
    %357 = vector.multi_reduction <add>, %356, %cst_118 [1] : vector<8x512xf32> to vector<8xf32>
    %358 = vector.shape_cast %357 : vector<8xf32> to vector<8x1xf32>
    %359 = arith.addf %320, %358 : vector<8x1xf32>
    %cst_119 = arith.constant dense<0.000000e+00> : vector<8xf32>
    %360 = vector.multi_reduction <add>, %355, %cst_119 [1] : vector<8x512xf32> to vector<8xf32>
    %361 = vector.shape_cast %360 : vector<8xf32> to vector<8x1xf32>
    %362 = arith.addf %323, %361 : vector<8x1xf32>
    %c9_i32 = arith.constant 9 : i32
    %c512_i32_120 = arith.constant 512 : i32
    %363 = arith.muli %c9_i32, %c512_i32_120 : i32
    %364 = tpu.assume_multiple %363, 512 : i32
    %c0_121 = arith.constant 0 : index
    %365 = arith.index_cast %364 : i32 to index
    %366 = vector.load %arg2[%c0_121, %365] : memref<1x8192xf32, #tpu.memory_space<vmem>>, vector<1x512xf32>
    %367 = vector.shape_cast %366 : vector<1x512xf32> to vector<1x512xf32>
    %368 = vector.broadcast %367 : vector<1x512xf32> to vector<8x512xf32>
    %c0_122 = arith.constant 0 : index
    %369 = arith.index_cast %364 : i32 to index
    %370 = vector.load %arg3[%c0_122, %369] : memref<1x8192xf32, #tpu.memory_space<vmem>>, vector<1x512xf32>
    %371 = vector.shape_cast %370 : vector<1x512xf32> to vector<1x512xf32>
    %372 = vector.broadcast %371 : vector<1x512xf32> to vector<8x512xf32>
    %cst_123 = arith.constant 1.000000e+00 : f32
    %373 = vector.broadcast %cst_123 : f32 to vector<8x512xf32>
    %374 = arith.addf %368, %373 : vector<8x512xf32>
    %cst_124 = arith.constant 5.000000e-01 : f32
    %375 = vector.broadcast %cst_124 : f32 to vector<8x512xf32>
    %376 = arith.divf %374, %375 : vector<8x512xf32>
    %377 = math.floor %376 : vector<8x512xf32>
    %cst_125 = arith.constant 5.000000e-01 : f32
    %378 = vector.broadcast %cst_125 : f32 to vector<8x512xf32>
    %379 = arith.mulf %377, %378 : vector<8x512xf32>
    %cst_126 = arith.constant 1.000000e+00 : f32
    %380 = vector.broadcast %cst_126 : f32 to vector<8x512xf32>
    %381 = arith.subf %379, %380 : vector<8x512xf32>
    %382 = arith.cmpf oeq, %381, %10 : vector<8x512xf32>
    %383 = arith.cmpf oeq, %381, %8 : vector<8x512xf32>
    %384 = arith.subf %368, %10 : vector<8x512xf32>
    %cst_127 = arith.constant 2.000000e+00 : f32
    %385 = vector.broadcast %cst_127 : f32 to vector<8x512xf32>
    %386 = arith.mulf %384, %385 : vector<8x512xf32>
    %387 = arith.subf %8, %368 : vector<8x512xf32>
    %cst_128 = arith.constant 5.000000e-01 : f32
    %388 = vector.broadcast %cst_128 : f32 to vector<8x512xf32>
    %389 = arith.addf %387, %388 : vector<8x512xf32>
    %cst_129 = arith.constant 2.000000e+00 : f32
    %390 = vector.broadcast %cst_129 : f32 to vector<8x512xf32>
    %391 = arith.mulf %389, %390 : vector<8x512xf32>
    %cst_130 = arith.constant 0.000000e+00 : f32
    %392 = vector.broadcast %cst_130 : f32 to vector<8x512xf32>
    %393 = arith.select %383, %391, %392 : vector<8x512xi1>, vector<8x512xf32>
    %394 = arith.select %382, %386, %393 : vector<8x512xi1>, vector<8x512xf32>
    %395 = arith.mulf %394, %372 : vector<8x512xf32>
    %cst_131 = arith.constant dense<0.000000e+00> : vector<8xf32>
    %396 = vector.multi_reduction <add>, %395, %cst_131 [1] : vector<8x512xf32> to vector<8xf32>
    %397 = vector.shape_cast %396 : vector<8xf32> to vector<8x1xf32>
    %398 = arith.addf %359, %397 : vector<8x1xf32>
    %cst_132 = arith.constant dense<0.000000e+00> : vector<8xf32>
    %399 = vector.multi_reduction <add>, %394, %cst_132 [1] : vector<8x512xf32> to vector<8xf32>
    %400 = vector.shape_cast %399 : vector<8xf32> to vector<8x1xf32>
    %401 = arith.addf %362, %400 : vector<8x1xf32>
    %c10_i32 = arith.constant 10 : i32
    %c512_i32_133 = arith.constant 512 : i32
    %402 = arith.muli %c10_i32, %c512_i32_133 : i32
    %403 = tpu.assume_multiple %402, 512 : i32
    %c0_134 = arith.constant 0 : index
    %404 = arith.index_cast %403 : i32 to index
    %405 = vector.load %arg2[%c0_134, %404] : memref<1x8192xf32, #tpu.memory_space<vmem>>, vector<1x512xf32>
    %406 = vector.shape_cast %405 : vector<1x512xf32> to vector<1x512xf32>
    %407 = vector.broadcast %406 : vector<1x512xf32> to vector<8x512xf32>
    %c0_135 = arith.constant 0 : index
    %408 = arith.index_cast %403 : i32 to index
    %409 = vector.load %arg3[%c0_135, %408] : memref<1x8192xf32, #tpu.memory_space<vmem>>, vector<1x512xf32>
    %410 = vector.shape_cast %409 : vector<1x512xf32> to vector<1x512xf32>
    %411 = vector.broadcast %410 : vector<1x512xf32> to vector<8x512xf32>
    %cst_136 = arith.constant 1.000000e+00 : f32
    %412 = vector.broadcast %cst_136 : f32 to vector<8x512xf32>
    %413 = arith.addf %407, %412 : vector<8x512xf32>
    %cst_137 = arith.constant 5.000000e-01 : f32
    %414 = vector.broadcast %cst_137 : f32 to vector<8x512xf32>
    %415 = arith.divf %413, %414 : vector<8x512xf32>
    %416 = math.floor %415 : vector<8x512xf32>
    %cst_138 = arith.constant 5.000000e-01 : f32
    %417 = vector.broadcast %cst_138 : f32 to vector<8x512xf32>
    %418 = arith.mulf %416, %417 : vector<8x512xf32>
    %cst_139 = arith.constant 1.000000e+00 : f32
    %419 = vector.broadcast %cst_139 : f32 to vector<8x512xf32>
    %420 = arith.subf %418, %419 : vector<8x512xf32>
    %421 = arith.cmpf oeq, %420, %10 : vector<8x512xf32>
    %422 = arith.cmpf oeq, %420, %8 : vector<8x512xf32>
    %423 = arith.subf %407, %10 : vector<8x512xf32>
    %cst_140 = arith.constant 2.000000e+00 : f32
    %424 = vector.broadcast %cst_140 : f32 to vector<8x512xf32>
    %425 = arith.mulf %423, %424 : vector<8x512xf32>
    %426 = arith.subf %8, %407 : vector<8x512xf32>
    %cst_141 = arith.constant 5.000000e-01 : f32
    %427 = vector.broadcast %cst_141 : f32 to vector<8x512xf32>
    %428 = arith.addf %426, %427 : vector<8x512xf32>
    %cst_142 = arith.constant 2.000000e+00 : f32
    %429 = vector.broadcast %cst_142 : f32 to vector<8x512xf32>
    %430 = arith.mulf %428, %429 : vector<8x512xf32>
    %cst_143 = arith.constant 0.000000e+00 : f32
    %431 = vector.broadcast %cst_143 : f32 to vector<8x512xf32>
    %432 = arith.select %422, %430, %431 : vector<8x512xi1>, vector<8x512xf32>
    %433 = arith.select %421, %425, %432 : vector<8x512xi1>, vector<8x512xf32>
    %434 = arith.mulf %433, %411 : vector<8x512xf32>
    %cst_144 = arith.constant dense<0.000000e+00> : vector<8xf32>
    %435 = vector.multi_reduction <add>, %434, %cst_144 [1] : vector<8x512xf32> to vector<8xf32>
    %436 = vector.shape_cast %435 : vector<8xf32> to vector<8x1xf32>
    %437 = arith.addf %398, %436 : vector<8x1xf32>
    %cst_145 = arith.constant dense<0.000000e+00> : vector<8xf32>
    %438 = vector.multi_reduction <add>, %433, %cst_145 [1] : vector<8x512xf32> to vector<8xf32>
    %439 = vector.shape_cast %438 : vector<8xf32> to vector<8x1xf32>
    %440 = arith.addf %401, %439 : vector<8x1xf32>
    %c11_i32 = arith.constant 11 : i32
    %c512_i32_146 = arith.constant 512 : i32
    %441 = arith.muli %c11_i32, %c512_i32_146 : i32
    %442 = tpu.assume_multiple %441, 512 : i32
    %c0_147 = arith.constant 0 : index
    %443 = arith.index_cast %442 : i32 to index
    %444 = vector.load %arg2[%c0_147, %443] : memref<1x8192xf32, #tpu.memory_space<vmem>>, vector<1x512xf32>
    %445 = vector.shape_cast %444 : vector<1x512xf32> to vector<1x512xf32>
    %446 = vector.broadcast %445 : vector<1x512xf32> to vector<8x512xf32>
    %c0_148 = arith.constant 0 : index
    %447 = arith.index_cast %442 : i32 to index
    %448 = vector.load %arg3[%c0_148, %447] : memref<1x8192xf32, #tpu.memory_space<vmem>>, vector<1x512xf32>
    %449 = vector.shape_cast %448 : vector<1x512xf32> to vector<1x512xf32>
    %450 = vector.broadcast %449 : vector<1x512xf32> to vector<8x512xf32>
    %cst_149 = arith.constant 1.000000e+00 : f32
    %451 = vector.broadcast %cst_149 : f32 to vector<8x512xf32>
    %452 = arith.addf %446, %451 : vector<8x512xf32>
    %cst_150 = arith.constant 5.000000e-01 : f32
    %453 = vector.broadcast %cst_150 : f32 to vector<8x512xf32>
    %454 = arith.divf %452, %453 : vector<8x512xf32>
    %455 = math.floor %454 : vector<8x512xf32>
    %cst_151 = arith.constant 5.000000e-01 : f32
    %456 = vector.broadcast %cst_151 : f32 to vector<8x512xf32>
    %457 = arith.mulf %455, %456 : vector<8x512xf32>
    %cst_152 = arith.constant 1.000000e+00 : f32
    %458 = vector.broadcast %cst_152 : f32 to vector<8x512xf32>
    %459 = arith.subf %457, %458 : vector<8x512xf32>
    %460 = arith.cmpf oeq, %459, %10 : vector<8x512xf32>
    %461 = arith.cmpf oeq, %459, %8 : vector<8x512xf32>
    %462 = arith.subf %446, %10 : vector<8x512xf32>
    %cst_153 = arith.constant 2.000000e+00 : f32
    %463 = vector.broadcast %cst_153 : f32 to vector<8x512xf32>
    %464 = arith.mulf %462, %463 : vector<8x512xf32>
    %465 = arith.subf %8, %446 : vector<8x512xf32>
    %cst_154 = arith.constant 5.000000e-01 : f32
    %466 = vector.broadcast %cst_154 : f32 to vector<8x512xf32>
    %467 = arith.addf %465, %466 : vector<8x512xf32>
    %cst_155 = arith.constant 2.000000e+00 : f32
    %468 = vector.broadcast %cst_155 : f32 to vector<8x512xf32>
    %469 = arith.mulf %467, %468 : vector<8x512xf32>
    %cst_156 = arith.constant 0.000000e+00 : f32
    %470 = vector.broadcast %cst_156 : f32 to vector<8x512xf32>
    %471 = arith.select %461, %469, %470 : vector<8x512xi1>, vector<8x512xf32>
    %472 = arith.select %460, %464, %471 : vector<8x512xi1>, vector<8x512xf32>
    %473 = arith.mulf %472, %450 : vector<8x512xf32>
    %cst_157 = arith.constant dense<0.000000e+00> : vector<8xf32>
    %474 = vector.multi_reduction <add>, %473, %cst_157 [1] : vector<8x512xf32> to vector<8xf32>
    %475 = vector.shape_cast %474 : vector<8xf32> to vector<8x1xf32>
    %476 = arith.addf %437, %475 : vector<8x1xf32>
    %cst_158 = arith.constant dense<0.000000e+00> : vector<8xf32>
    %477 = vector.multi_reduction <add>, %472, %cst_158 [1] : vector<8x512xf32> to vector<8xf32>
    %478 = vector.shape_cast %477 : vector<8xf32> to vector<8x1xf32>
    %479 = arith.addf %440, %478 : vector<8x1xf32>
    %c12_i32 = arith.constant 12 : i32
    %c512_i32_159 = arith.constant 512 : i32
    %480 = arith.muli %c12_i32, %c512_i32_159 : i32
    %481 = tpu.assume_multiple %480, 512 : i32
    %c0_160 = arith.constant 0 : index
    %482 = arith.index_cast %481 : i32 to index
    %483 = vector.load %arg2[%c0_160, %482] : memref<1x8192xf32, #tpu.memory_space<vmem>>, vector<1x512xf32>
    %484 = vector.shape_cast %483 : vector<1x512xf32> to vector<1x512xf32>
    %485 = vector.broadcast %484 : vector<1x512xf32> to vector<8x512xf32>
    %c0_161 = arith.constant 0 : index
    %486 = arith.index_cast %481 : i32 to index
    %487 = vector.load %arg3[%c0_161, %486] : memref<1x8192xf32, #tpu.memory_space<vmem>>, vector<1x512xf32>
    %488 = vector.shape_cast %487 : vector<1x512xf32> to vector<1x512xf32>
    %489 = vector.broadcast %488 : vector<1x512xf32> to vector<8x512xf32>
    %cst_162 = arith.constant 1.000000e+00 : f32
    %490 = vector.broadcast %cst_162 : f32 to vector<8x512xf32>
    %491 = arith.addf %485, %490 : vector<8x512xf32>
    %cst_163 = arith.constant 5.000000e-01 : f32
    %492 = vector.broadcast %cst_163 : f32 to vector<8x512xf32>
    %493 = arith.divf %491, %492 : vector<8x512xf32>
    %494 = math.floor %493 : vector<8x512xf32>
    %cst_164 = arith.constant 5.000000e-01 : f32
    %495 = vector.broadcast %cst_164 : f32 to vector<8x512xf32>
    %496 = arith.mulf %494, %495 : vector<8x512xf32>
    %cst_165 = arith.constant 1.000000e+00 : f32
    %497 = vector.broadcast %cst_165 : f32 to vector<8x512xf32>
    %498 = arith.subf %496, %497 : vector<8x512xf32>
    %499 = arith.cmpf oeq, %498, %10 : vector<8x512xf32>
    %500 = arith.cmpf oeq, %498, %8 : vector<8x512xf32>
    %501 = arith.subf %485, %10 : vector<8x512xf32>
    %cst_166 = arith.constant 2.000000e+00 : f32
    %502 = vector.broadcast %cst_166 : f32 to vector<8x512xf32>
    %503 = arith.mulf %501, %502 : vector<8x512xf32>
    %504 = arith.subf %8, %485 : vector<8x512xf32>
    %cst_167 = arith.constant 5.000000e-01 : f32
    %505 = vector.broadcast %cst_167 : f32 to vector<8x512xf32>
    %506 = arith.addf %504, %505 : vector<8x512xf32>
    %cst_168 = arith.constant 2.000000e+00 : f32
    %507 = vector.broadcast %cst_168 : f32 to vector<8x512xf32>
    %508 = arith.mulf %506, %507 : vector<8x512xf32>
    %cst_169 = arith.constant 0.000000e+00 : f32
    %509 = vector.broadcast %cst_169 : f32 to vector<8x512xf32>
    %510 = arith.select %500, %508, %509 : vector<8x512xi1>, vector<8x512xf32>
    %511 = arith.select %499, %503, %510 : vector<8x512xi1>, vector<8x512xf32>
    %512 = arith.mulf %511, %489 : vector<8x512xf32>
    %cst_170 = arith.constant dense<0.000000e+00> : vector<8xf32>
    %513 = vector.multi_reduction <add>, %512, %cst_170 [1] : vector<8x512xf32> to vector<8xf32>
    %514 = vector.shape_cast %513 : vector<8xf32> to vector<8x1xf32>
    %515 = arith.addf %476, %514 : vector<8x1xf32>
    %cst_171 = arith.constant dense<0.000000e+00> : vector<8xf32>
    %516 = vector.multi_reduction <add>, %511, %cst_171 [1] : vector<8x512xf32> to vector<8xf32>
    %517 = vector.shape_cast %516 : vector<8xf32> to vector<8x1xf32>
    %518 = arith.addf %479, %517 : vector<8x1xf32>
    %c13_i32 = arith.constant 13 : i32
    %c512_i32_172 = arith.constant 512 : i32
    %519 = arith.muli %c13_i32, %c512_i32_172 : i32
    %520 = tpu.assume_multiple %519, 512 : i32
    %c0_173 = arith.constant 0 : index
    %521 = arith.index_cast %520 : i32 to index
    %522 = vector.load %arg2[%c0_173, %521] : memref<1x8192xf32, #tpu.memory_space<vmem>>, vector<1x512xf32>
    %523 = vector.shape_cast %522 : vector<1x512xf32> to vector<1x512xf32>
    %524 = vector.broadcast %523 : vector<1x512xf32> to vector<8x512xf32>
    %c0_174 = arith.constant 0 : index
    %525 = arith.index_cast %520 : i32 to index
    %526 = vector.load %arg3[%c0_174, %525] : memref<1x8192xf32, #tpu.memory_space<vmem>>, vector<1x512xf32>
    %527 = vector.shape_cast %526 : vector<1x512xf32> to vector<1x512xf32>
    %528 = vector.broadcast %527 : vector<1x512xf32> to vector<8x512xf32>
    %cst_175 = arith.constant 1.000000e+00 : f32
    %529 = vector.broadcast %cst_175 : f32 to vector<8x512xf32>
    %530 = arith.addf %524, %529 : vector<8x512xf32>
    %cst_176 = arith.constant 5.000000e-01 : f32
    %531 = vector.broadcast %cst_176 : f32 to vector<8x512xf32>
    %532 = arith.divf %530, %531 : vector<8x512xf32>
    %533 = math.floor %532 : vector<8x512xf32>
    %cst_177 = arith.constant 5.000000e-01 : f32
    %534 = vector.broadcast %cst_177 : f32 to vector<8x512xf32>
    %535 = arith.mulf %533, %534 : vector<8x512xf32>
    %cst_178 = arith.constant 1.000000e+00 : f32
    %536 = vector.broadcast %cst_178 : f32 to vector<8x512xf32>
    %537 = arith.subf %535, %536 : vector<8x512xf32>
    %538 = arith.cmpf oeq, %537, %10 : vector<8x512xf32>
    %539 = arith.cmpf oeq, %537, %8 : vector<8x512xf32>
    %540 = arith.subf %524, %10 : vector<8x512xf32>
    %cst_179 = arith.constant 2.000000e+00 : f32
    %541 = vector.broadcast %cst_179 : f32 to vector<8x512xf32>
    %542 = arith.mulf %540, %541 : vector<8x512xf32>
    %543 = arith.subf %8, %524 : vector<8x512xf32>
    %cst_180 = arith.constant 5.000000e-01 : f32
    %544 = vector.broadcast %cst_180 : f32 to vector<8x512xf32>
    %545 = arith.addf %543, %544 : vector<8x512xf32>
    %cst_181 = arith.constant 2.000000e+00 : f32
    %546 = vector.broadcast %cst_181 : f32 to vector<8x512xf32>
    %547 = arith.mulf %545, %546 : vector<8x512xf32>
    %cst_182 = arith.constant 0.000000e+00 : f32
    %548 = vector.broadcast %cst_182 : f32 to vector<8x512xf32>
    %549 = arith.select %539, %547, %548 : vector<8x512xi1>, vector<8x512xf32>
    %550 = arith.select %538, %542, %549 : vector<8x512xi1>, vector<8x512xf32>
    %551 = arith.mulf %550, %528 : vector<8x512xf32>
    %cst_183 = arith.constant dense<0.000000e+00> : vector<8xf32>
    %552 = vector.multi_reduction <add>, %551, %cst_183 [1] : vector<8x512xf32> to vector<8xf32>
    %553 = vector.shape_cast %552 : vector<8xf32> to vector<8x1xf32>
    %554 = arith.addf %515, %553 : vector<8x1xf32>
    %cst_184 = arith.constant dense<0.000000e+00> : vector<8xf32>
    %555 = vector.multi_reduction <add>, %550, %cst_184 [1] : vector<8x512xf32> to vector<8xf32>
    %556 = vector.shape_cast %555 : vector<8xf32> to vector<8x1xf32>
    %557 = arith.addf %518, %556 : vector<8x1xf32>
    %c14_i32 = arith.constant 14 : i32
    %c512_i32_185 = arith.constant 512 : i32
    %558 = arith.muli %c14_i32, %c512_i32_185 : i32
    %559 = tpu.assume_multiple %558, 512 : i32
    %c0_186 = arith.constant 0 : index
    %560 = arith.index_cast %559 : i32 to index
    %561 = vector.load %arg2[%c0_186, %560] : memref<1x8192xf32, #tpu.memory_space<vmem>>, vector<1x512xf32>
    %562 = vector.shape_cast %561 : vector<1x512xf32> to vector<1x512xf32>
    %563 = vector.broadcast %562 : vector<1x512xf32> to vector<8x512xf32>
    %c0_187 = arith.constant 0 : index
    %564 = arith.index_cast %559 : i32 to index
    %565 = vector.load %arg3[%c0_187, %564] : memref<1x8192xf32, #tpu.memory_space<vmem>>, vector<1x512xf32>
    %566 = vector.shape_cast %565 : vector<1x512xf32> to vector<1x512xf32>
    %567 = vector.broadcast %566 : vector<1x512xf32> to vector<8x512xf32>
    %cst_188 = arith.constant 1.000000e+00 : f32
    %568 = vector.broadcast %cst_188 : f32 to vector<8x512xf32>
    %569 = arith.addf %563, %568 : vector<8x512xf32>
    %cst_189 = arith.constant 5.000000e-01 : f32
    %570 = vector.broadcast %cst_189 : f32 to vector<8x512xf32>
    %571 = arith.divf %569, %570 : vector<8x512xf32>
    %572 = math.floor %571 : vector<8x512xf32>
    %cst_190 = arith.constant 5.000000e-01 : f32
    %573 = vector.broadcast %cst_190 : f32 to vector<8x512xf32>
    %574 = arith.mulf %572, %573 : vector<8x512xf32>
    %cst_191 = arith.constant 1.000000e+00 : f32
    %575 = vector.broadcast %cst_191 : f32 to vector<8x512xf32>
    %576 = arith.subf %574, %575 : vector<8x512xf32>
    %577 = arith.cmpf oeq, %576, %10 : vector<8x512xf32>
    %578 = arith.cmpf oeq, %576, %8 : vector<8x512xf32>
    %579 = arith.subf %563, %10 : vector<8x512xf32>
    %cst_192 = arith.constant 2.000000e+00 : f32
    %580 = vector.broadcast %cst_192 : f32 to vector<8x512xf32>
    %581 = arith.mulf %579, %580 : vector<8x512xf32>
    %582 = arith.subf %8, %563 : vector<8x512xf32>
    %cst_193 = arith.constant 5.000000e-01 : f32
    %583 = vector.broadcast %cst_193 : f32 to vector<8x512xf32>
    %584 = arith.addf %582, %583 : vector<8x512xf32>
    %cst_194 = arith.constant 2.000000e+00 : f32
    %585 = vector.broadcast %cst_194 : f32 to vector<8x512xf32>
    %586 = arith.mulf %584, %585 : vector<8x512xf32>
    %cst_195 = arith.constant 0.000000e+00 : f32
    %587 = vector.broadcast %cst_195 : f32 to vector<8x512xf32>
    %588 = arith.select %578, %586, %587 : vector<8x512xi1>, vector<8x512xf32>
    %589 = arith.select %577, %581, %588 : vector<8x512xi1>, vector<8x512xf32>
    %590 = arith.mulf %589, %567 : vector<8x512xf32>
    %cst_196 = arith.constant dense<0.000000e+00> : vector<8xf32>
    %591 = vector.multi_reduction <add>, %590, %cst_196 [1] : vector<8x512xf32> to vector<8xf32>
    %592 = vector.shape_cast %591 : vector<8xf32> to vector<8x1xf32>
    %593 = arith.addf %554, %592 : vector<8x1xf32>
    %cst_197 = arith.constant dense<0.000000e+00> : vector<8xf32>
    %594 = vector.multi_reduction <add>, %589, %cst_197 [1] : vector<8x512xf32> to vector<8xf32>
    %595 = vector.shape_cast %594 : vector<8xf32> to vector<8x1xf32>
    %596 = arith.addf %557, %595 : vector<8x1xf32>
    %c15_i32 = arith.constant 15 : i32
    %c512_i32_198 = arith.constant 512 : i32
    %597 = arith.muli %c15_i32, %c512_i32_198 : i32
    %598 = tpu.assume_multiple %597, 512 : i32
    %c0_199 = arith.constant 0 : index
    %599 = arith.index_cast %598 : i32 to index
    %600 = vector.load %arg2[%c0_199, %599] : memref<1x8192xf32, #tpu.memory_space<vmem>>, vector<1x512xf32>
    %601 = vector.shape_cast %600 : vector<1x512xf32> to vector<1x512xf32>
    %602 = vector.broadcast %601 : vector<1x512xf32> to vector<8x512xf32>
    %c0_200 = arith.constant 0 : index
    %603 = arith.index_cast %598 : i32 to index
    %604 = vector.load %arg3[%c0_200, %603] : memref<1x8192xf32, #tpu.memory_space<vmem>>, vector<1x512xf32>
    %605 = vector.shape_cast %604 : vector<1x512xf32> to vector<1x512xf32>
    %606 = vector.broadcast %605 : vector<1x512xf32> to vector<8x512xf32>
    %cst_201 = arith.constant 1.000000e+00 : f32
    %607 = vector.broadcast %cst_201 : f32 to vector<8x512xf32>
    %608 = arith.addf %602, %607 : vector<8x512xf32>
    %cst_202 = arith.constant 5.000000e-01 : f32
    %609 = vector.broadcast %cst_202 : f32 to vector<8x512xf32>
    %610 = arith.divf %608, %609 : vector<8x512xf32>
    %611 = math.floor %610 : vector<8x512xf32>
    %cst_203 = arith.constant 5.000000e-01 : f32
    %612 = vector.broadcast %cst_203 : f32 to vector<8x512xf32>
    %613 = arith.mulf %611, %612 : vector<8x512xf32>
    %cst_204 = arith.constant 1.000000e+00 : f32
    %614 = vector.broadcast %cst_204 : f32 to vector<8x512xf32>
    %615 = arith.subf %613, %614 : vector<8x512xf32>
    %616 = arith.cmpf oeq, %615, %10 : vector<8x512xf32>
    %617 = arith.cmpf oeq, %615, %8 : vector<8x512xf32>
    %618 = arith.subf %602, %10 : vector<8x512xf32>
    %cst_205 = arith.constant 2.000000e+00 : f32
    %619 = vector.broadcast %cst_205 : f32 to vector<8x512xf32>
    %620 = arith.mulf %618, %619 : vector<8x512xf32>
    %621 = arith.subf %8, %602 : vector<8x512xf32>
    %cst_206 = arith.constant 5.000000e-01 : f32
    %622 = vector.broadcast %cst_206 : f32 to vector<8x512xf32>
    %623 = arith.addf %621, %622 : vector<8x512xf32>
    %cst_207 = arith.constant 2.000000e+00 : f32
    %624 = vector.broadcast %cst_207 : f32 to vector<8x512xf32>
    %625 = arith.mulf %623, %624 : vector<8x512xf32>
    %cst_208 = arith.constant 0.000000e+00 : f32
    %626 = vector.broadcast %cst_208 : f32 to vector<8x512xf32>
    %627 = arith.select %617, %625, %626 : vector<8x512xi1>, vector<8x512xf32>
    %628 = arith.select %616, %620, %627 : vector<8x512xi1>, vector<8x512xf32>
    %629 = arith.mulf %628, %606 : vector<8x512xf32>
    %cst_209 = arith.constant dense<0.000000e+00> : vector<8xf32>
    %630 = vector.multi_reduction <add>, %629, %cst_209 [1] : vector<8x512xf32> to vector<8xf32>
    %631 = vector.shape_cast %630 : vector<8xf32> to vector<8x1xf32>
    %632 = arith.addf %593, %631 : vector<8x1xf32>
    %cst_210 = arith.constant dense<0.000000e+00> : vector<8xf32>
    %633 = vector.multi_reduction <add>, %628, %cst_210 [1] : vector<8x512xf32> to vector<8xf32>
    %634 = vector.shape_cast %633 : vector<8xf32> to vector<8x1xf32>
    %635 = arith.addf %596, %634 : vector<8x1xf32>
    %c16_i32 = arith.constant 16 : i32
    %c0_211 = arith.constant 0 : index
    %c0_212 = arith.constant 0 : index
    %c0_213 = arith.constant 0 : index
    %636 = vector.load %arg4[%c0_211, %c0_212, %c0_213] : memref<1x8x1xf32, #tpu.memory_space<vmem>>, vector<1x8x1xf32>
    %637 = vector.shape_cast %636 : vector<1x8x1xf32> to vector<8x1xf32>
    %638 = arith.addf %637, %632 : vector<8x1xf32>
    %c0_214 = arith.constant 0 : index
    %c0_215 = arith.constant 0 : index
    %c0_216 = arith.constant 0 : index
    %639 = vector.load %arg4[%c0_214, %c0_215, %c0_216] : memref<1x8x1xf32, #tpu.memory_space<vmem>>, vector<1x8x1xf32>
    %640 = vector.shape_cast %639 : vector<1x8x1xf32> to vector<8x1xf32>
    %641 = vector.shape_cast %638 : vector<8x1xf32> to vector<1x8x1xf32>
    tpu.vector_store %arg4[%c0_214, %c0_215, %c0_216], %641 {strides = array<i32>} : memref<1x8x1xf32, #tpu.memory_space<vmem>>, vector<1x8x1xf32>,
    %c0_217 = arith.constant 0 : index
    %c0_218 = arith.constant 0 : index
    %c0_219 = arith.constant 0 : index
    %642 = vector.load %arg5[%c0_217, %c0_218, %c0_219] : memref<1x8x1xf32, #tpu.memory_space<vmem>>, vector<1x8x1xf32>
    %643 = vector.shape_cast %642 : vector<1x8x1xf32> to vector<8x1xf32>
    %644 = arith.addf %643, %635 : vector<8x1xf32>
    %c0_220 = arith.constant 0 : index
    %c0_221 = arith.constant 0 : index
    %c0_222 = arith.constant 0 : index
    %645 = vector.load %arg5[%c0_220, %c0_221, %c0_222] : memref<1x8x1xf32, #tpu.memory_space<vmem>>, vector<1x8x1xf32>
    %646 = vector.shape_cast %645 : vector<1x8x1xf32> to vector<8x1xf32>
    %647 = vector.shape_cast %644 : vector<8x1xf32> to vector<1x8x1xf32>
    tpu.vector_store %arg5[%c0_220, %c0_221, %c0_222], %647 {strides = array<i32>} : memref<1x8x1xf32, #tpu.memory_space<vmem>>, vector<1x8x1xf32>,
    return
  }
  func.func @transform_0(%arg0: i32, %arg1: i32) -> (i32, i32) {
    %c1_i32 = arith.constant 1 : i32
    %0 = arith.muli %arg0, %c1_i32 : i32
    %1 = arith.addi %0, %arg1 : i32
    %c0_i32 = arith.constant 0 : i32
    %c0_i32_0 = arith.constant 0 : i32
    return %c0_i32, %1 : i32, i32
  }
  func.func @transform_1(%arg0: i32, %arg1: i32) -> (i32, i32) {
    %c1_i32 = arith.constant 1 : i32
    %0 = arith.muli %arg0, %c1_i32 : i32
    %1 = arith.addi %0, %arg1 : i32
    %c0_i32 = arith.constant 0 : i32
    %c0_i32_0 = arith.constant 0 : i32
    return %c0_i32, %1 : i32, i32
  }
  func.func @transform_2(%arg0: i32, %arg1: i32) -> (i32, i32, i32) {
    %c0_i32 = arith.constant 0 : i32
    %c0_i32_0 = arith.constant 0 : i32
    %c0_i32_1 = arith.constant 0 : i32
    return %arg0, %c0_i32, %c0_i32_0 : i32, i32, i32
  }
  func.func @transform_3(%arg0: i32, %arg1: i32) -> (i32, i32, i32) {
    %c0_i32 = arith.constant 0 : i32
    %c0_i32_0 = arith.constant 0 : i32
    %c0_i32_1 = arith.constant 0 : i32
    return %arg0, %c0_i32, %c0_i32_0 : i32, i32, i32
  }
}

</mosaic_0001>

<bundles_post_ra>
// kernel: tpu_custom_call.1
= control target key start
LH: loop header
LB: loop body
LE: loop exit
PB: predicated region body
PF: predicated region fallthrough
CT: control target
= control target key end

     0   :  { %9 = vsyncpa [#allocation3], 0  ;;  %s3096_s0 = inlined_call_operand.hbm [shape: f32[1,16384], index: 0, kind: input, shape index: {}]   ;;  %s3097_s1 = inlined_call_operand.hbm [shape: f32[1,16384], index: 1, kind: input, shape index: {}]   ;;  %s3098_s2 = inlined_call_operand.vmem [shape: f32[2,8,1], index: 2, kind: output, shape index: {0}]   ;;  %s3099_s3 = inlined_call_operand.vmem [shape: f32[2,8,1], index: 3, kind: output, shape index: {1}]  }
   0x1   :  { %11 = vsyncpa [#allocation3 + $0x1], 0 }
   0x2   :  { %12 = vsyncpa [#allocation5], 0 }
   0x3   :  { %14 = vsyncpa [#allocation5 + $0x1], 0  ;;  %s2230_s12 = smov 0   ;;  %s2232_s13 = smov 0  }
   0x4   :  { %s2234_s14 = smov 0   ;;  %s2236_s15 = smov 0  }
   0x5   :  { %s2238_s16 = smov 0   ;;  %s2240_s17 = smov 0  }
   0x6 LB: > { %s1918_s18 = sadd.s32 4294967295, %s2206_s17   ;;  %s32_s19 = sadd.s32 1, %s2202_s16  ;;  %s2206_s17 = sphi %s2240_s17, %s20_s17   ;;  %s2202_s16 = sphi %s2238_s16, %s3106_s16   ;;  %s2198_s15 = sphi %s2236_s15, %s3105_s15   ;;  %s2194_s14 = sphi %s2234_s14, %s3104_s14   ;;  %s2190_s13 = sphi %s2232_s13, %s3103_s13   ;;  %s2186_s12 = sphi %s2230_s12, %s3102_s12  }
   0x7   : > { %p34_p0 = scmp.ge.s32.totalorder %s32_s19, 2  ;;  %s41_s20 = sadd.s32 1, %s2194_s14 }
   0x8   : > { %p48_p1 = scmp.ne.s32.totalorder %s2194_s14, %s2190_s13  ;;  %p49_p2 = scmp.eq.s32.totalorder %s2206_s17, 0 }
   0x9   : > { %s3108_s19 = smov (%p34_p0, %s32_s19), 0  ;;  %p54_p4 = scmp.ne.s32.totalorder %s2190_s13, %s2186_s12 }
   0xa   : > { %p2266_p3 = por %p49_p2, %p48_p1  ;;  %s38_s22 = ssub.s32 %s2202_s16, %s3108_s19 }
   0xb   : > { %p55_p5 = scmp.eq.s32.totalorder %s1918_s18, 0  ;;  %p39_p6 = scmp.eq.s32.totalorder %s38_s22, 0 }
   0xc   : > { %p2039_p8 = scmp.lt.s32.totalorder %s2206_s17, 2  ;;  %s158_s25 = sand.u32 1, %s2194_s14  }
   0xd   : > { %p2273_p7 = por %p55_p5, %p54_p4  ;;  %s1923_s26 = sshll.u32 %s2202_s16, 6 }
   0xe   : > { %s2279_s24 = scalar_select %p39_p6, %s2194_s14, %s41_s20  }
   0xf   : > { %s1922_s27 = sshll.u32 %s158_s25, 6  ;;  %s167_s30 = scalar_lea.hbm %s3096_s0, %s1923_s26 }
  0x10   : > { %s169_s4 = sshll.u32 %s167_s30, 4  ;;  %s162_s5 = scalar_lea.vmem [#allocation2], %s1922_s27  ;;  %s170_s4 = int_to_ptr.hbm [resolvable:$true] %s169_s4 }
  0x11   : > { %s171_s6 = sshll.u32 %s162_s5, 4  ;;  %p2033_p9 = pnand %p2039_p8, %p2266_p3  ;;  %s172_s6 = int_to_ptr.vmem [resolvable:$true] %s171_s6 }
  0x12   : > { %p1926_p10 = scmp.ge.s32.totalorder %s2206_s17, 1  ;;  %p196_p11 = scmp.lt.s32.totalorder %s2206_s17, 3 }
  0x13   : > { %s159_s7 = scalar_lea.sflag [#allocation3], %s158_s25  ;;  %s187_s10 = scalar_lea.hbm %s3097_s1, %s1923_s26 }
  0x14   : > { %2035 = dma.hbm_to_vmem [thread:$0]  (!%p2033_p9), %s170_s4, 1024, %s172_s6, %s159_s7  }
  0x15   : > { %p197_p12 = pnand %p1926_p10, %p196_p11  ;;  %s189_s11 = sshll.u32 %s187_s10, 4  ;;  %s190_s11 = int_to_ptr.hbm [resolvable:$true] %s189_s11 }
  0x16   : > { %s182_s12 = scalar_lea.vmem [#allocation4], %s1922_s27  ;;  %s179_s20 = scalar_lea.sflag [#allocation5], %s158_s25 }
  0x17   : > { %s191_s18 = sshll.u32 %s182_s12, 4  ;;  %200 = sbr.rel (%p197_p12) target bundleno = 463 (0x1cf), region = 28  ;;  %s192_s18 = int_to_ptr.vmem [resolvable:$true] %s191_s18 }
  0x18   : > { %2038 = dma.hbm_to_vmem [thread:$0]  (!%p2033_p9), %s190_s11, 1024, %s192_s18, %s179_s20  }
  0x19   : > { %s202_s21 = sand.u32 (!%p197_p12), 1, %s2190_s13  }
  0x1a   : > { %s1927_s22 = sshll.u32 (!%p197_p12), %s202_s21, 6  ;;  %s203_s28 = scalar_lea.sflag (!%p197_p12), [#allocation3], %s202_s21 }
  0x1b   : > { %s2294_s29 = scalar_lea.vmem (!%p197_p12), [#allocation2], %s1927_s22 }
  0x1c   : > { %2177 = dma.done.wait (%p2273_p7), %s203_s28, 1024  }
  0x1d   : > { %2179 = vsyncadd (%p2273_p7), %s203_s28, 4294966272  ;;  %s213_s26 = scalar_lea.sflag [#allocation5], %s202_s21  ;;  %s2300_s27 = scalar_lea.vmem [#allocation4], %s1927_s22 }
  0x1e   : > { %2181 = dma.done.wait (%p2273_p7), %s213_s26, 1024  }
  0x1f   : > { %2183 = vsyncadd (%p2273_p7), %s213_s26, 4294966272  ;;  %v267_v0 = vlaneseq  ;;  %v2208_v1 = vmov 0.5   ;;  %v1936_v6 = vld [vmem:[%s2294_s29 + $0x4] sm:$0xf]  ;;  %v273_v31 = vld [vmem:[%s2294_s29] sm:$0xf] }
  0x20   : > { %2090 = vrcp.f32 %v2208_v1  ;;  %v2308_v7 = vld [vmem:[%s2300_s27 + $0x4] sm:$0xf]  ;;  %v375_v10 = vperm.slane %v1936_v6, 0  ;;  %v376_v11 = vperm.slane %v1936_v6, 1  ;;  %v377_v12 = vperm.slane %v1936_v6, 2  ;;  %p252_p13 = scmp.lt.s32.totalorder %s2198_s15, 1 }
  0x21   : > { %v268_v2 = vshrl.u32 %v267_v0, 7  ;;  %v378_v13 = vperm.slane %v1936_v6, 3  ;;  %v386_v14 = vperm.slane %v2308_v7, 0  ;;  %v387_v17 = vperm.slane %v2308_v7, 1  ;;  %v2338_v56 = vld [vmem:[%s2300_s27] sm:$0xf] }
  0x22   : > { %v388_v18 = vperm.slane %v2308_v7, 2  ;;  %v389_v19 = vperm.slane %v2308_v7, 3  ;;  %v394_v20 = vadd.f32 1.0, %v375_v10  ;;  %v395_v21 = vadd.f32 1.0, %v376_v11  ;;  %s3110_s15 = smov (!%p252_p13, %s2198_s15), 1 }
  0x23   : > { %v269_v3 = vcvt.s32.f32 %v268_v2  ;;  %v396_v22 = vadd.f32 1.0, %v377_v12  ;;  %v397_v24 = vadd.f32 1.0, %v378_v13  ;;  %v2331_v43 = vperm.slane %v273_v31, 0  ;;  %s1929_s23 = sshll.u32 %s3110_s15, 3 }
  0x24   : > { %v2340_v58 = vperm.slane %v273_v31, 1  ;;  %v2342_v59 = vperm.slane %v273_v31, 2  ;;  %v2344_v60 = vperm.slane %v273_v31, 3  ;;  %v285_v1 = vperm.slane %v2338_v56, 0  ;;  %s3061_s4 = scalar_lea.vmem %s3099_s3, %s1929_s23  ;;  %s3066_s7 = scalar_lea.vmem %s3098_s2, %s1929_s23 }
  0x25   : > { %v270_v4 = vmul.f32 0.5, %v269_v3  ;;  %v286_v2 = vperm.slane %v2338_v56, 1  ;;  %v287_v3 = vperm.slane %v2338_v56, 2 }
  0x26   : > { %v2091_v5 = vpop.eup %2090 }
  0x27   : > { %v2310_v8 = vadd.f32 -1.0, %v270_v4  ;;  %v298_v9 = vmul.f32 0.5, %v2091_v5  ;;  %vm302_vm0 = vweird.f32 %v2091_v5  ;;  %v288_v4 = vperm.slane %v2338_v56, 3 }
  0x29   : > { %v2314_v15 = vadd.f32 -0.5, %v2310_v8  ;;  %v299_v16 = vsub.f32 1.0, %v298_v9  ;;  %v430_v29 = vsub.f32 %v2310_v8, %v375_v10  ;;  %v431_v30 = vsub.f32 %v2310_v8, %v376_v11 }
  0x2a   : > { %v432_v35 = vsub.f32 %v2310_v8, %v377_v12  ;;  %v433_v38 = vsub.f32 %v2310_v8, %v378_v13 }
  0x2b   : > { %v300_v23 = vmul.f32 %v2091_v5, %v299_v16  ;;  %v422_v25 = vsub.f32 %v375_v10, %v2314_v15  ;;  %v423_v26 = vsub.f32 %v376_v11, %v2314_v15  ;;  %v424_v27 = vsub.f32 %v377_v12, %v2314_v15 }
  0x2c   : > { %v425_v28 = vsub.f32 %v378_v13, %v2314_v15  ;;  %v434_v39 = vadd.f32 0.5, %v430_v29  ;;  %v435_v41 = vadd.f32 0.5, %v431_v30  ;;  %v436_v42 = vadd.f32 0.5, %v432_v35 }
  0x2d   : > { %v301_v32 = vadd.f32 %v2091_v5, %v300_v23  ;;  %v426_v33 = vmul.f32 2.0, %v422_v25  ;;  %v427_v34 = vmul.f32 2.0, %v423_v26  ;;  %v428_v36 = vmul.f32 2.0, %v424_v27 }
  0x2e   : > { %v429_v37 = vmul.f32 2.0, %v425_v28  ;;  %v437_v48 = vadd.f32 0.5, %v433_v38  ;;  %v438_v49 = vmul.f32 2.0, %v434_v39  ;;  %v439_v50 = vmul.f32 2.0, %v435_v41 }
  0x2f   : > { %v2329_v40 = vsel %vm302_vm0, %v2091_v5, %v301_v32  ;;  %v440_v51 = vmul.f32 2.0, %v436_v42  ;;  %v293_v11 = vadd.f32 1.0, %v2331_v43  ;;  %v294_v12 = vadd.f32 1.0, %v2340_v58 }
  0x30   : > { %v398_v44 = vmul.f32 %v394_v20, %v2329_v40  ;;  %v399_v45 = vmul.f32 %v395_v21, %v2329_v40  ;;  %v400_v46 = vmul.f32 %v396_v22, %v2329_v40  ;;  %v401_v47 = vmul.f32 %v397_v24, %v2329_v40 }
  0x31   : > { %v441_v57 = vmul.f32 2.0, %v437_v48  ;;  %v295_v13 = vadd.f32 1.0, %v2342_v59  ;;  %v296_v16 = vadd.f32 1.0, %v2344_v60  ;;  %v331_v42 = vsub.f32 %v2344_v60, %v2314_v15 }
  0x32   : > { %v402_v52 = vfloor.f32 %v398_v44  ;;  %v403_v53 = vfloor.f32 %v399_v45  ;;  %v404_v54 = vfloor.f32 %v400_v46  ;;  %v405_v55 = vfloor.f32 %v401_v47 }
  0x34   : > { %v406_v61 = vmul.f32 0.5, %v402_v52  ;;  %v407_v62 = vmul.f32 0.5, %v403_v53  ;;  %v408_v63 = vmul.f32 0.5, %v404_v54  ;;  %v409_v0 = vmul.f32 0.5, %v405_v55 }
  0x35   : > { %v336_v52 = vsub.f32 %v2310_v8, %v2331_v43 }
  0x36   : > { %v1938_v5 = vadd.f32 -1.0, %v406_v61  ;;  %v1939_v6 = vadd.f32 -1.0, %v407_v62  ;;  %v1940_v9 = vadd.f32 -1.0, %v408_v63  ;;  %v1941_v10 = vadd.f32 -1.0, %v409_v0 }
  0x37   : > { %v338_v62 = vsub.f32 %v2310_v8, %v2342_v59  ;;  %v339_v63 = vsub.f32 %v2310_v8, %v2344_v60  ;;  %v340_v0 = vadd.f32 0.5, %v336_v52 }
  0x38   : > { %vm414_vm1 = vcmp.eq.f32.partialorder %v1938_v5, %v2314_v15  ;;  %vm415_vm2 = vcmp.eq.f32.partialorder %v1939_v6, %v2314_v15  ;;  %vm416_vm3 = vcmp.eq.f32.partialorder %v1940_v9, %v2314_v15  ;;  %vm417_vm4 = vcmp.eq.f32.partialorder %v1941_v10, %v2314_v15 }
  0x39   : > { %vm418_vm5 = vcmp.eq.f32.partialorder %v1938_v5, %v2310_v8  ;;  %vm419_vm6 = vcmp.eq.f32.partialorder %v1939_v6, %v2310_v8  ;;  %vm420_vm7 = vcmp.eq.f32.partialorder %v1940_v9, %v2310_v8  ;;  %vm421_vm8 = vcmp.eq.f32.partialorder %v1941_v10, %v2310_v8  ;;  %v2408_v6 = vld [vmem:[%s2300_s27 + $0x8] sm:$0xf] }
  0x3a   : > { %v442_v20 = vsel %vm418_vm5, %v438_v49, 0.0  ;;  %v443_v21 = vsel %vm419_vm6, %v439_v50, 0.0  ;;  %v444_v22 = vsel %vm420_vm7, %v440_v51, 0.0  ;;  %v445_v23 = vsel %vm421_vm8, %v441_v57, 0.0 }
  0x3b   : > { %v446_v24 = vsel %vm414_vm1, %v426_v33, %v442_v20  ;;  %v447_v25 = vsel %vm415_vm2, %v427_v34, %v443_v21  ;;  %v448_v26 = vsel %vm416_vm3, %v428_v36, %v444_v22  ;;  %v449_v27 = vsel %vm417_vm4, %v429_v37, %v445_v23 }
  0x3c   : > { %v2364_v28 = vmul.f32 %v447_v25, %v387_v17  ;;  %v2368_v29 = vmul.f32 %v448_v26, %v388_v18  ;;  %v2372_v30 = vmul.f32 %v449_v27, %v389_v19  ;;  %v460_v31 = vadd.f32 %v447_v25, %v446_v24 }
  0x3d   : > { %v2376_v32 = vmul.f32 %v446_v24, %v386_v14  ;;  %v304_v33 = vmul.f32 %v2329_v40, %v293_v11  ;;  %v305_v34 = vmul.f32 %v2329_v40, %v294_v12  ;;  %v306_v17 = vmul.f32 %v2329_v40, %v295_v13 }
  0x3e   : > { %v461_v35 = vadd.f32 %v460_v31, %v448_v26  ;;  %v307_v36 = vmul.f32 %v2329_v40, %v296_v16  ;;  %v328_v18 = vsub.f32 %v2331_v43, %v2314_v15  ;;  %v329_v19 = vsub.f32 %v2340_v58, %v2314_v15  ;;  %v1942_v43 = vld [vmem:[%s2294_s29 + $0x8] sm:$0xf] }
  0x3f   : > { %v308_v37 = vfloor.f32 %v304_v33  ;;  %v309_v38 = vfloor.f32 %v305_v34  ;;  %v310_v7 = vfloor.f32 %v306_v17  ;;  %v330_v14 = vsub.f32 %v2342_v59, %v2314_v15 }
  0x40   : > { %v462_v39 = vadd.f32 %v461_v35, %v449_v27  ;;  %v311_v41 = vfloor.f32 %v307_v36  ;;  %v332_v44 = vmul.f32 2.0, %v328_v18  ;;  %v333_v48 = vmul.f32 2.0, %v329_v19 }
  0x41   : > { %v312_v45 = vmul.f32 0.5, %v308_v37  ;;  %v313_v46 = vmul.f32 0.5, %v309_v38  ;;  %v314_v47 = vmul.f32 0.5, %v310_v7  ;;  %v334_v50 = vmul.f32 2.0, %v330_v14 }
  0x42   : > { %463 = vadd.xlane.f32.xlu1 %v462_v39  ;;  %v315_v49 = vmul.f32 0.5, %v311_v41  ;;  %v335_v51 = vmul.f32 2.0, %v331_v42  ;;  %v337_v57 = vsub.f32 %v2310_v8, %v2340_v58  ;;  %v342_v59 = vadd.f32 0.5, %v338_v62 }
  0x43   : > { %v1932_v53 = vadd.f32 -1.0, %v312_v45  ;;  %v1933_v54 = vadd.f32 -1.0, %v313_v46  ;;  %v1934_v55 = vadd.f32 -1.0, %v314_v47  ;;  %v343_v60 = vadd.f32 0.5, %v339_v63 }
  0x44   : > { %v1935_v61 = vadd.f32 -1.0, %v315_v49  ;;  %v341_v58 = vadd.f32 0.5, %v337_v57  ;;  %v344_v5 = vmul.f32 2.0, %v340_v0  ;;  %v469_v9 = vperm.slane %v1942_v43, 0 }
  0x45   : > { %vm320_vm9 = vcmp.eq.f32.partialorder %v1932_v53, %v2314_v15  ;;  %vm321_vm10 = vcmp.eq.f32.partialorder %v1933_v54, %v2314_v15  ;;  %vm322_vm11 = vcmp.eq.f32.partialorder %v1934_v55, %v2314_v15  ;;  %vm324_vm12 = vcmp.eq.f32.partialorder %v1932_v53, %v2310_v8 }
  0x46   : > { %vm323_vm13 = vcmp.eq.f32.partialorder %v1935_v61, %v2314_v15  ;;  %vm325_vm14 = vcmp.eq.f32.partialorder %v1933_v54, %v2310_v8  ;;  %vm326_vm15 = vcmp.eq.f32.partialorder %v1934_v55, %v2310_v8  ;;  %vm327_vm0 = vcmp.eq.f32.partialorder %v1935_v61, %v2310_v8 }
  0x47   : > { %v470_v10 = vperm.slane %v1942_v43, 1  ;;  %v471_v11 = vperm.slane %v1942_v43, 2  ;;  %v472_v12 = vperm.slane %v1942_v43, 3  ;;  %v345_v13 = vmul.f32 2.0, %v341_v58 }
  0x48   : > { %v346_v16 = vmul.f32 2.0, %v342_v59  ;;  %v347_v20 = vmul.f32 2.0, %v343_v60  ;;  %v348_v21 = vsel %vm324_vm12, %v344_v5, 0.0  ;;  %v480_v23 = vperm.slane %v2408_v6, 0 }
  0x49   : > { %v352_v22 = vsel %vm320_vm9, %v332_v44, %v348_v21  ;;  %v481_v24 = vperm.slane %v2408_v6, 1  ;;  %v482_v25 = vperm.slane %v2408_v6, 2  ;;  %v349_v26 = vsel %vm325_vm14, %v345_v13, 0.0 }
  0x4a   : > { %v350_v27 = vsel %vm326_vm15, %v346_v16, 0.0  ;;  %v351_v31 = vsel %vm327_vm0, %v347_v20, 0.0  ;;  %v2425_v33 = vmul.f32 %v352_v22, %v285_v1  ;;  %v353_v34 = vsel %vm321_vm10, %v333_v48, %v349_v26 }
  0x4b   : > { %v354_v17 = vsel %vm322_vm11, %v334_v50, %v350_v27  ;;  %v355_v35 = vsel %vm323_vm13, %v335_v51, %v351_v31  ;;  %v483_v36 = vperm.slane %v2408_v6, 3  ;;  %v2436_v18 = vmul.f32 %v353_v34, %v286_v2 }
  0x4c   : > { %v2440_v19 = vmul.f32 %v354_v17, %v287_v3  ;;  %v2444_v1 = vmul.f32 %v355_v35, %v288_v4  ;;  %v366_v37 = vadd.f32 %v353_v34, %v352_v22  ;;  %v488_v38 = vadd.f32 1.0, %v469_v9 }
  0x4d   : > { %v489_v7 = vadd.f32 1.0, %v470_v10  ;;  %v490_v14 = vadd.f32 1.0, %v471_v11  ;;  %v491_v39 = vadd.f32 1.0, %v472_v12  ;;  %v516_v42 = vsub.f32 %v469_v9, %v2314_v15 }
  0x4e   : > { %v367_v41 = vadd.f32 %v366_v37, %v354_v17  ;;  %v517_v44 = vsub.f32 %v470_v10, %v2314_v15  ;;  %v518_v2 = vsub.f32 %v471_v11, %v2314_v15  ;;  %v492_v45 = vmul.f32 %v488_v38, %v2329_v40 }
  0x4f   : > { %v493_v3 = vmul.f32 %v489_v7, %v2329_v40  ;;  %v494_v56 = vmul.f32 %v490_v14, %v2329_v40  ;;  %v495_v4 = vmul.f32 %v491_v39, %v2329_v40  ;;  %v519_v47 = vsub.f32 %v472_v12, %v2314_v15 }
  0x50   : > { %v368_v46 = vadd.f32 %v367_v41, %v355_v35  ;;  %v520_v48 = vmul.f32 2.0, %v516_v42  ;;  %v521_v49 = vmul.f32 2.0, %v517_v44  ;;  %v496_v50 = vfloor.f32 %v492_v45 }
  0x51   : > { %v497_v51 = vfloor.f32 %v493_v3  ;;  %v498_v52 = vfloor.f32 %v494_v56  ;;  %v499_v53 = vfloor.f32 %v495_v4  ;;  %v522_v54 = vmul.f32 2.0, %v518_v2 }
  0x52   : > { %369 = vadd.xlane.f32.xlu0 %v368_v46  ;;  %v523_v55 = vmul.f32 2.0, %v519_v47  ;;  %v524_v57 = vsub.f32 %v2310_v8, %v469_v9  ;;  %v525_v61 = vsub.f32 %v2310_v8, %v470_v10  ;;  %v500_v62 = vmul.f32 0.5, %v496_v50  ;;  %v1948_v10 = vld [vmem:[%s2294_s29 + $0xc] sm:$0xf] }
  0x53   : > { %v501_v63 = vmul.f32 0.5, %v497_v51  ;;  %v502_v0 = vmul.f32 0.5, %v498_v52  ;;  %v503_v43 = vmul.f32 0.5, %v499_v53  ;;  %v526_v58 = vsub.f32 %v2310_v8, %v471_v11 }
  0x54   : > { %v527_v59 = vsub.f32 %v2310_v8, %v472_v12  ;;  %v528_v60 = vadd.f32 0.5, %v524_v57  ;;  %v529_v5 = vadd.f32 0.5, %v525_v61  ;;  %v1944_v13 = vadd.f32 -1.0, %v500_v62 }
  0x55   : > { %v1945_v16 = vadd.f32 -1.0, %v501_v63  ;;  %v1946_v20 = vadd.f32 -1.0, %v502_v0  ;;  %v1947_v21 = vadd.f32 -1.0, %v503_v43  ;;  %v530_v22 = vadd.f32 0.5, %v526_v58 }
  0x56   : > { %v531_v26 = vadd.f32 0.5, %v527_v59  ;;  %v532_v9 = vmul.f32 2.0, %v528_v60  ;;  %v533_v27 = vmul.f32 2.0, %v529_v5  ;;  %vm508_vm1 = vcmp.eq.f32.partialorder %v1944_v13, %v2314_v15 }
  0x57   : > { %vm509_vm2 = vcmp.eq.f32.partialorder %v1945_v16, %v2314_v15  ;;  %vm510_vm3 = vcmp.eq.f32.partialorder %v1946_v20, %v2314_v15  ;;  %vm511_vm4 = vcmp.eq.f32.partialorder %v1947_v21, %v2314_v15  ;;  %vm512_vm5 = vcmp.eq.f32.partialorder %v1944_v13, %v2310_v8 }
  0x58   : > { %vm513_vm6 = vcmp.eq.f32.partialorder %v1945_v16, %v2310_v8  ;;  %vm514_vm7 = vcmp.eq.f32.partialorder %v1946_v20, %v2310_v8  ;;  %vm515_vm8 = vcmp.eq.f32.partialorder %v1947_v21, %v2310_v8  ;;  %v534_v11 = vmul.f32 2.0, %v530_v22 }
  0x59   : > { %v535_v12 = vmul.f32 2.0, %v531_v26  ;;  %v536_v31 = vsel %vm512_vm5, %v532_v9, 0.0  ;;  %v537_v34 = vsel %vm513_vm6, %v533_v27, 0.0  ;;  %v563_v37 = vperm.slane %v1948_v10, 0 }
  0x5a   : > { %v540_v17 = vsel %vm508_vm1, %v520_v48, %v536_v31  ;;  %v541_v35 = vsel %vm509_vm2, %v521_v49, %v537_v34  ;;  %v564_v38 = vperm.slane %v1948_v10, 1  ;;  %v538_v7 = vsel %vm514_vm7, %v534_v11, 0.0 }
  0x5b   : > { %v539_v14 = vsel %vm515_vm8, %v535_v12, 0.0  ;;  %v2469_v39 = vmul.f32 %v541_v35, %v481_v24  ;;  %v554_v41 = vadd.f32 %v541_v35, %v540_v17  ;;  %v542_v42 = vsel %vm510_vm3, %v522_v54, %v538_v7 }
  0x5c   : > { %v543_v44 = vsel %vm511_vm4, %v523_v55, %v539_v14  ;;  %v2477_v2 = vmul.f32 %v540_v17, %v480_v23  ;;  %v565_v45 = vperm.slane %v1948_v10, 2  ;;  %v2481_v3 = vmul.f32 %v542_v42, %v482_v25 }
  0x5d   : > { %v2485_v24 = vmul.f32 %v543_v44, %v483_v36  ;;  %v555_v56 = vadd.f32 %v554_v41, %v542_v42  ;;  %v566_v4 = vperm.slane %v1948_v10, 3  ;;  %v582_v46 = vadd.f32 1.0, %v563_v37 }
  0x5e   : > { %v583_v47 = vadd.f32 1.0, %v564_v38  ;;  %v584_v48 = vadd.f32 1.0, %v565_v45  ;;  %v610_v49 = vsub.f32 %v563_v37, %v2314_v15  ;;  %v611_v23 = vsub.f32 %v564_v38, %v2314_v15 }
  0x5f   : > { %v556_v50 = vadd.f32 %v555_v56, %v543_v44  ;;  %v585_v51 = vadd.f32 1.0, %v566_v4  ;;  %v612_v52 = vsub.f32 %v565_v45, %v2314_v15  ;;  %v586_v25 = vmul.f32 %v582_v46, %v2329_v40 }
  0x60   : > { %v587_v53 = vmul.f32 %v583_v47, %v2329_v40  ;;  %v588_v6 = vmul.f32 %v584_v48, %v2329_v40  ;;  %v613_v36 = vsub.f32 %v566_v4, %v2314_v15  ;;  %v614_v55 = vmul.f32 2.0, %v610_v49 }
  0x61   : > { %557 = vadd.xlane.f32.xlu2 %v556_v50  ;;  %v589_v54 = vmul.f32 %v585_v51, %v2329_v40  ;;  %v615_v57 = vmul.f32 2.0, %v611_v23  ;;  %v616_v61 = vmul.f32 2.0, %v612_v52  ;;  %v590_v62 = vfloor.f32 %v586_v25 }
  0x62   : > { %v591_v63 = vfloor.f32 %v587_v53  ;;  %v592_v0 = vfloor.f32 %v588_v6  ;;  %v617_v43 = vmul.f32 2.0, %v613_v36  ;;  %v618_v59 = vsub.f32 %v2310_v8, %v563_v37 }
  0x63   : > { %v593_v58 = vfloor.f32 %v589_v54  ;;  %v619_v60 = vsub.f32 %v2310_v8, %v564_v38  ;;  %v620_v5 = vsub.f32 %v2310_v8, %v565_v45  ;;  %v594_v13 = vmul.f32 0.5, %v590_v62  ;;  %v1954_v38 = vld [vmem:[%s2294_s29 + $0x10] sm:$0xf] }
  0x64   : > { %v595_v16 = vmul.f32 0.5, %v591_v63  ;;  %v596_v20 = vmul.f32 0.5, %v592_v0  ;;  %v621_v21 = vsub.f32 %v2310_v8, %v566_v4  ;;  %v622_v26 = vadd.f32 0.5, %v618_v59 }
  0x65   : > { %v597_v22 = vmul.f32 0.5, %v593_v58  ;;  %v623_v9 = vadd.f32 0.5, %v619_v60  ;;  %v624_v27 = vadd.f32 0.5, %v620_v5  ;;  %v1950_v10 = vadd.f32 -1.0, %v594_v13 }
  0x66   : > { %v1951_v11 = vadd.f32 -1.0, %v595_v16  ;;  %v1952_v12 = vadd.f32 -1.0, %v596_v20  ;;  %v625_v31 = vadd.f32 0.5, %v621_v21  ;;  %v626_v17 = vmul.f32 2.0, %v622_v26 }
  0x67   : > { %v1953_v34 = vadd.f32 -1.0, %v597_v22  ;;  %v627_v35 = vmul.f32 2.0, %v623_v9  ;;  %v628_v37 = vmul.f32 2.0, %v624_v27  ;;  %vm602_vm9 = vcmp.eq.f32.partialorder %v1950_v10, %v2314_v15 }
  0x68   : > { %vm603_vm10 = vcmp.eq.f32.partialorder %v1951_v11, %v2314_v15  ;;  %vm604_vm11 = vcmp.eq.f32.partialorder %v1952_v12, %v2314_v15  ;;  %vm606_vm12 = vcmp.eq.f32.partialorder %v1950_v10, %v2310_v8  ;;  %vm607_vm14 = vcmp.eq.f32.partialorder %v1951_v11, %v2310_v8 }
  0x69   : > { %vm605_vm13 = vcmp.eq.f32.partialorder %v1953_v34, %v2314_v15  ;;  %vm608_vm15 = vcmp.eq.f32.partialorder %v1952_v12, %v2310_v8  ;;  %vm609_vm0 = vcmp.eq.f32.partialorder %v1953_v34, %v2310_v8  ;;  %v629_v7 = vmul.f32 2.0, %v625_v31 }
  0x6a   : > { %v630_v14 = vsel %vm606_vm12, %v626_v17, 0.0  ;;  %v631_v41 = vsel %vm607_vm14, %v627_v35, 0.0  ;;  %v632_v42 = vsel %vm608_vm15, %v628_v37, 0.0  ;;  %v657_v4 = vperm.slane %v1954_v38, 0 }
  0x6b   : > { %v2508_v44 = vsel %vm602_vm9, %v614_v55, %v630_v14  ;;  %v2510_v45 = vsel %vm603_vm10, %v615_v57, %v631_v41  ;;  %v2512_v56 = vsel %vm604_vm11, %v616_v61, %v632_v42  ;;  %v633_v46 = vsel %vm609_vm0, %v629_v7, 0.0 }
  0x6c   : > { %v648_v47 = vadd.f32 %v2510_v45, %v2508_v44  ;;  %v658_v48 = vperm.slane %v1954_v38, 1  ;;  %v659_v49 = vperm.slane %v1954_v38, 2  ;;  %v2518_v50 = vsel %vm605_vm13, %v617_v43, %v633_v46  ;;  %v1960_v46 = vld [vmem:[%s2294_s29 + $0x14] sm:$0xf] }
  0x6d   : > { %v660_v51 = vperm.slane %v1954_v38, 3  ;;  %v676_v23 = vadd.f32 1.0, %v657_v4  ;;  %v704_v52 = vsub.f32 %v657_v4, %v2314_v15  ;;  %v712_v21 = vsub.f32 %v2310_v8, %v657_v4 }
  0x6e   : > { %v649_v25 = vadd.f32 %v648_v47, %v2512_v56  ;;  %v677_v53 = vadd.f32 1.0, %v658_v48  ;;  %v678_v6 = vadd.f32 1.0, %v659_v49  ;;  %v705_v36 = vsub.f32 %v658_v48, %v2314_v15 }
  0x6f   : > { %v679_v54 = vadd.f32 1.0, %v660_v51  ;;  %v680_v55 = vmul.f32 %v676_v23, %v2329_v40  ;;  %v706_v57 = vsub.f32 %v659_v49, %v2314_v15  ;;  %v707_v61 = vsub.f32 %v660_v51, %v2314_v15 }
  0x70   : > { %v650_v62 = vadd.f32 %v649_v25, %v2518_v50  ;;  %v681_v63 = vmul.f32 %v677_v53, %v2329_v40  ;;  %v682_v0 = vmul.f32 %v678_v6, %v2329_v40  ;;  %v708_v43 = vmul.f32 2.0, %v704_v52 }
  0x71   : > { %v683_v58 = vmul.f32 %v679_v54, %v2329_v40  ;;  %v684_v59 = vfloor.f32 %v680_v55  ;;  %v709_v60 = vmul.f32 2.0, %v705_v36  ;;  %v710_v5 = vmul.f32 2.0, %v706_v57 }
  0x72   : > { %651 = vadd.xlane.f32.xlu1 %v650_v62  ;;  %v685_v13 = vfloor.f32 %v681_v63  ;;  %v686_v16 = vfloor.f32 %v682_v0  ;;  %v711_v20 = vmul.f32 2.0, %v707_v61  ;;  %v713_v9 = vsub.f32 %v2310_v8, %v658_v48 }
  0x73   : > { %v687_v22 = vfloor.f32 %v683_v58  ;;  %v688_v26 = vmul.f32 0.5, %v684_v59  ;;  %v714_v27 = vsub.f32 %v2310_v8, %v659_v49  ;;  %v715_v12 = vsub.f32 %v2310_v8, %v660_v51 }
  0x74   : > { %v689_v10 = vmul.f32 0.5, %v685_v13  ;;  %v690_v11 = vmul.f32 0.5, %v686_v16  ;;  %v716_v31 = vadd.f32 0.5, %v712_v21  ;;  %v717_v35 = vadd.f32 0.5, %v713_v9 }
  0x75   : > { %v691_v34 = vmul.f32 0.5, %v687_v22  ;;  %v1956_v17 = vadd.f32 -1.0, %v688_v26  ;;  %v718_v37 = vadd.f32 0.5, %v714_v27  ;;  %v719_v14 = vadd.f32 0.5, %v715_v12 }
  0x76   : > { %v1957_v38 = vadd.f32 -1.0, %v689_v10  ;;  %v1958_v7 = vadd.f32 -1.0, %v690_v11  ;;  %v720_v41 = vmul.f32 2.0, %v716_v31  ;;  %v721_v4 = vmul.f32 2.0, %v717_v35 }
  0x77   : > { %v1959_v42 = vadd.f32 -1.0, %v691_v34  ;;  %vm696_vm1 = vcmp.eq.f32.partialorder %v1956_v17, %v2314_v15  ;;  %vm700_vm2 = vcmp.eq.f32.partialorder %v1956_v17, %v2310_v8  ;;  %v722_v47 = vmul.f32 2.0, %v718_v37 }
  0x78   : > { %vm697_vm3 = vcmp.eq.f32.partialorder %v1957_v38, %v2314_v15  ;;  %vm698_vm4 = vcmp.eq.f32.partialorder %v1958_v7, %v2314_v15  ;;  %vm701_vm5 = vcmp.eq.f32.partialorder %v1957_v38, %v2310_v8  ;;  %vm702_vm6 = vcmp.eq.f32.partialorder %v1958_v7, %v2310_v8 }
  0x79   : > { %vm699_vm7 = vcmp.eq.f32.partialorder %v1959_v42, %v2314_v15  ;;  %vm703_vm8 = vcmp.eq.f32.partialorder %v1959_v42, %v2310_v8  ;;  %v723_v48 = vmul.f32 2.0, %v719_v14  ;;  %v724_v49 = vsel %vm700_vm2, %v720_v41, 0.0 }
  0x7a   : > { %v725_v51 = vsel %vm701_vm5, %v721_v4, 0.0  ;;  %v751_v23 = vperm.slane %v1960_v46, 0  ;;  %v752_v52 = vperm.slane %v1960_v46, 1  ;;  %v726_v25 = vsel %vm702_vm6, %v722_v47, 0.0 }
  0x7b   : > { %v727_v53 = vsel %vm703_vm8, %v723_v48, 0.0  ;;  %v2545_v6 = vsel %vm696_vm1, %v708_v43, %v724_v49  ;;  %v2547_v36 = vsel %vm697_vm3, %v709_v60, %v725_v51  ;;  %v2549_v54 = vsel %vm698_vm4, %v710_v5, %v726_v25 }
  0x7c   : > { %v2551_v55 = vsel %vm699_vm7, %v711_v20, %v727_v53  ;;  %v742_v57 = vadd.f32 %v2547_v36, %v2545_v6  ;;  %v753_v61 = vperm.slane %v1960_v46, 2  ;;  %v754_v62 = vperm.slane %v1960_v46, 3 }
  0x7d   : > { %v770_v63 = vadd.f32 1.0, %v751_v23  ;;  %v771_v0 = vadd.f32 1.0, %v752_v52  ;;  %v798_v58 = vsub.f32 %v751_v23, %v2314_v15  ;;  %v799_v43 = vsub.f32 %v752_v52, %v2314_v15 }
  0x7e   : > { %v743_v59 = vadd.f32 %v742_v57, %v2549_v54  ;;  %v772_v13 = vadd.f32 1.0, %v753_v61  ;;  %v800_v60 = vsub.f32 %v753_v61, %v2314_v15  ;;  %v773_v5 = vadd.f32 1.0, %v754_v62 }
  0x7f   : > { %v774_v16 = vmul.f32 %v770_v63, %v2329_v40  ;;  %v775_v20 = vmul.f32 %v771_v0, %v2329_v40  ;;  %v801_v21 = vsub.f32 %v754_v62, %v2314_v15  ;;  %v802_v9 = vmul.f32 2.0, %v798_v58 }
  0x80   : > { %v744_v22 = vadd.f32 %v743_v59, %v2551_v55  ;;  %v776_v26 = vmul.f32 %v772_v13, %v2329_v40  ;;  %v803_v27 = vmul.f32 2.0, %v799_v43  ;;  %v777_v10 = vmul.f32 %v773_v5, %v2329_v40 }
  0x81   : > { %v778_v11 = vfloor.f32 %v774_v16  ;;  %v779_v12 = vfloor.f32 %v775_v20  ;;  %v804_v31 = vmul.f32 2.0, %v800_v60  ;;  %v805_v17 = vmul.f32 2.0, %v801_v21 }
  0x82   : > { %745 = vadd.xlane.f32.xlu0 %v744_v22  ;;  %v780_v34 = vfloor.f32 %v776_v26  ;;  %v806_v35 = vsub.f32 %v2310_v8, %v751_v23  ;;  %v807_v37 = vsub.f32 %v2310_v8, %v752_v52  ;;  %v781_v38 = vfloor.f32 %v777_v10 }
  0x83   : > { %v782_v7 = vmul.f32 0.5, %v778_v11  ;;  %v783_v14 = vmul.f32 0.5, %v779_v12  ;;  %v808_v41 = vsub.f32 %v2310_v8, %v753_v61  ;;  %v809_v4 = vsub.f32 %v2310_v8, %v754_v62  ;;  %v1966_v61 = vld [vmem:[%s2294_s29 + $0x18] sm:$0xf] }
  0x84   : > { %v784_v42 = vmul.f32 0.5, %v780_v34  ;;  %v810_v46 = vadd.f32 0.5, %v806_v35  ;;  %v811_v47 = vadd.f32 0.5, %v807_v37  ;;  %v785_v48 = vmul.f32 0.5, %v781_v38 }
  0x85   : > { %v1962_v49 = vadd.f32 -1.0, %v782_v7  ;;  %v1963_v51 = vadd.f32 -1.0, %v783_v14  ;;  %v812_v25 = vadd.f32 0.5, %v808_v41  ;;  %v813_v57 = vadd.f32 0.5, %v809_v4 }
  0x86   : > { %v1964_v53 = vadd.f32 -1.0, %v784_v42  ;;  %v814_v23 = vmul.f32 2.0, %v810_v46  ;;  %v815_v63 = vmul.f32 2.0, %v811_v47  ;;  %v1965_v52 = vadd.f32 -1.0, %v785_v48 }
  0x87   : > { %vm790_vm9 = vcmp.eq.f32.partialorder %v1962_v49, %v2314_v15  ;;  %vm791_vm10 = vcmp.eq.f32.partialorder %v1963_v51, %v2314_v15  ;;  %vm794_vm11 = vcmp.eq.f32.partialorder %v1962_v49, %v2310_v8  ;;  %vm795_vm13 = vcmp.eq.f32.partialorder %v1963_v51, %v2310_v8 }
  0x88   : > { %vm792_vm12 = vcmp.eq.f32.partialorder %v1964_v53, %v2314_v15  ;;  %vm796_vm14 = vcmp.eq.f32.partialorder %v1964_v53, %v2310_v8  ;;  %v816_v62 = vmul.f32 2.0, %v812_v25  ;;  %vm793_vm15 = vcmp.eq.f32.partialorder %v1965_v52, %v2314_v15 }
  0x89   : > { %vm797_vm0 = vcmp.eq.f32.partialorder %v1965_v52, %v2310_v8  ;;  %v817_v0 = vmul.f32 2.0, %v813_v57  ;;  %v818_v58 = vsel %vm794_vm11, %v814_v23, 0.0  ;;  %v819_v59 = vsel %vm795_vm13, %v815_v63, 0.0 }
  0x8a   : > { %v820_v13 = vsel %vm796_vm14, %v816_v62, 0.0  ;;  %v2578_v43 = vsel %vm790_vm9, %v802_v9, %v818_v58  ;;  %v845_v60 = vperm.slane %v1966_v61, 0  ;;  %v2582_v16 = vsel %vm791_vm10, %v803_v27, %v819_v59 }
  0x8b   : > { %v821_v5 = vsel %vm797_vm0, %v817_v0, 0.0  ;;  %v2584_v20 = vsel %vm792_vm12, %v804_v31, %v820_v13  ;;  %v846_v21 = vperm.slane %v1966_v61, 1  ;;  %v836_v26 = vadd.f32 %v2582_v16, %v2578_v43 }
  0x8c   : > { %v2586_v22 = vsel %vm793_vm15, %v805_v17, %v821_v5  ;;  %v847_v10 = vperm.slane %v1966_v61, 2  ;;  %v848_v11 = vperm.slane %v1966_v61, 3  ;;  %v864_v12 = vadd.f32 1.0, %v845_v60 }
  0x8d   : > { %v865_v34 = vadd.f32 1.0, %v846_v21  ;;  %v892_v9 = vsub.f32 %v845_v60, %v2314_v15  ;;  %v893_v35 = vsub.f32 %v846_v21, %v2314_v15  ;;  %v837_v37 = vadd.f32 %v836_v26, %v2584_v20 }
  0x8e   : > { %v866_v27 = vadd.f32 1.0, %v847_v10  ;;  %v867_v38 = vadd.f32 1.0, %v848_v11  ;;  %v894_v31 = vsub.f32 %v847_v10, %v2314_v15  ;;  %v868_v17 = vmul.f32 %v864_v12, %v2329_v40 }
  0x8f   : > { %v869_v7 = vmul.f32 %v865_v34, %v2329_v40  ;;  %v895_v14 = vsub.f32 %v848_v11, %v2314_v15  ;;  %v896_v41 = vmul.f32 2.0, %v892_v9  ;;  %v838_v42 = vadd.f32 %v837_v37, %v2586_v22 }
  0x90   : > { %v870_v4 = vmul.f32 %v866_v27, %v2329_v40  ;;  %v871_v46 = vmul.f32 %v867_v38, %v2329_v40  ;;  %v897_v47 = vmul.f32 2.0, %v893_v35  ;;  %v872_v48 = vfloor.f32 %v868_v17 }
  0x91   : > { %v873_v49 = vfloor.f32 %v869_v7  ;;  %v898_v51 = vmul.f32 2.0, %v894_v31  ;;  %v899_v25 = vmul.f32 2.0, %v895_v14  ;;  %839 = vadd.xlane.f32.xlu2 %v838_v42  ;;  %v900_v23 = vsub.f32 %v2310_v8, %v845_v60  ;;  %v1949_v42 = vld [vmem:[%s2300_s27 + $0xc] sm:$0xf] }
  0x92   : > { %v874_v53 = vfloor.f32 %v870_v4  ;;  %v875_v57 = vfloor.f32 %v871_v46  ;;  %v901_v63 = vsub.f32 %v2310_v8, %v846_v21  ;;  %v876_v52 = vmul.f32 0.5, %v872_v48 }
  0x93   : > { %v877_v61 = vmul.f32 0.5, %v873_v49  ;;  %v902_v62 = vsub.f32 %v2310_v8, %v847_v10  ;;  %v903_v0 = vsub.f32 %v2310_v8, %v848_v11  ;;  %v904_v13 = vadd.f32 0.5, %v900_v23  ;;  %v1955_v23 = vld [vmem:[%s2300_s27 + $0x10] sm:$0xf] }
  0x94   : > { %v878_v58 = vmul.f32 0.5, %v874_v53  ;;  %v879_v59 = vmul.f32 0.5, %v875_v57  ;;  %v905_v5 = vadd.f32 0.5, %v901_v63  ;;  %v1968_v26 = vadd.f32 -1.0, %v876_v52 }
  0x95   : > { %v1969_v12 = vadd.f32 -1.0, %v877_v61  ;;  %v906_v34 = vadd.f32 0.5, %v902_v62  ;;  %v907_v9 = vadd.f32 0.5, %v903_v0  ;;  %v908_v27 = vmul.f32 2.0, %v904_v13 }
  0x96   : > { %v1970_v35 = vadd.f32 -1.0, %v878_v58  ;;  %v1971_v37 = vadd.f32 -1.0, %v879_v59  ;;  %v909_v60 = vmul.f32 2.0, %v905_v5  ;;  %vm884_vm1 = vcmp.eq.f32.partialorder %v1968_v26, %v2314_v15 }
  0x97   : > { %vm885_vm2 = vcmp.eq.f32.partialorder %v1969_v12, %v2314_v15  ;;  %vm888_vm3 = vcmp.eq.f32.partialorder %v1968_v26, %v2310_v8  ;;  %vm889_vm4 = vcmp.eq.f32.partialorder %v1969_v12, %v2310_v8  ;;  %v910_v21 = vmul.f32 2.0, %v906_v34  ;;  %v1967_v26 = vld [vmem:[%s2300_s27 + $0x18] sm:$0xf] }
  0x98   : > { %vm886_vm5 = vcmp.eq.f32.partialorder %v1970_v35, %v2314_v15  ;;  %vm887_vm6 = vcmp.eq.f32.partialorder %v1971_v37, %v2314_v15  ;;  %vm890_vm7 = vcmp.eq.f32.partialorder %v1970_v35, %v2310_v8  ;;  %vm891_vm8 = vcmp.eq.f32.partialorder %v1971_v37, %v2310_v8 }
  0x99   : > { %v911_v10 = vmul.f32 2.0, %v907_v9  ;;  %v912_v11 = vsel %vm888_vm3, %v908_v27, 0.0  ;;  %v913_v38 = vsel %vm889_vm4, %v909_v60, 0.0  ;;  %v360_v7 = vadd.f32 %v2436_v18, %v2425_v33 }
  0x9a   : > { %v916_v31 = vsel %vm884_vm1, %v896_v41, %v912_v11  ;;  %v917_v17 = vsel %vm885_vm2, %v897_v47, %v913_v38  ;;  %v548_v14 = vadd.f32 %v2469_v39, %v2477_v2  ;;  %v914_v4 = vsel %vm890_vm7, %v910_v21, 0.0 }
  0x9b   : > { %v915_v46 = vsel %vm891_vm8, %v911_v10, 0.0  ;;  %v930_v48 = vadd.f32 %v917_v17, %v916_v31  ;;  %v454_v49 = vadd.f32 %v2364_v28, %v2376_v32  ;;  %v918_v53 = vsel %vm886_vm5, %v898_v51, %v914_v4  ;;  %v1961_v51 = vld [vmem:[%s2300_s27 + $0x14] sm:$0xf] }
  0x9c   : > { %v919_v41 = vsel %vm887_vm6, %v899_v25, %v915_v46  ;;  %v361_v47 = vadd.f32 %v360_v7, %v2440_v19  ;;  %v549_v33 = vadd.f32 %v548_v14, %v2481_v3  ;;  %v574_v2 = vperm.slane %v1949_v42, 0  ;;  %v2646_v14 = vld [vmem:[%s2300_s27 + $0x1c] sm:$0xf] }
  0x9d   : > { %v931_v18 = vadd.f32 %v930_v48, %v918_v53  ;;  %v455_v39 = vadd.f32 %v454_v49, %v2368_v29  ;;  %v575_v57 = vperm.slane %v1949_v42, 1  ;;  %v576_v32 = vperm.slane %v1949_v42, 2 }
  0x9e   : > { %v362_v63 = vadd.f32 %v361_v47, %v2444_v1  ;;  %v550_v28 = vadd.f32 %v549_v33, %v2485_v24  ;;  %v577_v52 = vperm.slane %v1949_v42, 3  ;;  %v638_v19 = vmul.f32 %v2508_v44, %v574_v2 }
  0x9f   : > { %v932_v61 = vadd.f32 %v931_v18, %v919_v41  ;;  %v456_v25 = vadd.f32 %v455_v39, %v2372_v30  ;;  %v639_v3 = vmul.f32 %v2510_v45, %v575_v57  ;;  %v640_v29 = vmul.f32 %v2512_v56, %v576_v32 }
  0xa0   : > { %363 = vadd.xlane.f32.xlu0 %v362_v63  ;;  %551 = vadd.xlane.f32.xlu2 %v550_v28  ;;  %v641_v62 = vmul.f32 %v2518_v50, %v577_v52  ;;  %v668_v1 = vperm.slane %v1955_v23, 0  ;;  %v669_v0 = vperm.slane %v1955_v23, 1  ;;  %v670_v58 = vperm.slane %v1955_v23, 2 }
  0xa1   : > { %933 = vadd.xlane.f32.xlu1 %v932_v61  ;;  %v642_v24 = vadd.f32 %v639_v3, %v638_v19  ;;  %v671_v59 = vperm.slane %v1955_v23, 3  ;;  %v762_v13 = vperm.slane %v1961_v51, 0  ;;  %v763_v45 = vperm.slane %v1961_v51, 1 }
  0xa2   : > { %v732_v30 = vmul.f32 %v2545_v6, %v668_v1  ;;  %v733_v44 = vmul.f32 %v2547_v36, %v669_v0  ;;  %v764_v5 = vperm.slane %v1961_v51, 2  ;;  %v734_v56 = vmul.f32 %v2549_v54, %v670_v58  ;;  %v1972_v6 = vld [vmem:[%s2294_s29 + $0x1c] sm:$0xf] }
  0xa3   : > { %v643_v12 = vadd.f32 %v642_v24, %v640_v29  ;;  %v735_v50 = vmul.f32 %v2551_v55, %v671_v59  ;;  %v765_v34 = vperm.slane %v1961_v51, 3  ;;  %v826_v35 = vmul.f32 %v2578_v43, %v762_v13 }
  0xa4   : > { %v736_v9 = vadd.f32 %v733_v44, %v732_v30  ;;  %v827_v37 = vmul.f32 %v2582_v16, %v763_v45  ;;  %v828_v27 = vmul.f32 %v2584_v20, %v764_v5  ;;  %v856_v21 = vperm.slane %v1967_v26, 0 }
  0xa5   : > { %v644_v60 = vadd.f32 %v643_v12, %v641_v62  ;;  %v829_v36 = vmul.f32 %v2586_v22, %v765_v34  ;;  %v857_v10 = vperm.slane %v1967_v26, 1  ;;  %v858_v54 = vperm.slane %v1967_v26, 2 }
  0xa6   : > { %v737_v11 = vadd.f32 %v736_v9, %v734_v56  ;;  %v830_v38 = vadd.f32 %v827_v37, %v826_v35  ;;  %v859_v7 = vperm.slane %v1967_v26, 3  ;;  %v920_v55 = vmul.f32 %v916_v31, %v856_v21 }
  0xa7   : > { %v921_v42 = vmul.f32 %v917_v17, %v857_v10  ;;  %v939_v4 = vperm.slane %v1972_v6, 0  ;;  %v940_v43 = vperm.slane %v1972_v6, 1  ;;  %v922_v20 = vmul.f32 %v918_v53, %v858_v54 }
  0xa8   : > { %645 = vadd.xlane.f32.xlu0 %v644_v60  ;;  %v738_v16 = vadd.f32 %v737_v11, %v735_v50  ;;  %v831_v46 = vadd.f32 %v830_v38, %v828_v27  ;;  %v923_v48 = vmul.f32 %v919_v41, %v859_v7  ;;  %v941_v22 = vperm.slane %v1972_v6, 2  ;;  %v1978_v11 = vld [vmem:[%s2294_s29 + $0x20] sm:$0xf] }
  0xa9   : > { %457 = vadd.xlane.f32.xlu1 %v456_v25  ;;  %v924_v49 = vadd.f32 %v921_v42, %v920_v55  ;;  %v942_v47 = vperm.slane %v1972_v6, 3  ;;  %v950_v33 = vperm.slane %v2646_v14, 0  ;;  %v951_v39 = vperm.slane %v2646_v14, 1 }
  0xaa   : > { %739 = vadd.xlane.f32.xlu2 %v738_v16  ;;  %v832_v18 = vadd.f32 %v831_v46, %v829_v36  ;;  %v952_v31 = vperm.slane %v2646_v14, 2  ;;  %v953_v17 = vperm.slane %v2646_v14, 3  ;;  %v958_v57 = vadd.f32 1.0, %v939_v4  ;;  %v2678_v46 = vld [vmem:[%s2300_s27 + $0x20] sm:$0xf] }
  0xab   : > { %v925_v2 = vadd.f32 %v924_v49, %v922_v20  ;;  %v959_v23 = vadd.f32 1.0, %v940_v43  ;;  %v960_v63 = vadd.f32 1.0, %v941_v22  ;;  %v961_v53 = vadd.f32 1.0, %v942_v47 }
  0xac   : > { %v986_v41 = vsub.f32 %v939_v4, %v2314_v15  ;;  %v987_v28 = vsub.f32 %v940_v43, %v2314_v15  ;;  %v988_v32 = vsub.f32 %v941_v22, %v2314_v15  ;;  %v962_v51 = vmul.f32 %v958_v57, %v2329_v40 }
  0xad   : > { %v926_v52 = vadd.f32 %v925_v2, %v923_v48  ;;  %v963_v61 = vmul.f32 %v959_v23, %v2329_v40  ;;  %v964_v25 = vmul.f32 %v960_v63, %v2329_v40  ;;  %v965_v19 = vmul.f32 %v961_v53, %v2329_v40 }
  0xae   : > { %v989_v3 = vsub.f32 %v942_v47, %v2314_v15  ;;  %v990_v29 = vmul.f32 2.0, %v986_v41  ;;  %v991_v62 = vmul.f32 2.0, %v987_v28  ;;  %v966_v1 = vfloor.f32 %v962_v51 }
  0xaf   : > { %v967_v0 = vfloor.f32 %v963_v61  ;;  %v968_v24 = vfloor.f32 %v964_v25  ;;  %v992_v58 = vmul.f32 2.0, %v988_v32  ;;  %v969_v59 = vfloor.f32 %v965_v19 }
  0xb0   : > { %927 = vadd.xlane.f32.xlu0 %v926_v52  ;;  %v993_v13 = vmul.f32 2.0, %v989_v3  ;;  %v994_v30 = vsub.f32 %v2310_v8, %v939_v4  ;;  %v995_v44 = vsub.f32 %v2310_v8, %v940_v43  ;;  %v970_v45 = vmul.f32 0.5, %v966_v1 }
  0xb1   : > { %833 = vadd.xlane.f32.xlu1 %v832_v18  ;;  %v971_v5 = vmul.f32 0.5, %v967_v0  ;;  %v972_v26 = vmul.f32 0.5, %v968_v24  ;;  %v996_v12 = vsub.f32 %v2310_v8, %v941_v22  ;;  %v973_v56 = vmul.f32 0.5, %v969_v59 }
  0xb2   : > { %v997_v50 = vsub.f32 %v2310_v8, %v942_v47  ;;  %v998_v34 = vadd.f32 0.5, %v994_v30  ;;  %v999_v9 = vadd.f32 0.5, %v995_v44  ;;  %v1974_v35 = vadd.f32 -1.0, %v970_v45 }
  0xb3   : > { %v1975_v37 = vadd.f32 -1.0, %v971_v5  ;;  %v1976_v27 = vadd.f32 -1.0, %v972_v26  ;;  %v1000_v6 = vadd.f32 0.5, %v996_v12  ;;  %v1977_v60 = vadd.f32 -1.0, %v973_v56 }
  0xb4   : > { %v1001_v36 = vadd.f32 0.5, %v997_v50  ;;  %v1002_v21 = vmul.f32 2.0, %v998_v34  ;;  %v1003_v10 = vmul.f32 2.0, %v999_v9  ;;  %vm978_vm9 = vcmp.eq.f32.partialorder %v1974_v35, %v2314_v15 }
  0xb5   : > { %vm979_vm10 = vcmp.eq.f32.partialorder %v1975_v37, %v2314_v15  ;;  %vm980_vm11 = vcmp.eq.f32.partialorder %v1976_v27, %v2314_v15  ;;  %vm982_vm12 = vcmp.eq.f32.partialorder %v1974_v35, %v2310_v8  ;;  %vm981_vm13 = vcmp.eq.f32.partialorder %v1977_v60, %v2314_v15 }
  0xb6   : > { %vm983_vm14 = vcmp.eq.f32.partialorder %v1975_v37, %v2310_v8  ;;  %vm984_vm15 = vcmp.eq.f32.partialorder %v1976_v27, %v2310_v8  ;;  %vm985_vm0 = vcmp.eq.f32.partialorder %v1977_v60, %v2310_v8  ;;  %v1004_v38 = vmul.f32 2.0, %v1000_v6 }
  0xb7   : > { %v1005_v54 = vmul.f32 2.0, %v1001_v36  ;;  %v1006_v7 = vsel %vm982_vm12, %v1002_v21, 0.0  ;;  %v1007_v55 = vsel %vm983_vm14, %v1003_v10, 0.0  ;;  %v1033_v43 = vperm.slane %v1978_v11, 0 }
  0xb8   : > { %v2673_v42 = vsel %vm978_vm9, %v990_v29, %v1006_v7  ;;  %v2675_v4 = vsel %vm979_vm10, %v991_v62, %v1007_v55  ;;  %v1034_v16 = vperm.slane %v1978_v11, 1  ;;  %v1008_v20 = vsel %vm984_vm15, %v1004_v38, 0.0  ;;  %v1984_v7 = vld [vmem:[%s2294_s29 + $0x24] sm:$0xf] }
  0xb9   : > { %v1009_v48 = vsel %vm985_vm0, %v1005_v54, 0.0  ;;  %v1014_v49 = vmul.f32 %v2673_v42, %v950_v33  ;;  %v1015_v22 = vmul.f32 %v2675_v4, %v951_v39  ;;  %v2688_v47 = vsel %vm980_vm11, %v992_v58, %v1008_v20 }
  0xba   : > { %v2692_v18 = vsel %vm981_vm13, %v993_v13, %v1009_v48  ;;  %v1035_v2 = vperm.slane %v1978_v11, 2  ;;  %v1036_v57 = vperm.slane %v1978_v11, 3  ;;  %v1016_v23 = vmul.f32 %v2688_v47, %v952_v31 }
  0xbb   : > { %v1017_v33 = vmul.f32 %v2692_v18, %v953_v17  ;;  %v1018_v63 = vadd.f32 %v1015_v22, %v1014_v49  ;;  %v1044_v39 = vperm.slane %v2678_v46, 0  ;;  %v1045_v53 = vperm.slane %v2678_v46, 1 }
  0xbc   : > { %v1046_v41 = vperm.slane %v2678_v46, 2  ;;  %v1047_v28 = vperm.slane %v2678_v46, 3  ;;  %v1052_v32 = vadd.f32 1.0, %v1033_v43  ;;  %v1053_v51 = vadd.f32 1.0, %v1034_v16 }
  0xbd   : > { %v1019_v52 = vadd.f32 %v1018_v63, %v1016_v23  ;;  %v1054_v61 = vadd.f32 1.0, %v1035_v2  ;;  %v1055_v25 = vadd.f32 1.0, %v1036_v57  ;;  %v1080_v14 = vsub.f32 %v1033_v43, %v2314_v15 }
  0xbe   : > { %v1056_v31 = vmul.f32 %v1052_v32, %v2329_v40  ;;  %v1081_v17 = vsub.f32 %v1034_v16, %v2314_v15  ;;  %v1082_v19 = vsub.f32 %v1035_v2, %v2314_v15  ;;  %v1057_v29 = vmul.f32 %v1053_v51, %v2329_v40 }
  0xbf   : > { %v1020_v3 = vadd.f32 %v1019_v52, %v1017_v33  ;;  %v1058_v62 = vmul.f32 %v1054_v61, %v2329_v40  ;;  %v1059_v1 = vmul.f32 %v1055_v25, %v2329_v40  ;;  %v1083_v24 = vsub.f32 %v1036_v57, %v2314_v15 }
  0xc0   : > { %v1060_v0 = vfloor.f32 %v1056_v31  ;;  %v1084_v58 = vmul.f32 2.0, %v1080_v14  ;;  %v1085_v59 = vmul.f32 2.0, %v1081_v17  ;;  %v1061_v13 = vfloor.f32 %v1057_v29 }
  0xc1   : > { %1021 = vadd.xlane.f32.xlu2 %v1020_v3  ;;  %v1062_v30 = vfloor.f32 %v1058_v62  ;;  %v1063_v44 = vfloor.f32 %v1059_v1  ;;  %v1086_v45 = vmul.f32 2.0, %v1082_v19  ;;  %v1087_v26 = vmul.f32 2.0, %v1083_v24 }
  0xc2   : > { %v1064_v5 = vmul.f32 0.5, %v1060_v0  ;;  %v1088_v12 = vsub.f32 %v2310_v8, %v1033_v43  ;;  %v1089_v56 = vsub.f32 %v2310_v8, %v1034_v16  ;;  %v1065_v50 = vmul.f32 0.5, %v1061_v13 }
  0xc3   : > { %v1066_v34 = vmul.f32 0.5, %v1062_v30  ;;  %v1067_v9 = vmul.f32 0.5, %v1063_v44  ;;  %v1090_v35 = vsub.f32 %v2310_v8, %v1035_v2  ;;  %v1091_v27 = vsub.f32 %v2310_v8, %v1036_v57 }
  0xc4   : > { %v1980_v37 = vadd.f32 -1.0, %v1064_v5  ;;  %v1092_v6 = vadd.f32 0.5, %v1088_v12  ;;  %v1093_v60 = vadd.f32 0.5, %v1089_v56  ;;  %v1981_v36 = vadd.f32 -1.0, %v1065_v50 }
  0xc5   : > { %v1982_v21 = vadd.f32 -1.0, %v1066_v34  ;;  %v1983_v10 = vadd.f32 -1.0, %v1067_v9  ;;  %v1094_v11 = vadd.f32 0.5, %v1090_v35  ;;  %v1095_v38 = vadd.f32 0.5, %v1091_v27 }
  0xc6   : > { %vm1072_vm1 = vcmp.eq.f32.partialorder %v1980_v37, %v2314_v15  ;;  %vm1076_vm2 = vcmp.eq.f32.partialorder %v1980_v37, %v2310_v8  ;;  %v1096_v54 = vmul.f32 2.0, %v1092_v6  ;;  %vm1073_vm3 = vcmp.eq.f32.partialorder %v1981_v36, %v2314_v15 }
  0xc7   : > { %vm1074_vm4 = vcmp.eq.f32.partialorder %v1982_v21, %v2314_v15  ;;  %vm1075_vm5 = vcmp.eq.f32.partialorder %v1983_v10, %v2314_v15  ;;  %vm1077_vm6 = vcmp.eq.f32.partialorder %v1981_v36, %v2310_v8  ;;  %vm1078_vm7 = vcmp.eq.f32.partialorder %v1982_v21, %v2310_v8 }
  0xc8   : > { %vm1079_vm8 = vcmp.eq.f32.partialorder %v1983_v10, %v2310_v8  ;;  %v1097_v55 = vmul.f32 2.0, %v1093_v60  ;;  %v1098_v43 = vmul.f32 2.0, %v1094_v11  ;;  %v1099_v16 = vmul.f32 2.0, %v1095_v38 }
  0xc9   : > { %v1100_v20 = vsel %vm1076_vm2, %v1096_v54, 0.0  ;;  %v1024_v48 = vadd.f32 %v2675_v4, %v2673_v42  ;;  %v1127_v49 = vperm.slane %v1984_v7, 0  ;;  %v1128_v23 = vperm.slane %v1984_v7, 1 }
  0xca   : > { %v1101_v22 = vsel %vm1077_vm6, %v1097_v55, 0.0  ;;  %v1102_v2 = vsel %vm1078_vm7, %v1098_v43, 0.0  ;;  %v1104_v57 = vsel %vm1072_vm1, %v1084_v58, %v1100_v20  ;;  %v1103_v33 = vsel %vm1079_vm8, %v1099_v16, 0.0  ;;  %v1985_v43 = vld [vmem:[%s2300_s27 + $0x24] sm:$0xf] }
  0xcb   : > { %v1105_v63 = vsel %vm1073_vm3, %v1085_v59, %v1101_v22  ;;  %v1106_v32 = vsel %vm1074_vm4, %v1086_v45, %v1102_v2  ;;  %v1108_v52 = vmul.f32 %v1104_v57, %v1044_v39  ;;  %v1107_v42 = vsel %vm1075_vm5, %v1087_v26, %v1103_v33  ;;  %v1990_v22 = vld [vmem:[%s2294_s29 + $0x28] sm:$0xf] }
  0xcc   : > { %v1109_v4 = vmul.f32 %v1105_v63, %v1045_v53  ;;  %v1110_v51 = vmul.f32 %v1106_v32, %v1046_v41  ;;  %v1025_v61 = vadd.f32 %v1024_v48, %v2688_v47  ;;  %v1111_v25 = vmul.f32 %v1107_v42, %v1047_v28 }
  0xcd   : > { %v1118_v31 = vadd.f32 %v1105_v63, %v1104_v57  ;;  %v1129_v14 = vperm.slane %v1984_v7, 2  ;;  %v1130_v17 = vperm.slane %v1984_v7, 3  ;;  %v1146_v3 = vadd.f32 1.0, %v1127_v49 }
  0xce   : > { %v1112_v19 = vadd.f32 %v1109_v4, %v1108_v52  ;;  %v1026_v39 = vadd.f32 %v1025_v61, %v2692_v18  ;;  %v1147_v29 = vadd.f32 1.0, %v1128_v23  ;;  %v1174_v53 = vsub.f32 %v1127_v49, %v2314_v15 }
  0xcf   : > { %v1119_v62 = vadd.f32 %v1118_v31, %v1106_v32  ;;  %v1148_v1 = vadd.f32 1.0, %v1129_v14  ;;  %v1149_v0 = vadd.f32 1.0, %v1130_v17  ;;  %v1150_v47 = vmul.f32 %v1146_v3, %v2329_v40 }
  0xd0   : > { %v1113_v24 = vadd.f32 %v1112_v19, %v1110_v51  ;;  %1027 = vadd.xlane.f32.xlu0 %v1026_v39  ;;  %v1151_v46 = vmul.f32 %v1147_v29, %v2329_v40  ;;  %v1175_v41 = vsub.f32 %v1128_v23, %v2314_v15  ;;  %v1176_v59 = vsub.f32 %v1129_v14, %v2314_v15  ;;  %v2780_v39 = vld [vmem:[%s2300_s27 + $0x28] sm:$0xf] }
  0xd1   : > { %v1120_v28 = vadd.f32 %v1119_v62, %v1107_v42  ;;  %v1152_v58 = vmul.f32 %v1148_v1, %v2329_v40  ;;  %v1153_v18 = vmul.f32 %v1149_v0, %v2329_v40  ;;  %v1154_v30 = vfloor.f32 %v1150_v47 }
  0xd2   : > { %v1114_v13 = vadd.f32 %v1113_v24, %v1111_v25  ;;  %v1155_v44 = vfloor.f32 %v1151_v46  ;;  %v1177_v45 = vsub.f32 %v1130_v17, %v2314_v15  ;;  %v1178_v12 = vmul.f32 2.0, %v1174_v53 }
  0xd3   : > { %1121 = vadd.xlane.f32.xlu2 %v1120_v28  ;;  %v1156_v5 = vfloor.f32 %v1152_v58  ;;  %v1157_v26 = vfloor.f32 %v1153_v18  ;;  %v1179_v56 = vmul.f32 2.0, %v1175_v41  ;;  %v1158_v50 = vmul.f32 0.5, %v1154_v30 }
  0xd4   : > { %1115 = vadd.xlane.f32.xlu1 %v1114_v13  ;;  %v1159_v34 = vmul.f32 0.5, %v1155_v44  ;;  %v1180_v9 = vmul.f32 2.0, %v1176_v59  ;;  %v1181_v35 = vmul.f32 2.0, %v1177_v45  ;;  %v1182_v6 = vsub.f32 %v2310_v8, %v1127_v49 }
  0xd5   : > { %v1160_v37 = vmul.f32 0.5, %v1156_v5  ;;  %v1161_v27 = vmul.f32 0.5, %v1157_v26  ;;  %v1183_v60 = vsub.f32 %v2310_v8, %v1128_v23  ;;  %v1986_v36 = vadd.f32 -1.0, %v1158_v50 }
  0xd6   : > { %v1987_v21 = vadd.f32 -1.0, %v1159_v34  ;;  %v1184_v10 = vsub.f32 %v2310_v8, %v1129_v14  ;;  %v1185_v11 = vsub.f32 %v2310_v8, %v1130_v17  ;;  %v1186_v7 = vadd.f32 0.5, %v1182_v6 }
  0xd7   : > { %v1988_v38 = vadd.f32 -1.0, %v1160_v37  ;;  %v1989_v54 = vadd.f32 -1.0, %v1161_v27  ;;  %v1187_v55 = vadd.f32 0.5, %v1183_v60  ;;  %vm1166_vm9 = vcmp.eq.f32.partialorder %v1986_v36, %v2314_v15 }
  0xd8   : > { %vm1167_vm10 = vcmp.eq.f32.partialorder %v1987_v21, %v2314_v15  ;;  %vm1170_vm11 = vcmp.eq.f32.partialorder %v1986_v36, %v2310_v8  ;;  %vm1171_vm12 = vcmp.eq.f32.partialorder %v1987_v21, %v2310_v8  ;;  %v1188_v16 = vadd.f32 0.5, %v1184_v10 }
  0xd9   : > { %vm1168_vm13 = vcmp.eq.f32.partialorder %v1988_v38, %v2314_v15  ;;  %vm1169_vm14 = vcmp.eq.f32.partialorder %v1989_v54, %v2314_v15  ;;  %vm1172_vm15 = vcmp.eq.f32.partialorder %v1988_v38, %v2310_v8  ;;  %vm1173_vm0 = vcmp.eq.f32.partialorder %v1989_v54, %v2310_v8 }
  0xda   : > { %v1189_v20 = vadd.f32 0.5, %v1185_v11  ;;  %v1190_v48 = vmul.f32 2.0, %v1186_v7  ;;  %v1191_v49 = vmul.f32 2.0, %v1187_v55  ;;  %v1138_v2 = vperm.slane %v1985_v43, 0 }
  0xdb   : > { %v1139_v57 = vperm.slane %v1985_v43, 1  ;;  %v1140_v23 = vperm.slane %v1985_v43, 2  ;;  %v1141_v33 = vperm.slane %v1985_v43, 3  ;;  %v1192_v63 = vmul.f32 2.0, %v1188_v16 }
  0xdc   : > { %v1193_v32 = vmul.f32 2.0, %v1189_v20  ;;  %v1194_v52 = vsel %vm1170_vm11, %v1190_v48, 0.0  ;;  %v1195_v42 = vsel %vm1171_vm12, %v1191_v49, 0.0  ;;  %v1221_v61 = vperm.slane %v1990_v22, 0 }
  0xdd   : > { %v1198_v4 = vsel %vm1166_vm9, %v1178_v12, %v1194_v52  ;;  %v1199_v51 = vsel %vm1167_vm10, %v1179_v56, %v1195_v42  ;;  %v1222_v25 = vperm.slane %v1990_v22, 1  ;;  %v1196_v31 = vsel %vm1172_vm15, %v1192_v63, 0.0 }
  0xde   : > { %v1197_v14 = vsel %vm1173_vm0, %v1193_v32, 0.0  ;;  %v1212_v17 = vadd.f32 %v1199_v51, %v1198_v4  ;;  %v1202_v19 = vmul.f32 %v1198_v4, %v1138_v2  ;;  %v1200_v3 = vsel %vm1168_vm13, %v1180_v9, %v1196_v31  ;;  %v1996_v4 = vld [vmem:[%s2294_s29 + $0x2c] sm:$0xf] }
  0xdf   : > { %v1201_v29 = vsel %vm1169_vm14, %v1181_v35, %v1197_v14  ;;  %v1203_v62 = vmul.f32 %v1199_v51, %v1139_v57  ;;  %v1223_v1 = vperm.slane %v1990_v22, 2  ;;  %v1204_v53 = vmul.f32 %v1200_v3, %v1140_v23 }
  0xe0   : > { %v1213_v0 = vadd.f32 %v1212_v17, %v1200_v3  ;;  %v1205_v24 = vmul.f32 %v1201_v29, %v1141_v33  ;;  %v1224_v47 = vperm.slane %v1990_v22, 3  ;;  %v1232_v41 = vperm.slane %v2780_v39, 0 }
  0xe1   : > { %v1206_v46 = vadd.f32 %v1203_v62, %v1202_v19  ;;  %v1233_v28 = vperm.slane %v2780_v39, 1  ;;  %v1234_v58 = vperm.slane %v2780_v39, 2  ;;  %v1235_v59 = vperm.slane %v2780_v39, 3 }
  0xe2   : > { %v1214_v18 = vadd.f32 %v1213_v0, %v1201_v29  ;;  %v1240_v13 = vadd.f32 1.0, %v1221_v61  ;;  %v1241_v30 = vadd.f32 1.0, %v1222_v25  ;;  %v1242_v45 = vadd.f32 1.0, %v1223_v1 }
  0xe3   : > { %v1207_v44 = vadd.f32 %v1206_v46, %v1204_v53  ;;  %v1243_v5 = vadd.f32 1.0, %v1224_v47  ;;  %v1268_v26 = vsub.f32 %v1221_v61, %v2314_v15  ;;  %v1269_v50 = vsub.f32 %v1222_v25, %v2314_v15  ;;  %v2812_v53 = vld [vmem:[%s2300_s27 + $0x2c] sm:$0xf] }
  0xe4   : > { %1215 = vadd.xlane.f32.xlu1 %v1214_v18  ;;  %v1244_v12 = vmul.f32 %v1240_v13, %v2329_v40  ;;  %v1245_v56 = vmul.f32 %v1241_v30, %v2329_v40  ;;  %v1270_v34 = vsub.f32 %v1223_v1, %v2314_v15  ;;  %v1246_v35 = vmul.f32 %v1242_v45, %v2329_v40 }
  0xe5   : > { %v1208_v9 = vadd.f32 %v1207_v44, %v1205_v24  ;;  %v1247_v37 = vmul.f32 %v1243_v5, %v2329_v40  ;;  %v1271_v27 = vsub.f32 %v1224_v47, %v2314_v15  ;;  %v1272_v36 = vmul.f32 2.0, %v1268_v26 }
  0xe6   : > { %v1248_v6 = vfloor.f32 %v1244_v12  ;;  %v1249_v60 = vfloor.f32 %v1245_v56  ;;  %v1273_v21 = vmul.f32 2.0, %v1269_v50  ;;  %v1250_v10 = vfloor.f32 %v1246_v35 }
  0xe7   : > { %1209 = vadd.xlane.f32.xlu0 %v1208_v9  ;;  %v1251_v11 = vfloor.f32 %v1247_v37  ;;  %v1274_v38 = vmul.f32 2.0, %v1270_v34  ;;  %v1275_v54 = vmul.f32 2.0, %v1271_v27  ;;  %v1276_v43 = vsub.f32 %v2310_v8, %v1221_v61 }
  0xe8   : > { %v1252_v7 = vmul.f32 0.5, %v1248_v6  ;;  %v1253_v55 = vmul.f32 0.5, %v1249_v60  ;;  %v1277_v16 = vsub.f32 %v2310_v8, %v1222_v25  ;;  %v1254_v20 = vmul.f32 0.5, %v1250_v10 }
  0xe9   : > { %v1255_v48 = vmul.f32 0.5, %v1251_v11  ;;  %v1278_v49 = vsub.f32 %v2310_v8, %v1223_v1  ;;  %v1279_v22 = vsub.f32 %v2310_v8, %v1224_v47  ;;  %v1280_v23 = vadd.f32 0.5, %v1276_v43 }
  0xea   : > { %v1992_v2 = vadd.f32 -1.0, %v1252_v7  ;;  %v1993_v57 = vadd.f32 -1.0, %v1253_v55  ;;  %v1281_v33 = vadd.f32 0.5, %v1277_v16  ;;  %v1994_v63 = vadd.f32 -1.0, %v1254_v20 }
  0xeb   : > { %v1995_v32 = vadd.f32 -1.0, %v1255_v48  ;;  %v1282_v52 = vadd.f32 0.5, %v1278_v49  ;;  %v1283_v42 = vadd.f32 0.5, %v1279_v22  ;;  %v1284_v51 = vmul.f32 2.0, %v1280_v23 }
  0xec   : > { %vm1260_vm1 = vcmp.eq.f32.partialorder %v1992_v2, %v2314_v15  ;;  %vm1261_vm2 = vcmp.eq.f32.partialorder %v1993_v57, %v2314_v15  ;;  %vm1264_vm3 = vcmp.eq.f32.partialorder %v1992_v2, %v2310_v8  ;;  %vm1265_vm4 = vcmp.eq.f32.partialorder %v1993_v57, %v2310_v8 }
  0xed   : > { %vm1262_vm5 = vcmp.eq.f32.partialorder %v1994_v63, %v2314_v15  ;;  %vm1263_vm6 = vcmp.eq.f32.partialorder %v1995_v32, %v2314_v15  ;;  %vm1266_vm7 = vcmp.eq.f32.partialorder %v1994_v63, %v2310_v8  ;;  %vm1267_vm8 = vcmp.eq.f32.partialorder %v1995_v32, %v2310_v8 }
  0xee   : > { %v1285_v61 = vmul.f32 2.0, %v1281_v33  ;;  %v1286_v25 = vmul.f32 2.0, %v1282_v52  ;;  %v1287_v31 = vmul.f32 2.0, %v1283_v42  ;;  %v1315_v14 = vperm.slane %v1996_v4, 0 }
  0xef   : > { %v1316_v17 = vperm.slane %v1996_v4, 1  ;;  %v1317_v19 = vperm.slane %v1996_v4, 2  ;;  %v1318_v3 = vperm.slane %v1996_v4, 3  ;;  %v1288_v29 = vsel %vm1264_vm3, %v1284_v51, 0.0 }
  0xf0   : > { %v1289_v62 = vsel %vm1265_vm4, %v1285_v61, 0.0  ;;  %v1290_v1 = vsel %vm1266_vm7, %v1286_v25, 0.0  ;;  %v1291_v0 = vsel %vm1267_vm8, %v1287_v31, 0.0  ;;  %v2816_v24 = vsel %vm1260_vm1, %v1272_v36, %v1288_v29 }
  0xf1   : > { %v2820_v47 = vsel %vm1261_vm2, %v1273_v21, %v1289_v62  ;;  %v2824_v46 = vsel %vm1262_vm5, %v1274_v38, %v1290_v1  ;;  %v2828_v18 = vsel %vm1263_vm6, %v1275_v54, %v1291_v0  ;;  %v1296_v13 = vmul.f32 %v2816_v24, %v1232_v41 }
  0xf2   : > { %v1297_v30 = vmul.f32 %v2820_v47, %v1233_v28  ;;  %v1298_v44 = vmul.f32 %v2824_v46, %v1234_v58  ;;  %v1299_v45 = vmul.f32 %v2828_v18, %v1235_v59  ;;  %v1326_v5 = vperm.slane %v2812_v53, 0 }
  0xf3   : > { %v1327_v26 = vperm.slane %v2812_v53, 1  ;;  %v1328_v12 = vperm.slane %v2812_v53, 2  ;;  %v1329_v41 = vperm.slane %v2812_v53, 3  ;;  %v1334_v50 = vadd.f32 1.0, %v1315_v14 }
  0xf4   : > { %v1300_v56 = vadd.f32 %v1297_v30, %v1296_v13  ;;  %v1335_v34 = vadd.f32 1.0, %v1316_v17  ;;  %v1336_v28 = vadd.f32 1.0, %v1317_v19  ;;  %v1337_v9 = vadd.f32 1.0, %v1318_v3 }
  0xf5   : > { %v1362_v35 = vsub.f32 %v1315_v14, %v2314_v15  ;;  %v1363_v58 = vsub.f32 %v1316_v17, %v2314_v15  ;;  %v1364_v39 = vsub.f32 %v1317_v19, %v2314_v15  ;;  %v1338_v37 = vmul.f32 %v1334_v50, %v2329_v40 }
  0xf6   : > { %v1301_v59 = vadd.f32 %v1300_v56, %v1298_v44  ;;  %v1339_v27 = vmul.f32 %v1335_v34, %v2329_v40  ;;  %v1340_v6 = vmul.f32 %v1336_v28, %v2329_v40  ;;  %v1341_v60 = vmul.f32 %v1337_v9, %v2329_v40 }
  0xf7   : > { %v1365_v36 = vsub.f32 %v1318_v3, %v2314_v15  ;;  %v1366_v21 = vmul.f32 2.0, %v1362_v35  ;;  %v1367_v10 = vmul.f32 2.0, %v1363_v58  ;;  %v1342_v38 = vfloor.f32 %v1338_v37 }
  0xf8   : > { %v1302_v11 = vadd.f32 %v1301_v59, %v1299_v45  ;;  %v1343_v54 = vfloor.f32 %v1339_v27  ;;  %v1344_v7 = vfloor.f32 %v1340_v6  ;;  %v1345_v55 = vfloor.f32 %v1341_v60 }
  0xf9   : > { %v1368_v43 = vmul.f32 2.0, %v1364_v39  ;;  %v1369_v16 = vmul.f32 2.0, %v1365_v36  ;;  %v1370_v20 = vsub.f32 %v2310_v8, %v1315_v14  ;;  %v1346_v48 = vmul.f32 0.5, %v1342_v38  ;;  %v2002_v14 = vld [vmem:[%s2294_s29 + $0x30] sm:$0xf] }
  0xfa   : > { %1303 = vadd.xlane.f32.xlu2 %v1302_v11  ;;  %v1347_v49 = vmul.f32 0.5, %v1343_v54  ;;  %v1348_v22 = vmul.f32 0.5, %v1344_v7  ;;  %v1371_v2 = vsub.f32 %v2310_v8, %v1316_v17  ;;  %v1349_v57 = vmul.f32 0.5, %v1345_v55 }
  0xfb   : > { %v1372_v23 = vsub.f32 %v2310_v8, %v1317_v19  ;;  %v1373_v33 = vsub.f32 %v2310_v8, %v1318_v3  ;;  %v1374_v63 = vadd.f32 0.5, %v1370_v20  ;;  %v1998_v32 = vadd.f32 -1.0, %v1346_v48 }
  0xfc   : > { %v1999_v52 = vadd.f32 -1.0, %v1347_v49  ;;  %v2000_v42 = vadd.f32 -1.0, %v1348_v22  ;;  %v1375_v4 = vadd.f32 0.5, %v1371_v2  ;;  %v2001_v51 = vadd.f32 -1.0, %v1349_v57 }
  0xfd   : > { %v1376_v61 = vadd.f32 0.5, %v1372_v23  ;;  %v1377_v25 = vadd.f32 0.5, %v1373_v33  ;;  %v1378_v31 = vmul.f32 2.0, %v1374_v63  ;;  %vm1354_vm9 = vcmp.eq.f32.partialorder %v1998_v32, %v2314_v15 }
  0xfe   : > { %vm1355_vm10 = vcmp.eq.f32.partialorder %v1999_v52, %v2314_v15  ;;  %vm1356_vm11 = vcmp.eq.f32.partialorder %v2000_v42, %v2314_v15  ;;  %vm1358_vm12 = vcmp.eq.f32.partialorder %v1998_v32, %v2310_v8  ;;  %vm1357_vm13 = vcmp.eq.f32.partialorder %v2001_v51, %v2314_v15 }
  0xff   : > { %vm1359_vm14 = vcmp.eq.f32.partialorder %v1999_v52, %v2310_v8  ;;  %vm1360_vm15 = vcmp.eq.f32.partialorder %v2000_v42, %v2310_v8  ;;  %vm1361_vm0 = vcmp.eq.f32.partialorder %v2001_v51, %v2310_v8  ;;  %v1379_v17 = vmul.f32 2.0, %v1375_v4 }
 0x100   : > { %v1380_v19 = vmul.f32 2.0, %v1376_v61  ;;  %v1381_v3 = vmul.f32 2.0, %v1377_v25  ;;  %v1382_v29 = vsel %vm1358_vm12, %v1378_v31, 0.0  ;;  %v1306_v1 = vadd.f32 %v2820_v47, %v2816_v24 }
 0x101   : > { %v1386_v62 = vsel %vm1354_vm9, %v1366_v21, %v1382_v29  ;;  %v1409_v0 = vperm.slane %v2002_v14, 0  ;;  %v1410_v13 = vperm.slane %v2002_v14, 1  ;;  %v1383_v30 = vsel %vm1359_vm14, %v1379_v17, 0.0  ;;  %v2003_v29 = vld [vmem:[%s2300_s27 + $0x30] sm:$0xf] }
 0x102   : > { %v1384_v44 = vsel %vm1360_vm15, %v1380_v19, 0.0  ;;  %v1385_v45 = vsel %vm1361_vm0, %v1381_v3, 0.0  ;;  %v1390_v56 = vmul.f32 %v1386_v62, %v1326_v5  ;;  %v1387_v50 = vsel %vm1355_vm10, %v1367_v10, %v1383_v30 }
 0x103   : > { %v1388_v34 = vsel %vm1356_vm11, %v1368_v43, %v1384_v44  ;;  %v1389_v28 = vsel %vm1357_vm13, %v1369_v16, %v1385_v45  ;;  %v1307_v9 = vadd.f32 %v1306_v1, %v2824_v46  ;;  %v1391_v24 = vmul.f32 %v1387_v50, %v1327_v26 }
 0x104   : > { %v1392_v47 = vmul.f32 %v1388_v34, %v1328_v12  ;;  %v1393_v5 = vmul.f32 %v1389_v28, %v1329_v41  ;;  %v1400_v35 = vadd.f32 %v1387_v50, %v1386_v62  ;;  %v1411_v39 = vperm.slane %v2002_v14, 2 }
 0x105   : > { %v1308_v58 = vadd.f32 %v1307_v9, %v2828_v18  ;;  %v1412_v59 = vperm.slane %v2002_v14, 3  ;;  %v1428_v37 = vadd.f32 1.0, %v1409_v0  ;;  %v1394_v27 = vadd.f32 %v1391_v24, %v1390_v56  ;;  %v2008_v24 = vld [vmem:[%s2294_s29 + $0x34] sm:$0xf] }
 0x106   : > { %v1401_v6 = vadd.f32 %v1400_v35, %v1388_v34  ;;  %v1429_v60 = vadd.f32 1.0, %v1410_v13  ;;  %v1456_v46 = vsub.f32 %v1409_v0, %v2314_v15  ;;  %v1430_v36 = vadd.f32 1.0, %v1411_v39 }
 0x107   : > { %1309 = vadd.xlane.f32.xlu0 %v1308_v58  ;;  %v1431_v26 = vadd.f32 1.0, %v1412_v59  ;;  %v1432_v21 = vmul.f32 %v1428_v37, %v2329_v40  ;;  %v1457_v12 = vsub.f32 %v1410_v13, %v2314_v15  ;;  %v1395_v53 = vadd.f32 %v1394_v27, %v1392_v47 }
 0x108   : > { %v1402_v41 = vadd.f32 %v1401_v6, %v1389_v28  ;;  %v1433_v10 = vmul.f32 %v1429_v60, %v2329_v40  ;;  %v1458_v18 = vsub.f32 %v1411_v39, %v2314_v15  ;;  %v1434_v11 = vmul.f32 %v1430_v36, %v2329_v40 }
 0x109   : > { %v1435_v38 = vmul.f32 %v1431_v26, %v2329_v40  ;;  %v1436_v54 = vfloor.f32 %v1432_v21  ;;  %v1459_v7 = vsub.f32 %v1412_v59, %v2314_v15  ;;  %v1396_v55 = vadd.f32 %v1395_v53, %v1393_v5 }
 0x10a   : > { %1403 = vadd.xlane.f32.xlu2 %v1402_v41  ;;  %v1437_v43 = vfloor.f32 %v1433_v10  ;;  %v1460_v16 = vmul.f32 2.0, %v1456_v46  ;;  %v1461_v20 = vmul.f32 2.0, %v1457_v12  ;;  %v1438_v48 = vfloor.f32 %v1434_v11 }
 0x10b   : > { %v1439_v49 = vfloor.f32 %v1435_v38  ;;  %v1440_v22 = vmul.f32 0.5, %v1436_v54  ;;  %v1462_v2 = vmul.f32 2.0, %v1458_v18  ;;  %1397 = vadd.xlane.f32.xlu1 %v1396_v55  ;;  %v1463_v23 = vmul.f32 2.0, %v1459_v7 }
 0x10c   : > { %v1441_v57 = vmul.f32 0.5, %v1437_v43  ;;  %v1464_v33 = vsub.f32 %v2310_v8, %v1409_v0  ;;  %v1465_v63 = vsub.f32 %v2310_v8, %v1410_v13  ;;  %v1442_v32 = vmul.f32 0.5, %v1438_v48 }
 0x10d   : > { %v1443_v52 = vmul.f32 0.5, %v1439_v49  ;;  %v2004_v42 = vadd.f32 -1.0, %v1440_v22  ;;  %v1466_v4 = vsub.f32 %v2310_v8, %v1411_v39  ;;  %v1467_v61 = vsub.f32 %v2310_v8, %v1412_v59  ;;  %v2920_v39 = vld [vmem:[%s2300_s27 + $0x34] sm:$0xf] }
 0x10e   : > { %v2005_v51 = vadd.f32 -1.0, %v1441_v57  ;;  %v1468_v25 = vadd.f32 0.5, %v1464_v33  ;;  %v1469_v31 = vadd.f32 0.5, %v1465_v63  ;;  %v2006_v14 = vadd.f32 -1.0, %v1442_v32 }
 0x10f   : > { %v2007_v17 = vadd.f32 -1.0, %v1443_v52  ;;  %vm1448_vm1 = vcmp.eq.f32.partialorder %v2004_v42, %v2314_v15  ;;  %vm1452_vm2 = vcmp.eq.f32.partialorder %v2004_v42, %v2310_v8  ;;  %v1470_v19 = vadd.f32 0.5, %v1466_v4 }
 0x110   : > { %vm1449_vm3 = vcmp.eq.f32.partialorder %v2005_v51, %v2314_v15  ;;  %vm1453_vm4 = vcmp.eq.f32.partialorder %v2005_v51, %v2310_v8  ;;  %v1471_v3 = vadd.f32 0.5, %v1467_v61  ;;  %vm1450_vm5 = vcmp.eq.f32.partialorder %v2006_v14, %v2314_v15 }
 0x111   : > { %vm1451_vm6 = vcmp.eq.f32.partialorder %v2007_v17, %v2314_v15  ;;  %vm1454_vm7 = vcmp.eq.f32.partialorder %v2006_v14, %v2310_v8  ;;  %vm1455_vm8 = vcmp.eq.f32.partialorder %v2007_v17, %v2310_v8  ;;  %v1472_v62 = vmul.f32 2.0, %v1468_v25 }
 0x112   : > { %v1473_v1 = vmul.f32 2.0, %v1469_v31  ;;  %v1474_v0 = vmul.f32 2.0, %v1470_v19  ;;  %v1475_v13 = vmul.f32 2.0, %v1471_v3  ;;  %v1420_v30 = vperm.slane %v2003_v29, 0 }
 0x113   : > { %v1421_v44 = vperm.slane %v2003_v29, 1  ;;  %v1422_v45 = vperm.slane %v2003_v29, 2  ;;  %v1423_v56 = vperm.slane %v2003_v29, 3  ;;  %v1476_v50 = vsel %vm1452_vm2, %v1472_v62, 0.0 }
 0x114   : > { %v1477_v34 = vsel %vm1453_vm4, %v1473_v1, 0.0  ;;  %v1478_v28 = vsel %vm1454_vm7, %v1474_v0, 0.0  ;;  %v1479_v9 = vsel %vm1455_vm8, %v1475_v13, 0.0  ;;  %v1480_v47 = vsel %vm1448_vm1, %v1460_v16, %v1476_v50 }
 0x115   : > { %v1481_v5 = vsel %vm1449_vm3, %v1461_v20, %v1477_v34  ;;  %v1482_v35 = vsel %vm1450_vm5, %v1462_v2, %v1478_v28  ;;  %v1483_v58 = vsel %vm1451_vm6, %v1463_v23, %v1479_v9  ;;  %v1484_v37 = vmul.f32 %v1480_v47, %v1420_v30  ;;  %v2014_v9 = vld [vmem:[%s2294_s29 + $0x38] sm:$0xf] }
 0x116   : > { %v1494_v59 = vadd.f32 %v1481_v5, %v1480_v47  ;;  %v1485_v27 = vmul.f32 %v1481_v5, %v1421_v44  ;;  %v1486_v6 = vmul.f32 %v1482_v35, %v1422_v45  ;;  %v1487_v60 = vmul.f32 %v1483_v58, %v1423_v56 }
 0x117   : > { %v1503_v46 = vperm.slane %v2008_v24, 0  ;;  %v1504_v36 = vperm.slane %v2008_v24, 1  ;;  %v1505_v26 = vperm.slane %v2008_v24, 2  ;;  %v1506_v53 = vperm.slane %v2008_v24, 3 }
 0x118   : > { %v1495_v21 = vadd.f32 %v1494_v59, %v1482_v35  ;;  %v1488_v12 = vadd.f32 %v1485_v27, %v1484_v37  ;;  %v1514_v41 = vperm.slane %v2920_v39, 0  ;;  %v1515_v10 = vperm.slane %v2920_v39, 1 }
 0x119   : > { %v1516_v18 = vperm.slane %v2920_v39, 2  ;;  %v1517_v11 = vperm.slane %v2920_v39, 3  ;;  %v1522_v38 = vadd.f32 1.0, %v1503_v46  ;;  %v1523_v55 = vadd.f32 1.0, %v1504_v36 }
 0x11a   : > { %v1496_v54 = vadd.f32 %v1495_v21, %v1483_v58  ;;  %v1489_v7 = vadd.f32 %v1488_v12, %v1486_v6  ;;  %v1524_v43 = vadd.f32 1.0, %v1505_v26  ;;  %v1525_v16 = vadd.f32 1.0, %v1506_v53 }
 0x11b   : > { %v1526_v20 = vmul.f32 %v1522_v38, %v2329_v40  ;;  %v1550_v48 = vsub.f32 %v1503_v46, %v2314_v15  ;;  %v1551_v49 = vsub.f32 %v1504_v36, %v2314_v15  ;;  %v1527_v2 = vmul.f32 %v1523_v55, %v2329_v40 }
 0x11c   : > { %1497 = vadd.xlane.f32.xlu1 %v1496_v54  ;;  %v1490_v22 = vadd.f32 %v1489_v7, %v1487_v60  ;;  %v1528_v57 = vmul.f32 %v1524_v43, %v2329_v40  ;;  %v1552_v23 = vsub.f32 %v1505_v26, %v2314_v15  ;;  %v1529_v33 = vmul.f32 %v1525_v16, %v2329_v40 }
 0x11d   : > { %v1530_v63 = vfloor.f32 %v1526_v20  ;;  %v1553_v32 = vsub.f32 %v1506_v53, %v2314_v15  ;;  %v1554_v52 = vmul.f32 2.0, %v1550_v48  ;;  %v1531_v42 = vfloor.f32 %v1527_v2 }
 0x11e   : > { %1491 = vadd.xlane.f32.xlu0 %v1490_v22  ;;  %v1532_v4 = vfloor.f32 %v1528_v57  ;;  %v1555_v51 = vmul.f32 2.0, %v1551_v49  ;;  %v1556_v61 = vmul.f32 2.0, %v1552_v23  ;;  %v1533_v25 = vfloor.f32 %v1529_v33 }
 0x11f   : > { %v1534_v31 = vmul.f32 0.5, %v1530_v63  ;;  %v1557_v14 = vmul.f32 2.0, %v1553_v32  ;;  %v1558_v17 = vsub.f32 %v2310_v8, %v1503_v46  ;;  %v1535_v19 = vmul.f32 0.5, %v1531_v42  ;;  %v2948_v46 = vld [vmem:[%s2300_s27 + $0x38] sm:$0xf] }
 0x120   : > { %v1536_v3 = vmul.f32 0.5, %v1532_v4  ;;  %v1559_v29 = vsub.f32 %v2310_v8, %v1504_v36  ;;  %v1560_v62 = vsub.f32 %v2310_v8, %v1505_v26  ;;  %v1537_v1 = vmul.f32 0.5, %v1533_v25 }
 0x121   : > { %v2010_v0 = vadd.f32 -1.0, %v1534_v31  ;;  %v1561_v13 = vsub.f32 %v2310_v8, %v1506_v53  ;;  %v1562_v30 = vadd.f32 0.5, %v1558_v17  ;;  %v2011_v44 = vadd.f32 -1.0, %v1535_v19 }
 0x122   : > { %v2012_v45 = vadd.f32 -1.0, %v1536_v3  ;;  %v1563_v56 = vadd.f32 0.5, %v1559_v29  ;;  %v1564_v50 = vadd.f32 0.5, %v1560_v62  ;;  %v2013_v34 = vadd.f32 -1.0, %v1537_v1 }
 0x123   : > { %vm1542_vm9 = vcmp.eq.f32.partialorder %v2010_v0, %v2314_v15  ;;  %vm1546_vm10 = vcmp.eq.f32.partialorder %v2010_v0, %v2310_v8  ;;  %v1565_v28 = vadd.f32 0.5, %v1561_v13  ;;  %vm1543_vm11 = vcmp.eq.f32.partialorder %v2011_v44, %v2314_v15 }
 0x124   : > { %vm1544_vm12 = vcmp.eq.f32.partialorder %v2012_v45, %v2314_v15  ;;  %vm1547_vm13 = vcmp.eq.f32.partialorder %v2011_v44, %v2310_v8  ;;  %vm1548_vm14 = vcmp.eq.f32.partialorder %v2012_v45, %v2310_v8  ;;  %vm1545_vm15 = vcmp.eq.f32.partialorder %v2013_v34, %v2314_v15 }
 0x125   : > { %vm1549_vm0 = vcmp.eq.f32.partialorder %v2013_v34, %v2310_v8  ;;  %v1566_v24 = vmul.f32 2.0, %v1562_v30  ;;  %v1567_v47 = vmul.f32 2.0, %v1563_v56  ;;  %v1568_v5 = vmul.f32 2.0, %v1564_v50 }
 0x126   : > { %v1569_v35 = vmul.f32 2.0, %v1565_v28  ;;  %v1597_v58 = vperm.slane %v2014_v9, 0  ;;  %v1598_v59 = vperm.slane %v2014_v9, 1  ;;  %v1599_v6 = vperm.slane %v2014_v9, 2 }
 0x127   : > { %v1570_v37 = vsel %vm1546_vm10, %v1566_v24, 0.0  ;;  %v1571_v27 = vsel %vm1547_vm13, %v1567_v47, 0.0  ;;  %v1600_v60 = vperm.slane %v2014_v9, 3  ;;  %v1572_v36 = vsel %vm1548_vm14, %v1568_v5, 0.0 }
 0x128   : > { %v1573_v26 = vsel %vm1549_vm0, %v1569_v35, 0.0  ;;  %v2952_v21 = vsel %vm1542_vm9, %v1554_v52, %v1570_v37  ;;  %v2956_v12 = vsel %vm1543_vm11, %v1555_v51, %v1571_v27  ;;  %v2960_v53 = vsel %vm1544_vm12, %v1556_v61, %v1572_v36 }
 0x129   : > { %v2964_v38 = vsel %vm1545_vm15, %v1557_v14, %v1573_v26  ;;  %v1578_v54 = vmul.f32 %v2952_v21, %v1514_v41  ;;  %v1579_v7 = vmul.f32 %v2956_v12, %v1515_v10  ;;  %v1580_v55 = vmul.f32 %v2960_v53, %v1516_v18 }
 0x12a   : > { %v1581_v43 = vmul.f32 %v2964_v38, %v1517_v11  ;;  %v1608_v16 = vperm.slane %v2948_v46, 0  ;;  %v1609_v20 = vperm.slane %v2948_v46, 1  ;;  %v1610_v49 = vperm.slane %v2948_v46, 2 }
 0x12b   : > { %v1582_v48 = vadd.f32 %v1579_v7, %v1578_v54  ;;  %v1611_v41 = vperm.slane %v2948_v46, 3  ;;  %v1616_v22 = vadd.f32 1.0, %v1597_v58  ;;  %v1617_v2 = vadd.f32 1.0, %v1598_v59 }
 0x12c   : > { %v1618_v10 = vadd.f32 1.0, %v1599_v6  ;;  %v1619_v57 = vadd.f32 1.0, %v1600_v60  ;;  %v1644_v23 = vsub.f32 %v1597_v58, %v2314_v15  ;;  %v1645_v11 = vsub.f32 %v1598_v59, %v2314_v15 }
 0x12d   : > { %v1583_v18 = vadd.f32 %v1582_v48, %v1580_v55  ;;  %v1620_v39 = vmul.f32 %v1616_v22, %v2329_v40  ;;  %v1646_v33 = vsub.f32 %v1599_v6, %v2314_v15  ;;  %v1621_v63 = vmul.f32 %v1617_v2, %v2329_v40 }
 0x12e   : > { %v1622_v32 = vmul.f32 %v1618_v10, %v2329_v40  ;;  %v1623_v52 = vmul.f32 %v1619_v57, %v2329_v40  ;;  %v1647_v42 = vsub.f32 %v1600_v60, %v2314_v15  ;;  %v1648_v61 = vmul.f32 2.0, %v1644_v23 }
 0x12f   : > { %v1584_v4 = vadd.f32 %v1583_v18, %v1581_v43  ;;  %v1624_v51 = vfloor.f32 %v1620_v39  ;;  %v1649_v25 = vmul.f32 2.0, %v1645_v11  ;;  %v1625_v31 = vfloor.f32 %v1621_v63 }
 0x130   : > { %v1626_v14 = vfloor.f32 %v1622_v32  ;;  %v1627_v17 = vfloor.f32 %v1623_v52  ;;  %v1650_v19 = vmul.f32 2.0, %v1646_v33  ;;  %v1651_v29 = vmul.f32 2.0, %v1647_v42 }
 0x131   : > { %1585 = vadd.xlane.f32.xlu2 %v1584_v4  ;;  %v1628_v3 = vmul.f32 0.5, %v1624_v51  ;;  %v1652_v62 = vsub.f32 %v2310_v8, %v1597_v58  ;;  %v1653_v1 = vsub.f32 %v2310_v8, %v1598_v59  ;;  %v1629_v0 = vmul.f32 0.5, %v1625_v31  ;;  %v2020_v58 = vld [vmem:[%s2294_s29 + $0x3c] sm:$0xf] }
 0x132   : > { %v1630_v13 = vmul.f32 0.5, %v1626_v14  ;;  %v1631_v30 = vmul.f32 0.5, %v1627_v17  ;;  %v1654_v44 = vsub.f32 %v2310_v8, %v1599_v6  ;;  %v1655_v56 = vsub.f32 %v2310_v8, %v1600_v60 }
 0x133   : > { %v2016_v45 = vadd.f32 -1.0, %v1628_v3  ;;  %v1656_v50 = vadd.f32 0.5, %v1652_v62  ;;  %v1657_v34 = vadd.f32 0.5, %v1653_v1  ;;  %v2017_v28 = vadd.f32 -1.0, %v1629_v0 }
 0x134   : > { %v2018_v9 = vadd.f32 -1.0, %v1630_v13  ;;  %v2019_v24 = vadd.f32 -1.0, %v1631_v30  ;;  %v1658_v47 = vadd.f32 0.5, %v1654_v44  ;;  %v1659_v5 = vadd.f32 0.5, %v1655_v56 }
 0x135   : > { %vm1636_vm1 = vcmp.eq.f32.partialorder %v2016_v45, %v2314_v15  ;;  %vm1640_vm2 = vcmp.eq.f32.partialorder %v2016_v45, %v2310_v8  ;;  %v1660_v35 = vmul.f32 2.0, %v1656_v50  ;;  %vm1637_vm3 = vcmp.eq.f32.partialorder %v2017_v28, %v2314_v15 }
 0x136   : > { %vm1638_vm4 = vcmp.eq.f32.partialorder %v2018_v9, %v2314_v15  ;;  %vm1639_vm5 = vcmp.eq.f32.partialorder %v2019_v24, %v2314_v15  ;;  %vm1641_vm6 = vcmp.eq.f32.partialorder %v2017_v28, %v2310_v8  ;;  %vm1642_vm7 = vcmp.eq.f32.partialorder %v2018_v9, %v2310_v8 }
 0x137   : > { %vm1643_vm8 = vcmp.eq.f32.partialorder %v2019_v24, %v2310_v8  ;;  %v1661_v59 = vmul.f32 2.0, %v1657_v34  ;;  %v1662_v37 = vmul.f32 2.0, %v1658_v47  ;;  %v1663_v27 = vmul.f32 2.0, %v1659_v5 }
 0x138   : > { %v1664_v6 = vsel %vm1640_vm2, %v1660_v35, 0.0  ;;  %v1588_v60 = vadd.f32 %v2956_v12, %v2952_v21  ;;  %v1691_v36 = vperm.slane %v2020_v58, 0  ;;  %v1692_v55 = vperm.slane %v2020_v58, 1 }
 0x139   : > { %v1665_v26 = vsel %vm1641_vm6, %v1661_v59, 0.0  ;;  %v1666_v54 = vsel %vm1642_vm7, %v1662_v37, 0.0  ;;  %v1668_v7 = vsel %vm1636_vm1, %v1648_v61, %v1664_v6  ;;  %v1667_v43 = vsel %vm1643_vm8, %v1663_v27, 0.0  ;;  %v2021_v59 = vld [vmem:[%s2300_s27 + $0x3c] sm:$0xf] }
 0x13a   : > { %v1669_v48 = vsel %vm1637_vm3, %v1649_v25, %v1665_v26  ;;  %v1670_v22 = vsel %vm1638_vm4, %v1650_v19, %v1666_v54  ;;  %v1672_v2 = vmul.f32 %v1668_v7, %v1608_v16  ;;  %v1671_v21 = vsel %vm1639_vm5, %v1651_v29, %v1667_v43 }
 0x13b   : > { %v1673_v12 = vmul.f32 %v1669_v48, %v1609_v20  ;;  %v1674_v10 = vmul.f32 %v1670_v22, %v1610_v49  ;;  %v1589_v57 = vadd.f32 %v1588_v60, %v2960_v53  ;;  %v1675_v23 = vmul.f32 %v1671_v21, %v1611_v41 }
 0x13c   : > { %v1682_v18 = vadd.f32 %v1669_v48, %v1668_v7  ;;  %v1693_v39 = vperm.slane %v2020_v58, 2  ;;  %v1694_v11 = vperm.slane %v2020_v58, 3  ;;  %v1710_v63 = vadd.f32 1.0, %v1691_v36 }
 0x13d   : > { %v1676_v33 = vadd.f32 %v1673_v12, %v1672_v2  ;;  %v1590_v16 = vadd.f32 %v1589_v57, %v2964_v38  ;;  %v1711_v32 = vadd.f32 1.0, %v1692_v55  ;;  %v1738_v20 = vsub.f32 %v1691_v36, %v2314_v15 }
 0x13e   : > { %v1683_v52 = vadd.f32 %v1682_v18, %v1670_v22  ;;  %v1712_v42 = vadd.f32 1.0, %v1693_v39  ;;  %v1713_v4 = vadd.f32 1.0, %v1694_v11  ;;  %v1714_v53 = vmul.f32 %v1710_v63, %v2329_v40 }
 0x13f   : > { %v1677_v51 = vadd.f32 %v1676_v33, %v1674_v10  ;;  %1591 = vadd.xlane.f32.xlu0 %v1590_v16  ;;  %v1715_v46 = vmul.f32 %v1711_v32, %v2329_v40  ;;  %v1739_v49 = vsub.f32 %v1692_v55, %v2314_v15  ;;  %v1740_v25 = vsub.f32 %v1693_v39, %v2314_v15 }
 0x140   : > { %v1684_v41 = vadd.f32 %v1683_v52, %v1671_v21  ;;  %v1716_v61 = vmul.f32 %v1712_v42, %v2329_v40  ;;  %v1717_v38 = vmul.f32 %v1713_v4, %v2329_v40  ;;  %v1718_v14 = vfloor.f32 %v1714_v53  ;;  %v464_v4 = vpop.xlane.xlu1 %463 }
 0x141   : > { %v1678_v31 = vadd.f32 %v1677_v51, %v1675_v23  ;;  %v1719_v17 = vfloor.f32 %v1715_v46  ;;  %v1741_v29 = vsub.f32 %v1694_v11, %v2314_v15  ;;  %v1742_v62 = vmul.f32 2.0, %v1738_v20  ;;  %v370_v20 = vpop.xlane.xlu0 %369  ;;  %v558_v51 = vpop.xlane.xlu2 %557 }
 0x142   : > { %1685 = vadd.xlane.f32.xlu2 %v1684_v41  ;;  %v1720_v19 = vfloor.f32 %v1716_v61  ;;  %v1721_v3 = vfloor.f32 %v1717_v38  ;;  %v1722_v1 = vmul.f32 0.5, %v1718_v14  ;;  %v1743_v13 = vmul.f32 2.0, %v1739_v49 }
 0x143   : > { %1679 = vadd.xlane.f32.xlu1 %v1678_v31  ;;  %v1723_v0 = vmul.f32 0.5, %v1719_v17  ;;  %v1744_v30 = vmul.f32 2.0, %v1740_v25  ;;  %v1746_v40 = vsub.f32 %v2310_v8, %v1691_v36  ;;  %v1747_v56 = vsub.f32 %v2310_v8, %v1692_v55 }
 0x144   : > { %v1724_v44 = vmul.f32 0.5, %v1720_v19  ;;  %v1725_v45 = vmul.f32 0.5, %v1721_v3  ;;  %v2022_v50 = vadd.f32 -1.0, %v1722_v1  ;;  %v1748_v28 = vsub.f32 %v2310_v8, %v1693_v39 }
 0x145   : > { %v2023_v34 = vadd.f32 -1.0, %v1723_v0  ;;  %v1749_v9 = vsub.f32 %v2310_v8, %v1694_v11  ;;  %v1750_v5 = vadd.f32 0.5, %v1746_v40  ;;  %v1751_v35 = vadd.f32 0.5, %v1747_v56 }
 0x146   : > { %v2024_v24 = vadd.f32 -1.0, %v1724_v44  ;;  %v2025_v47 = vadd.f32 -1.0, %v1725_v45  ;;  %vm1730_vm9 = vcmp.eq.f32.partialorder %v2022_v50, %v2314_v15  ;;  %vm1734_vm11 = vcmp.eq.f32.partialorder %v2022_v50, %v2310_v8 }
 0x147   : > { %vm1731_vm10 = vcmp.eq.f32.partialorder %v2023_v34, %v2314_v15  ;;  %v1745_v58 = vmul.f32 2.0, %v1741_v29  ;;  %vm1735_vm14 = vcmp.eq.f32.partialorder %v2023_v34, %v2310_v8  ;;  %v1752_v37 = vadd.f32 0.5, %v1748_v28 }
 0x148   : > { %vm1732_vm12 = vcmp.eq.f32.partialorder %v2024_v24, %v2314_v15  ;;  %vm1733_vm13 = vcmp.eq.f32.partialorder %v2025_v47, %v2314_v15  ;;  %vm1736_vm15 = vcmp.eq.f32.partialorder %v2024_v24, %v2310_v8  ;;  %v1753_v27 = vadd.f32 0.5, %v1749_v9  ;;  %v652_v53 = vpop.xlane.xlu1 %651 }
 0x149   : > { %v1754_v6 = vmul.f32 2.0, %v1750_v5  ;;  %v1755_v60 = vmul.f32 2.0, %v1751_v35  ;;  %vm1737_vm0 = vcmp.eq.f32.partialorder %v2025_v47, %v2310_v8  ;;  %v1702_v36 = vperm.slane %v2021_v59, 0  ;;  %v746_v46 = vpop.xlane.xlu0 %745  ;;  %v840_v49 = vpop.xlane.xlu2 %839 }
 0x14a   : > { %v1703_v26 = vperm.slane %v2021_v59, 1  ;;  %v1704_v54 = vperm.slane %v2021_v59, 2  ;;  %v1756_v7 = vmul.f32 2.0, %v1752_v37  ;;  %v1757_v55 = vmul.f32 2.0, %v1753_v27 }
 0x14b   : > { %v1758_v43 = vsel %vm1734_vm11, %v1754_v6, 0.0  ;;  %v1759_v48 = vsel %vm1735_vm14, %v1755_v60, 0.0  ;;  %v1705_v21 = vperm.slane %v2021_v59, 3  ;;  %vm264_vm1 = vcmask 7168  }
 0x14c   : > { %v1762_v22 = vsel %vm1730_vm9, %v1742_v62, %v1758_v43  ;;  %v1763_v2 = vsel %vm1731_vm10, %v1743_v13, %v1759_v48  ;;  %v1760_v12 = vsel %vm1736_vm15, %v1756_v7, 0.0  ;;  %v1761_v10 = vsel %vm1737_vm0, %v1757_v55, 0.0 }
 0x14d   : > { %v1776_v57 = vadd.f32 %v1763_v2, %v1762_v22  ;;  %v1766_v23 = vmul.f32 %v1762_v22, %v1702_v36  ;;  %v1764_v18 = vsel %vm1732_vm12, %v1744_v30, %v1760_v12  ;;  %v1765_v39 = vsel %vm1733_vm13, %v1745_v58, %v1761_v10 }
 0x14e   : > { %v1767_v11 = vmul.f32 %v1763_v2, %v1703_v26  ;;  %v1768_v16 = vmul.f32 %v1764_v18, %v1704_v54  ;;  %v1769_v63 = vmul.f32 %v1765_v39, %v1705_v21  ;;  %v2209_v62 = vmov 0.0  }
 0x14f   : > { %v1777_v33 = vadd.f32 %v1776_v57, %v1764_v18  ;;  %266 = vst.msk [vmem:[%s3061_s4] sm:$0xff] %vm264_vm1, %v2209_v62  ;;  %v465_v30 = vadd.f32 %v464_v4, %v370_v20 }
 0x150   : > { %v1770_v32 = vadd.f32 %v1767_v11, %v1766_v23  ;;  %v934_v15 = vpop.xlane.xlu1 %933  ;;  %265 = vst.msk [vmem:[%s3066_s7] sm:$0xff] %vm264_vm1, %v2209_v62 }
 0x151   : > { %v1778_v52 = vadd.f32 %v1777_v33, %v1765_v39  ;;  %v364_v41 = vpop.xlane.xlu0 %363  ;;  %v552_v61 = vpop.xlane.xlu2 %551  ;;  %v559_v40 = vadd.f32 %v558_v51, %v465_v30 }
 0x152   : > { %v1771_v42 = vadd.f32 %v1770_v32, %v1768_v16 }
 0x153   : > { %1779 = vadd.xlane.f32.xlu1 %v1778_v52  ;;  %v653_v50 = vadd.f32 %v652_v53, %v559_v40 }
 0x154   : > { %v1772_v8 = vadd.f32 %v1771_v42, %v1769_v63 }
 0x155   : > { %v747_v9 = vadd.f32 %v746_v46, %v653_v50 }
 0x156   : > { %1773 = vadd.xlane.f32.xlu0 %v1772_v8  ;;  %v1786_v63 = vld [vmem:[%s3061_s4] sm:$0xff] }
 0x157   : > { %v841_v5 = vadd.f32 %v840_v49, %v747_v9  ;;  %v1782_v4 = vld [vmem:[%s3066_s7] sm:$0xff] }
 0x158   : > { %v458_v38 = vpop.xlane.xlu1 %457 }
 0x159   : > { %v646_v25 = vpop.xlane.xlu0 %645  ;;  %v740_v31 = vpop.xlane.xlu2 %739  ;;  %v459_v0 = vadd.f32 %v458_v38, %v364_v41  ;;  %v935_v59 = vadd.f32 %v934_v15, %v841_v5 }
 0x15b   : > { %v553_v45 = vadd.f32 %v552_v61, %v459_v0 }
 0x15d   : > { %v647_v34 = vadd.f32 %v646_v25, %v553_v45 }
 0x15f   : > { %v741_v24 = vadd.f32 %v740_v31, %v647_v34 }
 0x160   : > { %v834_v14 = vpop.xlane.xlu1 %833 }
 0x161   : > { %v928_v17 = vpop.xlane.xlu0 %927  ;;  %v1022_v19 = vpop.xlane.xlu2 %1021  ;;  %v835_v35 = vadd.f32 %v834_v14, %v741_v24 }
 0x163   : > { %v929_v27 = vadd.f32 %v928_v17, %v835_v35 }
 0x165   : > { %v1023_v26 = vadd.f32 %v1022_v19, %v929_v27 }
 0x168   : > { %v1116_v3 = vpop.xlane.xlu1 %1115 }
 0x169   : > { %v1028_v29 = vpop.xlane.xlu0 %1027  ;;  %v1122_v1 = vpop.xlane.xlu2 %1121  ;;  %v1117_v7 = vadd.f32 %v1116_v3, %v1023_v26 }
 0x16a   : > { %v1029_v37 = vadd.f32 %v1028_v29, %v935_v59 }
 0x16c   : > { %v1123_v36 = vadd.f32 %v1122_v1, %v1029_v37 }
 0x170   : > { %v1216_v13 = vpop.xlane.xlu1 %1215 }
 0x171   : > { %v1210_v44 = vpop.xlane.xlu0 %1209  ;;  %v1304_v56 = vpop.xlane.xlu2 %1303  ;;  %v1217_v54 = vadd.f32 %v1216_v13, %v1123_v36 }
 0x172   : > { %v1211_v48 = vadd.f32 %v1210_v44, %v1117_v7 }
 0x174   : > { %v1305_v21 = vadd.f32 %v1304_v56, %v1211_v48 }
 0x17a   : > { %v1310_v47 = vpop.xlane.xlu0 %1309 }
 0x17b   : > { %v1311_v43 = vadd.f32 %v1310_v47, %v1217_v54 }
 0x17d   : > { %v1404_v58 = vpop.xlane.xlu2 %1403 }
 0x17e   : > { %v1398_v28 = vpop.xlane.xlu1 %1397  ;;  %v1405_v2 = vadd.f32 %v1404_v58, %v1311_v43 }
 0x17f   : > { %v1399_v57 = vadd.f32 %v1398_v28, %v1305_v21 }
 0x18f   : > { %v1498_v6 = vpop.xlane.xlu1 %1497 }
 0x190   : > { %v1499_v10 = vadd.f32 %v1498_v6, %v1405_v2 }
 0x191   : > { %v1492_v60 = vpop.xlane.xlu0 %1491 }
 0x192   : > { %v1493_v18 = vadd.f32 %v1492_v60, %v1399_v57 }
 0x1a4   : > { %v1586_v55 = vpop.xlane.xlu2 %1585 }
 0x1a5   : > { %v1587_v33 = vadd.f32 %v1586_v55, %v1493_v18 }
 0x1b2   : > { %v1592_v12 = vpop.xlane.xlu0 %1591 }
 0x1b3   : > { %v1593_v23 = vadd.f32 %v1592_v12, %v1499_v10 }
 0x1b5   : > { %v1686_v39 = vpop.xlane.xlu2 %1685 }
 0x1b6   : > { %v1680_v22 = vpop.xlane.xlu1 %1679  ;;  %v1687_v11 = vadd.f32 %v1686_v39, %v1593_v23 }
 0x1b7   : > { %v1681_v52 = vadd.f32 %v1680_v22, %v1587_v33 }
 0x1c6   : > { %v1780_v16 = vpop.xlane.xlu1 %1779 }
 0x1c7   : > { %v1781_v32 = vadd.f32 %v1780_v16, %v1687_v11 }
 0x1c9   : > { %v1787_v42 = vadd.f32 %v1786_v63, %v1781_v32  ;;  %v1774_v8 = vpop.xlane.xlu0 %1773 }
 0x1ca   : > { %v1775_v20 = vadd.f32 %v1774_v8, %v1681_v52 }
 0x1cb   : > { %1788 = vst.msk [vmem:[%s3061_s4] sm:$0xff] %vm264_vm1, %v1787_v42 }
 0x1cc   : > { %v1783_v51 = vadd.f32 %v1782_v4, %v1775_v20 }
 0x1ce   : > { %1785 = vst.msk [vmem:[%s3066_s7] sm:$0xff] %vm264_vm1, %v1783_v51 }
 0x1cf PF: > { %s20_s17 = sadd.s32 1, %s2206_s17   ;;  %s3102_s12 = smov %s2190_s13 }
 0x1d0   : > { %p17_p0 = scmp.ge.s32.totalorder %s20_s17, 4   ;;  %s3103_s13 = smov %s2194_s14 }
 0x1d1   : > { %s3104_s14 = smov %s2279_s24  ;;  %s3105_s15 = smov %s2202_s16 }
 0x1d2   : > { %s3106_s16 = smov %s3108_s19  ;;  %19 = sbr.rel (!%p17_p0) target bundleno = 6 (0x6), region = 127 }
 0x1d7   :  { %1822 = vsyncpa [#allocation3], 1 }
 0x1d8   :  { %1824 = vsyncpa [#allocation3 + $0x1], 1 }
 0x1d9   :  { %1825 = vsyncpa [#allocation5], 1 }
 0x1da   :  { %1827 = vsyncpa [#allocation5 + $0x1], 1 }

</bundles_post_ra>
